<compile_context>
chip_gen: v6e
topology: v6e:2x2x1
jax: 0.10.0
libtpu: 0.0.40
codegen_flags: <defaults>
</compile_context>

<pallas_src>
import jax
import jax.numpy as jnp
from jax import lax
from jax.experimental import pallas as pl
from jax.experimental.pallas import tpu as pltpu


# ------------------------------- Pallas kernel ------------------------------ #

def _make_dense_block_kernel(num_layers, in_channels, growth_rate, H, W, n_tile):
    """Fused DenseBlock kernel; one batch-tile (lane slab of n_tile cols) per step."""
    cmid = 4 * growth_rate

    def kernel(x_ref, masks_ref, s1_ref, b1_ref, w1_ref, s2_ref, b2_ref, w2_ref,
               o_ref, patch_ref):
        # Seed the running feature map (== final output) with the block input.
        o_ref[:in_channels, :] = x_ref[...]

        for i in range(num_layers):
            cin = in_channels + i * growth_rate

            # ---- DenseLayer.conv_1: BN1 + ReLU + 1x1 conv (channel matmul) ----
            cur = o_ref[:cin, :]                                   # (cin, N) f32
            s1 = s1_ref[i, :cin, :]                                # (cin, 1)
            b1 = b1_ref[i, :cin, :]
            h = jnp.maximum(cur * s1 + b1, 0.0)                    # BN1 + ReLU (VPU, f32)
            w1 = w1_ref[i, :, :cin]                                # (cmid, cin) bf16
            h = jnp.dot(w1, h.astype(jnp.bfloat16),                # 1x1 conv on MXU
                        preferred_element_type=jnp.float32)        # (cmid, N) f32

            # ---- DenseLayer.conv_2: BN2 + ReLU + 3x3 conv (pad=1) -------------
            h = jnp.maximum(h * s2_ref[i] + b2_ref[i], 0.0)        # (cmid, N) f32

            # im2col: 9 lane-rotated (XLU), boundary-masked taps written into the
            # VMEM patch scratch; masks reproduce zero padding.  f32 math (v5e
            # safe); cast to bf16 only at the store / MXU boundary.
            for k in range(9):
                dy, dx = k // 3 - 1, k % 3 - 1
                s = dy * W + dx
                if s == 0:                                         # center tap
                    piece = h
                else:
                    rolled = pltpu.roll(h, shift=(-s) % n_tile, axis=1)
                    piece = rolled * masks_ref[k:k + 1, :]
                patch_ref[k * cmid:(k + 1) * cmid, :] = piece.astype(jnp.bfloat16)

            out = jnp.dot(w2_ref[i], patch_ref[...],               # one MXU pass, K = 9*cmid
                          preferred_element_type=jnp.float32)      # (growth, N) f32

            # Dropout: eval-mode identity.  In-place channel-concat write.
            o_ref[cin:cin + growth_rate, :] = out

    return kernel


# ------------------------------ host-side setup ----------------------------- #

def _tap_masks(H, W):
    """(9, H*W) f32: validity mask of each 3x3 tap under zero padding."""
    p = jnp.arange(H * W)
    y, x = p // W, p % W
    rows = []
    for dy in (-1, 0, 1):
        for dx in (-1, 0, 1):
            rows.append((y + dy >= 0) & (y + dy < H) & (x + dx >= 0) & (x + dx < W))
    return jnp.stack(rows).astype(jnp.float32)


def _fold_bn(gamma, beta, mean, var, eps=1e-5):
    scale = gamma / jnp.sqrt(var + eps)
    shift = beta - mean * scale
    return scale, shift


def init_dense_block_params(key, num_layers, in_channels, growth_rate):
    """Random inference-mode parameters (BN already folded to scale/shift)."""
    params = []
    cmid = 4 * growth_rate
    for i in range(num_layers):
        cin = in_channels + i * growth_rate
        k = jax.random.fold_in(key, i)
        ks = jax.random.split(k, 10)
        g1 = jax.random.uniform(ks[0], (cin,), jnp.float32, 0.5, 1.5)
        be1 = 0.1 * jax.random.normal(ks[1], (cin,), jnp.float32)
        m1 = 0.1 * jax.random.normal(ks[2], (cin,), jnp.float32)
        v1 = jax.random.uniform(ks[3], (cin,), jnp.float32, 0.5, 1.5)
        g2 = jax.random.uniform(ks[4], (cmid,), jnp.float32, 0.5, 1.5)
        be2 = 0.1 * jax.random.normal(ks[5], (cmid,), jnp.float32)
        m2 = 0.1 * jax.random.normal(ks[6], (cmid,), jnp.float32)
        v2 = jax.random.uniform(ks[7], (cmid,), jnp.float32, 0.5, 1.5)
        w1 = jax.random.normal(ks[8], (cmid, cin), jnp.float32) * (2.0 / cin) ** 0.5
        w2 = jax.random.normal(ks[9], (growth_rate, cmid, 3, 3), jnp.float32) * \
            (2.0 / (9 * cmid)) ** 0.5
        s1, b1 = _fold_bn(g1, be1, m1, v1)
        s2, b2 = _fold_bn(g2, be2, m2, v2)
        params.append(dict(s1=s1, b1=b1, w1=w1, s2=s2, b2=b2, w2=w2))
    return params


# ------------------------------- forward passes ------------------------------ #

def dense_block_forward(x_nchw, params, growth_rate, batch_tile=None):
    """Fused Pallas DenseBlock.  x: NCHW -> NCHW concat of all features."""
    B, C0, H, W = x_nchw.shape
    HW = H * W
    L = len(params)
    cmid = 4 * growth_rate
    c_total = C0 + L * growth_rate
    cin_max = C0 + (L - 1) * growth_rate
    if batch_tile is None:
        batch_tile = B                        # fold the whole batch into lanes
    assert B % batch_tile == 0
    n_tile = batch_tile * HW

    # Layout assumptions (lane-dense spatial, sublane-aligned channel slices).
    assert HW % 128 == 0, "H*W must be a multiple of 128 (lane axis)"
    assert C0 % 8 == 0 and growth_rate % 8 == 0, "channel counts must be 8-aligned"

    # (B, C, H, W) -> (C, B*H*W): channels on sublanes, batch*spatial on lanes.
    x_cn = jnp.transpose(x_nchw, (1, 0, 2, 3)).reshape(C0, B * HW)
    masks = jnp.tile(_tap_masks(H, W), (1, batch_tile))            # (9, n_tile)

    # Pack per-layer parameters into a few stacked, zero-padded slabs.
    s1 = jnp.zeros((L, cin_max, 1), jnp.float32)
    b1 = jnp.zeros((L, cin_max, 1), jnp.float32)
    w1 = jnp.zeros((L, cmid, cin_max), jnp.float32)
    s2 = jnp.zeros((L, cmid, 1), jnp.float32)
    b2 = jnp.zeros((L, cmid, 1), jnp.float32)
    w2 = jnp.zeros((L, growth_rate, 9 * cmid), jnp.float32)
    for i, p in enumerate(params):
        cin = C0 + i * growth_rate
        s1 = s1.at[i, :cin, 0].set(p["s1"])
        b1 = b1.at[i, :cin, 0].set(p["b1"])
        w1 = w1.at[i, :, :cin].set(p["w1"])
        s2 = s2.at[i, :, 0].set(p["s2"])
        b2 = b2.at[i, :, 0].set(p["b2"])
        # (O, I, 3, 3) -> (O, ky, kx, I) -> (O, 9*I): tap-major, channel-minor.
        w2 = w2.at[i].set(
            jnp.transpose(p["w2"], (0, 2, 3, 1)).reshape(growth_rate, 9 * cmid))
    w1 = w1.astype(jnp.bfloat16)
    w2 = w2.astype(jnp.bfloat16)

    flops = 2 * B * HW * sum(
        cmid * (C0 + i * growth_rate) + growth_rate * 9 * cmid for i in range(L))
    bytes_accessed = (x_cn.size * 4 + masks.size * 4 + c_total * B * HW * 4
                      + (s1.size + b1.size + s2.size + b2.size) * 4
                      + (w1.size + w2.size) * 2)

    kernel = _make_dense_block_kernel(L, C0, growth_rate, H, W, n_tile)
    out_cn = pl.pallas_call(
        kernel,
        out_shape=jax.ShapeDtypeStruct((c_total, B * HW), jnp.float32),
        grid=(B // batch_tile,),
        in_specs=[
            pl.BlockSpec((C0, n_tile), lambda b: (0, b)),
            pl.BlockSpec((9, n_tile), lambda b: (0, 0)),
            pl.BlockSpec((L, cin_max, 1), lambda b: (0, 0, 0)),
            pl.BlockSpec((L, cin_max, 1), lambda b: (0, 0, 0)),
            pl.BlockSpec((L, cmid, cin_max), lambda b: (0, 0, 0)),
            pl.BlockSpec((L, cmid, 1), lambda b: (0, 0, 0)),
            pl.BlockSpec((L, cmid, 1), lambda b: (0, 0, 0)),
            pl.BlockSpec((L, growth_rate, 9 * cmid), lambda b: (0, 0, 0)),
        ],
        out_specs=pl.BlockSpec((c_total, n_tile), lambda b: (0, b)),
        scratch_shapes=[pltpu.VMEM((9 * cmid, n_tile), jnp.bfloat16)],
        compiler_params=pltpu.CompilerParams(
            dimension_semantics=("parallel",),        # batch tiles across TCs
            vmem_limit_bytes=32 * 1024 * 1024),
        cost_estimate=pl.CostEstimate(flops=flops, transcendentals=0,
                                      bytes_accessed=bytes_accessed),
    )(x_cn, masks, s1, b1, w1, s2, b2, w2)

    return jnp.transpose(out_cn.reshape(c_total, B, H, W), (1, 0, 2, 3))


def dense_block_reference(x_nchw, params):
    """Pure-JAX f32 reference for correctness checking."""
    feats = [x_nchw]
    for p in params:
        cur = jnp.concatenate(feats, axis=1)
        s1 = p["s1"].reshape(1, -1, 1, 1)
        b1 = p["b1"].reshape(1, -1, 1, 1)
        h = jnp.maximum(cur * s1 + b1, 0.0)
        h = lax.conv_general_dilated(
            h, p["w1"][:, :, None, None], (1, 1), "VALID",
            dimension_numbers=("NCHW", "OIHW", "NCHW"))
        s2 = p["s2"].reshape(1, -1, 1, 1)
        b2 = p["b2"].reshape(1, -1, 1, 1)
        h = jnp.maximum(h * s2 + b2, 0.0)
        out = lax.conv_general_dilated(
            h, p["w2"], (1, 1), ((1, 1), (1, 1)),
            dimension_numbers=("NCHW", "OIHW", "NCHW"))
        feats.append(out)
    return jnp.concatenate(feats, axis=1)


# ------------------------------------ main ----------------------------------- #

if __name__ == "__main__":
    key = jax.random.PRNGKey(0)
    # Channel counts are multiples of 8 (sublane-aligned channel slices);
    # H*W = 256 keeps the lane axis dense; batch is folded into the lane axis.
    B, C0, H, W = 2, 8, 16, 16
    num_layers, growth_rate, dropout_p = 3, 8, 0.0   # dropout: eval-mode identity

    kx, kp = jax.random.split(key)
    x = jax.random.normal(kx, (B, C0, H, W), jnp.float32)         # NCHW input
    params = init_dense_block_params(kp, num_layers, C0, growth_rate)

    y = dense_block_forward(x, params, growth_rate)
    y = jax.block_until_ready(y)
    assert y.shape == (B, C0 + num_layers * growth_rate, H, W), y.shape

    y_ref = dense_block_reference(x, params)
    scale = float(jnp.max(jnp.abs(y_ref)))
    max_err = float(jnp.max(jnp.abs(y - y_ref)))
    # bf16 MXU operands (f32 accumulation) -> a few-percent relative budget.
    assert max_err <= 5e-2 * scale + 1e-4, (max_err, scale)

    print("KERNEL_OK")
</pallas_src>

<mosaic_0001>
module attributes {stable_mosaic.version = 11 : i64} {
  func.func @kernel(%arg0: i32, %arg1: memref<8x512xf32, #tpu.memory_space<vmem>>, %arg2: memref<9x512xf32, #tpu.memory_space<vmem>>, %arg3: memref<3x24x1xf32, #tpu.memory_space<vmem>>, %arg4: memref<3x24x1xf32, #tpu.memory_space<vmem>>, %arg5: memref<3x32x24xbf16, #tpu.memory_space<vmem>>, %arg6: memref<3x32x1xf32, #tpu.memory_space<vmem>>, %arg7: memref<3x32x1xf32, #tpu.memory_space<vmem>>, %arg8: memref<3x8x288xbf16, #tpu.memory_space<vmem>>, %arg9: memref<32x512xf32, #tpu.memory_space<vmem>>, %arg10: memref<288x512xbf16, #tpu.memory_space<vmem>>) attributes {dimension_semantics = [#tpu.dimension_semantics<parallel>], iteration_bounds = array<i64: 1>, scalar_prefetch = 0 : i64, scratch_operands = 1 : i64, tpu.core_type = #tpu.core_type<tc>, window_params = [{transform_indices = @transform_0, window_bounds = array<i64: 8, 512>}, {pipeline_mode = #tpu.pipeline_mode<synchronous>, transform_indices = @transform_1, window_bounds = array<i64: 9, 512>}, {pipeline_mode = #tpu.pipeline_mode<synchronous>, transform_indices = @transform_2, window_bounds = array<i64: 3, 24, 1>}, {pipeline_mode = #tpu.pipeline_mode<synchronous>, transform_indices = @transform_3, window_bounds = array<i64: 3, 24, 1>}, {pipeline_mode = #tpu.pipeline_mode<synchronous>, transform_indices = @transform_4, window_bounds = array<i64: 3, 32, 24>}, {pipeline_mode = #tpu.pipeline_mode<synchronous>, transform_indices = @transform_5, window_bounds = array<i64: 3, 32, 1>}, {pipeline_mode = #tpu.pipeline_mode<synchronous>, transform_indices = @transform_6, window_bounds = array<i64: 3, 32, 1>}, {pipeline_mode = #tpu.pipeline_mode<synchronous>, transform_indices = @transform_7, window_bounds = array<i64: 3, 8, 288>}, {transform_indices = @transform_8, window_bounds = array<i64: 32, 512>}]} {
    %c0 = arith.constant 0 : index
    %c0_0 = arith.constant 0 : index
    %0 = vector.load %arg1[%c0, %c0_0] : memref<8x512xf32, #tpu.memory_space<vmem>>, vector<8x512xf32>
    %c0_1 = arith.constant 0 : index
    %c0_2 = arith.constant 0 : index
    %1 = vector.load %arg9[%c0_1, %c0_2] : memref<32x512xf32, #tpu.memory_space<vmem>>, vector<8x512xf32>
    tpu.vector_store %arg9[%c0_1, %c0_2], %0 {strides = array<i32>} : memref<32x512xf32, #tpu.memory_space<vmem>>, vector<8x512xf32>,
    %c0_3 = arith.constant 0 : index
    %c0_4 = arith.constant 0 : index
    %2 = vector.load %arg9[%c0_3, %c0_4] : memref<32x512xf32, #tpu.memory_space<vmem>>, vector<8x512xf32>
    %c0_5 = arith.constant 0 : index
    %c0_6 = arith.constant 0 : index
    %c0_7 = arith.constant 0 : index
    %3 = vector.load %arg3[%c0_5, %c0_6, %c0_7] : memref<3x24x1xf32, #tpu.memory_space<vmem>>, vector<1x8x1xf32>
    %4 = vector.shape_cast %3 : vector<1x8x1xf32> to vector<8x1xf32>
    %c0_8 = arith.constant 0 : index
    %c0_9 = arith.constant 0 : index
    %c0_10 = arith.constant 0 : index
    %5 = vector.load %arg4[%c0_8, %c0_9, %c0_10] : memref<3x24x1xf32, #tpu.memory_space<vmem>>, vector<1x8x1xf32>
    %6 = vector.shape_cast %5 : vector<1x8x1xf32> to vector<8x1xf32>
    %7 = vector.broadcast %4 : vector<8x1xf32> to vector<8x512xf32>
    %8 = arith.mulf %2, %7 : vector<8x512xf32>
    %9 = vector.broadcast %6 : vector<8x1xf32> to vector<8x512xf32>
    %10 = arith.addf %8, %9 : vector<8x512xf32>
    %cst = arith.constant 0.000000e+00 : f32
    %11 = vector.broadcast %cst : f32 to vector<8x512xf32>
    %12 = arith.maximumf %10, %11 : vector<8x512xf32>
    %c0_11 = arith.constant 0 : index
    %c0_12 = arith.constant 0 : index
    %c0_13 = arith.constant 0 : index
    %13 = vector.load %arg5[%c0_11, %c0_12, %c0_13] : memref<3x32x24xbf16, #tpu.memory_space<vmem>>, vector<1x32x8xbf16>
    %14 = vector.shape_cast %13 : vector<1x32x8xbf16> to vector<32x8xbf16>
    %15 = arith.truncf %12 : vector<8x512xf32> to vector<8x512xbf16>
    %cst_14 = arith.constant dense<0.000000e+00> : vector<32x512xf32>
    %16 = tpu.matmul %14, %15, %cst_14 {dimension_numbers = #tpu.dot_dimension_numbers<[1], [0], [0], [1], [0, 0, 1, 1], [], []>} : vector<32x8xbf16>, vector<8x512xbf16>, vector<32x512xf32> -> vector<32x512xf32>
    %c0_15 = arith.constant 0 : index
    %c0_16 = arith.constant 0 : index
    %c0_17 = arith.constant 0 : index
    %17 = vector.load %arg6[%c0_15, %c0_16, %c0_17] : memref<3x32x1xf32, #tpu.memory_space<vmem>>, vector<1x32x1xf32>
    %18 = vector.shape_cast %17 : vector<1x32x1xf32> to vector<32x1xf32>
    %19 = vector.broadcast %18 : vector<32x1xf32> to vector<32x512xf32>
    %20 = arith.mulf %16, %19 : vector<32x512xf32>
    %c0_18 = arith.constant 0 : index
    %c0_19 = arith.constant 0 : index
    %c0_20 = arith.constant 0 : index
    %21 = vector.load %arg7[%c0_18, %c0_19, %c0_20] : memref<3x32x1xf32, #tpu.memory_space<vmem>>, vector<1x32x1xf32>
    %22 = vector.shape_cast %21 : vector<1x32x1xf32> to vector<32x1xf32>
    %23 = vector.broadcast %22 : vector<32x1xf32> to vector<32x512xf32>
    %24 = arith.addf %20, %23 : vector<32x512xf32>
    %cst_21 = arith.constant 0.000000e+00 : f32
    %25 = vector.broadcast %cst_21 : f32 to vector<32x512xf32>
    %26 = arith.maximumf %24, %25 : vector<32x512xf32>
    %c17_i32 = arith.constant 17 : i32
    %27 = tpu.dynamic_rotate %26 by %c17_i32 dim 1 : vector<32x512xf32>, i32 -> vector<32x512xf32>
    %c0_22 = arith.constant 0 : index
    %c0_23 = arith.constant 0 : index
    %28 = vector.load %arg2[%c0_22, %c0_23] : memref<9x512xf32, #tpu.memory_space<vmem>>, vector<1x512xf32>
    %29 = vector.broadcast %28 : vector<1x512xf32> to vector<32x512xf32>
    %30 = arith.mulf %27, %29 : vector<32x512xf32>
    %31 = arith.truncf %30 : vector<32x512xf32> to vector<32x512xbf16>
    %c0_24 = arith.constant 0 : index
    %c0_25 = arith.constant 0 : index
    %32 = vector.load %arg10[%c0_24, %c0_25] : memref<288x512xbf16, #tpu.memory_space<vmem>>, vector<32x512xbf16>
    tpu.vector_store %arg10[%c0_24, %c0_25], %31 {strides = array<i32>} : memref<288x512xbf16, #tpu.memory_space<vmem>>, vector<32x512xbf16>,
    %c16_i32 = arith.constant 16 : i32
    %33 = tpu.dynamic_rotate %26 by %c16_i32 dim 1 : vector<32x512xf32>, i32 -> vector<32x512xf32>
    %c1 = arith.constant 1 : index
    %c0_26 = arith.constant 0 : index
    %34 = vector.load %arg2[%c1, %c0_26] : memref<9x512xf32, #tpu.memory_space<vmem>>, vector<1x512xf32>
    %35 = vector.broadcast %34 : vector<1x512xf32> to vector<32x512xf32>
    %36 = arith.mulf %33, %35 : vector<32x512xf32>
    %37 = arith.truncf %36 : vector<32x512xf32> to vector<32x512xbf16>
    %c32 = arith.constant 32 : index
    %c0_27 = arith.constant 0 : index
    %38 = vector.load %arg10[%c32, %c0_27] : memref<288x512xbf16, #tpu.memory_space<vmem>>, vector<32x512xbf16>
    tpu.vector_store %arg10[%c32, %c0_27], %37 {strides = array<i32>} : memref<288x512xbf16, #tpu.memory_space<vmem>>, vector<32x512xbf16>,
    %c15_i32 = arith.constant 15 : i32
    %39 = tpu.dynamic_rotate %26 by %c15_i32 dim 1 : vector<32x512xf32>, i32 -> vector<32x512xf32>
    %c2 = arith.constant 2 : index
    %c0_28 = arith.constant 0 : index
    %40 = vector.load %arg2[%c2, %c0_28] : memref<9x512xf32, #tpu.memory_space<vmem>>, vector<1x512xf32>
    %41 = vector.broadcast %40 : vector<1x512xf32> to vector<32x512xf32>
    %42 = arith.mulf %39, %41 : vector<32x512xf32>
    %43 = arith.truncf %42 : vector<32x512xf32> to vector<32x512xbf16>
    %c64 = arith.constant 64 : index
    %c0_29 = arith.constant 0 : index
    %44 = vector.load %arg10[%c64, %c0_29] : memref<288x512xbf16, #tpu.memory_space<vmem>>, vector<32x512xbf16>
    tpu.vector_store %arg10[%c64, %c0_29], %43 {strides = array<i32>} : memref<288x512xbf16, #tpu.memory_space<vmem>>, vector<32x512xbf16>,
    %c1_i32 = arith.constant 1 : i32
    %45 = tpu.dynamic_rotate %26 by %c1_i32 dim 1 : vector<32x512xf32>, i32 -> vector<32x512xf32>
    %c3 = arith.constant 3 : index
    %c0_30 = arith.constant 0 : index
    %46 = vector.load %arg2[%c3, %c0_30] : memref<9x512xf32, #tpu.memory_space<vmem>>, vector<1x512xf32>
    %47 = vector.broadcast %46 : vector<1x512xf32> to vector<32x512xf32>
    %48 = arith.mulf %45, %47 : vector<32x512xf32>
    %49 = arith.truncf %48 : vector<32x512xf32> to vector<32x512xbf16>
    %c96 = arith.constant 96 : index
    %c0_31 = arith.constant 0 : index
    %50 = vector.load %arg10[%c96, %c0_31] : memref<288x512xbf16, #tpu.memory_space<vmem>>, vector<32x512xbf16>
    tpu.vector_store %arg10[%c96, %c0_31], %49 {strides = array<i32>} : memref<288x512xbf16, #tpu.memory_space<vmem>>, vector<32x512xbf16>,
    %51 = arith.truncf %26 : vector<32x512xf32> to vector<32x512xbf16>
    %c128 = arith.constant 128 : index
    %c0_32 = arith.constant 0 : index
    %52 = vector.load %arg10[%c128, %c0_32] : memref<288x512xbf16, #tpu.memory_space<vmem>>, vector<32x512xbf16>
    tpu.vector_store %arg10[%c128, %c0_32], %51 {strides = array<i32>} : memref<288x512xbf16, #tpu.memory_space<vmem>>, vector<32x512xbf16>,
    %c511_i32 = arith.constant 511 : i32
    %53 = tpu.dynamic_rotate %26 by %c511_i32 dim 1 : vector<32x512xf32>, i32 -> vector<32x512xf32>
    %c5 = arith.constant 5 : index
    %c0_33 = arith.constant 0 : index
    %54 = vector.load %arg2[%c5, %c0_33] : memref<9x512xf32, #tpu.memory_space<vmem>>, vector<1x512xf32>
    %55 = vector.broadcast %54 : vector<1x512xf32> to vector<32x512xf32>
    %56 = arith.mulf %53, %55 : vector<32x512xf32>
    %57 = arith.truncf %56 : vector<32x512xf32> to vector<32x512xbf16>
    %c160 = arith.constant 160 : index
    %c0_34 = arith.constant 0 : index
    %58 = vector.load %arg10[%c160, %c0_34] : memref<288x512xbf16, #tpu.memory_space<vmem>>, vector<32x512xbf16>
    tpu.vector_store %arg10[%c160, %c0_34], %57 {strides = array<i32>} : memref<288x512xbf16, #tpu.memory_space<vmem>>, vector<32x512xbf16>,
    %c497_i32 = arith.constant 497 : i32
    %59 = tpu.dynamic_rotate %26 by %c497_i32 dim 1 : vector<32x512xf32>, i32 -> vector<32x512xf32>
    %c6 = arith.constant 6 : index
    %c0_35 = arith.constant 0 : index
    %60 = vector.load %arg2[%c6, %c0_35] : memref<9x512xf32, #tpu.memory_space<vmem>>, vector<1x512xf32>
    %61 = vector.broadcast %60 : vector<1x512xf32> to vector<32x512xf32>
    %62 = arith.mulf %59, %61 : vector<32x512xf32>
    %63 = arith.truncf %62 : vector<32x512xf32> to vector<32x512xbf16>
    %c192 = arith.constant 192 : index
    %c0_36 = arith.constant 0 : index
    %64 = vector.load %arg10[%c192, %c0_36] : memref<288x512xbf16, #tpu.memory_space<vmem>>, vector<32x512xbf16>
    tpu.vector_store %arg10[%c192, %c0_36], %63 {strides = array<i32>} : memref<288x512xbf16, #tpu.memory_space<vmem>>, vector<32x512xbf16>,
    %c496_i32 = arith.constant 496 : i32
    %65 = tpu.dynamic_rotate %26 by %c496_i32 dim 1 : vector<32x512xf32>, i32 -> vector<32x512xf32>
    %c7 = arith.constant 7 : index
    %c0_37 = arith.constant 0 : index
    %66 = vector.load %arg2[%c7, %c0_37] : memref<9x512xf32, #tpu.memory_space<vmem>>, vector<1x512xf32>
    %67 = vector.broadcast %66 : vector<1x512xf32> to vector<32x512xf32>
    %68 = arith.mulf %65, %67 : vector<32x512xf32>
    %69 = arith.truncf %68 : vector<32x512xf32> to vector<32x512xbf16>
    %c224 = arith.constant 224 : index
    %c0_38 = arith.constant 0 : index
    %70 = vector.load %arg10[%c224, %c0_38] : memref<288x512xbf16, #tpu.memory_space<vmem>>, vector<32x512xbf16>
    tpu.vector_store %arg10[%c224, %c0_38], %69 {strides = array<i32>} : memref<288x512xbf16, #tpu.memory_space<vmem>>, vector<32x512xbf16>,
    %c495_i32 = arith.constant 495 : i32
    %71 = tpu.dynamic_rotate %26 by %c495_i32 dim 1 : vector<32x512xf32>, i32 -> vector<32x512xf32>
    %c8 = arith.constant 8 : index
    %c0_39 = arith.constant 0 : index
    %72 = vector.load %arg2[%c8, %c0_39] : memref<9x512xf32, #tpu.memory_space<vmem>>, vector<1x512xf32>
    %73 = vector.broadcast %72 : vector<1x512xf32> to vector<32x512xf32>
    %74 = arith.mulf %71, %73 : vector<32x512xf32>
    %75 = arith.truncf %74 : vector<32x512xf32> to vector<32x512xbf16>
    %c256 = arith.constant 256 : index
    %c0_40 = arith.constant 0 : index
    %76 = vector.load %arg10[%c256, %c0_40] : memref<288x512xbf16, #tpu.memory_space<vmem>>, vector<32x512xbf16>
    tpu.vector_store %arg10[%c256, %c0_40], %75 {strides = array<i32>} : memref<288x512xbf16, #tpu.memory_space<vmem>>, vector<32x512xbf16>,
    %c0_41 = arith.constant 0 : index
    %c0_42 = arith.constant 0 : index
    %c0_43 = arith.constant 0 : index
    %77 = vector.load %arg8[%c0_41, %c0_42, %c0_43] : memref<3x8x288xbf16, #tpu.memory_space<vmem>>, vector<1x8x288xbf16>
    %78 = vector.shape_cast %77 : vector<1x8x288xbf16> to vector<8x288xbf16>
    %c0_44 = arith.constant 0 : index
    %c0_45 = arith.constant 0 : index
    %79 = vector.load %arg10[%c0_44, %c0_45] : memref<288x512xbf16, #tpu.memory_space<vmem>>, vector<288x512xbf16>
    %cst_46 = arith.constant dense<0.000000e+00> : vector<8x512xf32>
    %80 = tpu.matmul %78, %79, %cst_46 {dimension_numbers = #tpu.dot_dimension_numbers<[1], [0], [0], [1], [0, 0, 1, 1], [], []>} : vector<8x288xbf16>, vector<288x512xbf16>, vector<8x512xf32> -> vector<8x512xf32>
    %c8_47 = arith.constant 8 : index
    %c0_48 = arith.constant 0 : index
    %81 = vector.load %arg9[%c8_47, %c0_48] : memref<32x512xf32, #tpu.memory_space<vmem>>, vector<8x512xf32>
    tpu.vector_store %arg9[%c8_47, %c0_48], %80 {strides = array<i32>} : memref<32x512xf32, #tpu.memory_space<vmem>>, vector<8x512xf32>,
    %c0_49 = arith.constant 0 : index
    %c0_50 = arith.constant 0 : index
    %82 = vector.load %arg9[%c0_49, %c0_50] : memref<32x512xf32, #tpu.memory_space<vmem>>, vector<16x512xf32>
    %c1_51 = arith.constant 1 : index
    %c0_52 = arith.constant 0 : index
    %c0_53 = arith.constant 0 : index
    %83 = vector.load %arg3[%c1_51, %c0_52, %c0_53] : memref<3x24x1xf32, #tpu.memory_space<vmem>>, vector<1x16x1xf32>
    %84 = vector.shape_cast %83 : vector<1x16x1xf32> to vector<16x1xf32>
    %c1_54 = arith.constant 1 : index
    %c0_55 = arith.constant 0 : index
    %c0_56 = arith.constant 0 : index
    %85 = vector.load %arg4[%c1_54, %c0_55, %c0_56] : memref<3x24x1xf32, #tpu.memory_space<vmem>>, vector<1x16x1xf32>
    %86 = vector.shape_cast %85 : vector<1x16x1xf32> to vector<16x1xf32>
    %87 = vector.broadcast %84 : vector<16x1xf32> to vector<16x512xf32>
    %88 = arith.mulf %82, %87 : vector<16x512xf32>
    %89 = vector.broadcast %86 : vector<16x1xf32> to vector<16x512xf32>
    %90 = arith.addf %88, %89 : vector<16x512xf32>
    %cst_57 = arith.constant 0.000000e+00 : f32
    %91 = vector.broadcast %cst_57 : f32 to vector<16x512xf32>
    %92 = arith.maximumf %90, %91 : vector<16x512xf32>
    %c1_58 = arith.constant 1 : index
    %c0_59 = arith.constant 0 : index
    %c0_60 = arith.constant 0 : index
    %93 = vector.load %arg5[%c1_58, %c0_59, %c0_60] : memref<3x32x24xbf16, #tpu.memory_space<vmem>>, vector<1x32x16xbf16>
    %94 = vector.shape_cast %93 : vector<1x32x16xbf16> to vector<32x16xbf16>
    %95 = arith.truncf %92 : vector<16x512xf32> to vector<16x512xbf16>
    %cst_61 = arith.constant dense<0.000000e+00> : vector<32x512xf32>
    %96 = tpu.matmul %94, %95, %cst_61 {dimension_numbers = #tpu.dot_dimension_numbers<[1], [0], [0], [1], [0, 0, 1, 1], [], []>} : vector<32x16xbf16>, vector<16x512xbf16>, vector<32x512xf32> -> vector<32x512xf32>
    %c1_62 = arith.constant 1 : index
    %c0_63 = arith.constant 0 : index
    %c0_64 = arith.constant 0 : index
    %97 = vector.load %arg6[%c1_62, %c0_63, %c0_64] : memref<3x32x1xf32, #tpu.memory_space<vmem>>, vector<1x32x1xf32>
    %98 = vector.shape_cast %97 : vector<1x32x1xf32> to vector<32x1xf32>
    %99 = vector.broadcast %98 : vector<32x1xf32> to vector<32x512xf32>
    %100 = arith.mulf %96, %99 : vector<32x512xf32>
    %c1_65 = arith.constant 1 : index
    %c0_66 = arith.constant 0 : index
    %c0_67 = arith.constant 0 : index
    %101 = vector.load %arg7[%c1_65, %c0_66, %c0_67] : memref<3x32x1xf32, #tpu.memory_space<vmem>>, vector<1x32x1xf32>
    %102 = vector.shape_cast %101 : vector<1x32x1xf32> to vector<32x1xf32>
    %103 = vector.broadcast %102 : vector<32x1xf32> to vector<32x512xf32>
    %104 = arith.addf %100, %103 : vector<32x512xf32>
    %cst_68 = arith.constant 0.000000e+00 : f32
    %105 = vector.broadcast %cst_68 : f32 to vector<32x512xf32>
    %106 = arith.maximumf %104, %105 : vector<32x512xf32>
    %c17_i32_69 = arith.constant 17 : i32
    %107 = tpu.dynamic_rotate %106 by %c17_i32_69 dim 1 : vector<32x512xf32>, i32 -> vector<32x512xf32>
    %c0_70 = arith.constant 0 : index
    %c0_71 = arith.constant 0 : index
    %108 = vector.load %arg2[%c0_70, %c0_71] : memref<9x512xf32, #tpu.memory_space<vmem>>, vector<1x512xf32>
    %109 = vector.broadcast %108 : vector<1x512xf32> to vector<32x512xf32>
    %110 = arith.mulf %107, %109 : vector<32x512xf32>
    %111 = arith.truncf %110 : vector<32x512xf32> to vector<32x512xbf16>
    %c0_72 = arith.constant 0 : index
    %c0_73 = arith.constant 0 : index
    %112 = vector.load %arg10[%c0_72, %c0_73] : memref<288x512xbf16, #tpu.memory_space<vmem>>, vector<32x512xbf16>
    tpu.vector_store %arg10[%c0_72, %c0_73], %111 {strides = array<i32>} : memref<288x512xbf16, #tpu.memory_space<vmem>>, vector<32x512xbf16>,
    %c16_i32_74 = arith.constant 16 : i32
    %113 = tpu.dynamic_rotate %106 by %c16_i32_74 dim 1 : vector<32x512xf32>, i32 -> vector<32x512xf32>
    %c1_75 = arith.constant 1 : index
    %c0_76 = arith.constant 0 : index
    %114 = vector.load %arg2[%c1_75, %c0_76] : memref<9x512xf32, #tpu.memory_space<vmem>>, vector<1x512xf32>
    %115 = vector.broadcast %114 : vector<1x512xf32> to vector<32x512xf32>
    %116 = arith.mulf %113, %115 : vector<32x512xf32>
    %117 = arith.truncf %116 : vector<32x512xf32> to vector<32x512xbf16>
    %c32_77 = arith.constant 32 : index
    %c0_78 = arith.constant 0 : index
    %118 = vector.load %arg10[%c32_77, %c0_78] : memref<288x512xbf16, #tpu.memory_space<vmem>>, vector<32x512xbf16>
    tpu.vector_store %arg10[%c32_77, %c0_78], %117 {strides = array<i32>} : memref<288x512xbf16, #tpu.memory_space<vmem>>, vector<32x512xbf16>,
    %c15_i32_79 = arith.constant 15 : i32
    %119 = tpu.dynamic_rotate %106 by %c15_i32_79 dim 1 : vector<32x512xf32>, i32 -> vector<32x512xf32>
    %c2_80 = arith.constant 2 : index
    %c0_81 = arith.constant 0 : index
    %120 = vector.load %arg2[%c2_80, %c0_81] : memref<9x512xf32, #tpu.memory_space<vmem>>, vector<1x512xf32>
    %121 = vector.broadcast %120 : vector<1x512xf32> to vector<32x512xf32>
    %122 = arith.mulf %119, %121 : vector<32x512xf32>
    %123 = arith.truncf %122 : vector<32x512xf32> to vector<32x512xbf16>
    %c64_82 = arith.constant 64 : index
    %c0_83 = arith.constant 0 : index
    %124 = vector.load %arg10[%c64_82, %c0_83] : memref<288x512xbf16, #tpu.memory_space<vmem>>, vector<32x512xbf16>
    tpu.vector_store %arg10[%c64_82, %c0_83], %123 {strides = array<i32>} : memref<288x512xbf16, #tpu.memory_space<vmem>>, vector<32x512xbf16>,
    %c1_i32_84 = arith.constant 1 : i32
    %125 = tpu.dynamic_rotate %106 by %c1_i32_84 dim 1 : vector<32x512xf32>, i32 -> vector<32x512xf32>
    %c3_85 = arith.constant 3 : index
    %c0_86 = arith.constant 0 : index
    %126 = vector.load %arg2[%c3_85, %c0_86] : memref<9x512xf32, #tpu.memory_space<vmem>>, vector<1x512xf32>
    %127 = vector.broadcast %126 : vector<1x512xf32> to vector<32x512xf32>
    %128 = arith.mulf %125, %127 : vector<32x512xf32>
    %129 = arith.truncf %128 : vector<32x512xf32> to vector<32x512xbf16>
    %c96_87 = arith.constant 96 : index
    %c0_88 = arith.constant 0 : index
    %130 = vector.load %arg10[%c96_87, %c0_88] : memref<288x512xbf16, #tpu.memory_space<vmem>>, vector<32x512xbf16>
    tpu.vector_store %arg10[%c96_87, %c0_88], %129 {strides = array<i32>} : memref<288x512xbf16, #tpu.memory_space<vmem>>, vector<32x512xbf16>,
    %131 = arith.truncf %106 : vector<32x512xf32> to vector<32x512xbf16>
    %c128_89 = arith.constant 128 : index
    %c0_90 = arith.constant 0 : index
    %132 = vector.load %arg10[%c128_89, %c0_90] : memref<288x512xbf16, #tpu.memory_space<vmem>>, vector<32x512xbf16>
    tpu.vector_store %arg10[%c128_89, %c0_90], %131 {strides = array<i32>} : memref<288x512xbf16, #tpu.memory_space<vmem>>, vector<32x512xbf16>,
    %c511_i32_91 = arith.constant 511 : i32
    %133 = tpu.dynamic_rotate %106 by %c511_i32_91 dim 1 : vector<32x512xf32>, i32 -> vector<32x512xf32>
    %c5_92 = arith.constant 5 : index
    %c0_93 = arith.constant 0 : index
    %134 = vector.load %arg2[%c5_92, %c0_93] : memref<9x512xf32, #tpu.memory_space<vmem>>, vector<1x512xf32>
    %135 = vector.broadcast %134 : vector<1x512xf32> to vector<32x512xf32>
    %136 = arith.mulf %133, %135 : vector<32x512xf32>
    %137 = arith.truncf %136 : vector<32x512xf32> to vector<32x512xbf16>
    %c160_94 = arith.constant 160 : index
    %c0_95 = arith.constant 0 : index
    %138 = vector.load %arg10[%c160_94, %c0_95] : memref<288x512xbf16, #tpu.memory_space<vmem>>, vector<32x512xbf16>
    tpu.vector_store %arg10[%c160_94, %c0_95], %137 {strides = array<i32>} : memref<288x512xbf16, #tpu.memory_space<vmem>>, vector<32x512xbf16>,
    %c497_i32_96 = arith.constant 497 : i32
    %139 = tpu.dynamic_rotate %106 by %c497_i32_96 dim 1 : vector<32x512xf32>, i32 -> vector<32x512xf32>
    %c6_97 = arith.constant 6 : index
    %c0_98 = arith.constant 0 : index
    %140 = vector.load %arg2[%c6_97, %c0_98] : memref<9x512xf32, #tpu.memory_space<vmem>>, vector<1x512xf32>
    %141 = vector.broadcast %140 : vector<1x512xf32> to vector<32x512xf32>
    %142 = arith.mulf %139, %141 : vector<32x512xf32>
    %143 = arith.truncf %142 : vector<32x512xf32> to vector<32x512xbf16>
    %c192_99 = arith.constant 192 : index
    %c0_100 = arith.constant 0 : index
    %144 = vector.load %arg10[%c192_99, %c0_100] : memref<288x512xbf16, #tpu.memory_space<vmem>>, vector<32x512xbf16>
    tpu.vector_store %arg10[%c192_99, %c0_100], %143 {strides = array<i32>} : memref<288x512xbf16, #tpu.memory_space<vmem>>, vector<32x512xbf16>,
    %c496_i32_101 = arith.constant 496 : i32
    %145 = tpu.dynamic_rotate %106 by %c496_i32_101 dim 1 : vector<32x512xf32>, i32 -> vector<32x512xf32>
    %c7_102 = arith.constant 7 : index
    %c0_103 = arith.constant 0 : index
    %146 = vector.load %arg2[%c7_102, %c0_103] : memref<9x512xf32, #tpu.memory_space<vmem>>, vector<1x512xf32>
    %147 = vector.broadcast %146 : vector<1x512xf32> to vector<32x512xf32>
    %148 = arith.mulf %145, %147 : vector<32x512xf32>
    %149 = arith.truncf %148 : vector<32x512xf32> to vector<32x512xbf16>
    %c224_104 = arith.constant 224 : index
    %c0_105 = arith.constant 0 : index
    %150 = vector.load %arg10[%c224_104, %c0_105] : memref<288x512xbf16, #tpu.memory_space<vmem>>, vector<32x512xbf16>
    tpu.vector_store %arg10[%c224_104, %c0_105], %149 {strides = array<i32>} : memref<288x512xbf16, #tpu.memory_space<vmem>>, vector<32x512xbf16>,
    %c495_i32_106 = arith.constant 495 : i32
    %151 = tpu.dynamic_rotate %106 by %c495_i32_106 dim 1 : vector<32x512xf32>, i32 -> vector<32x512xf32>
    %c8_107 = arith.constant 8 : index
    %c0_108 = arith.constant 0 : index
    %152 = vector.load %arg2[%c8_107, %c0_108] : memref<9x512xf32, #tpu.memory_space<vmem>>, vector<1x512xf32>
    %153 = vector.broadcast %152 : vector<1x512xf32> to vector<32x512xf32>
    %154 = arith.mulf %151, %153 : vector<32x512xf32>
    %155 = arith.truncf %154 : vector<32x512xf32> to vector<32x512xbf16>
    %c256_109 = arith.constant 256 : index
    %c0_110 = arith.constant 0 : index
    %156 = vector.load %arg10[%c256_109, %c0_110] : memref<288x512xbf16, #tpu.memory_space<vmem>>, vector<32x512xbf16>
    tpu.vector_store %arg10[%c256_109, %c0_110], %155 {strides = array<i32>} : memref<288x512xbf16, #tpu.memory_space<vmem>>, vector<32x512xbf16>,
    %c1_111 = arith.constant 1 : index
    %c0_112 = arith.constant 0 : index
    %c0_113 = arith.constant 0 : index
    %157 = vector.load %arg8[%c1_111, %c0_112, %c0_113] : memref<3x8x288xbf16, #tpu.memory_space<vmem>>, vector<1x8x288xbf16>
    %158 = vector.shape_cast %157 : vector<1x8x288xbf16> to vector<8x288xbf16>
    %c0_114 = arith.constant 0 : index
    %c0_115 = arith.constant 0 : index
    %159 = vector.load %arg10[%c0_114, %c0_115] : memref<288x512xbf16, #tpu.memory_space<vmem>>, vector<288x512xbf16>
    %cst_116 = arith.constant dense<0.000000e+00> : vector<8x512xf32>
    %160 = tpu.matmul %158, %159, %cst_116 {dimension_numbers = #tpu.dot_dimension_numbers<[1], [0], [0], [1], [0, 0, 1, 1], [], []>} : vector<8x288xbf16>, vector<288x512xbf16>, vector<8x512xf32> -> vector<8x512xf32>
    %c16 = arith.constant 16 : index
    %c0_117 = arith.constant 0 : index
    %161 = vector.load %arg9[%c16, %c0_117] : memref<32x512xf32, #tpu.memory_space<vmem>>, vector<8x512xf32>
    tpu.vector_store %arg9[%c16, %c0_117], %160 {strides = array<i32>} : memref<32x512xf32, #tpu.memory_space<vmem>>, vector<8x512xf32>,
    %c0_118 = arith.constant 0 : index
    %c0_119 = arith.constant 0 : index
    %162 = vector.load %arg9[%c0_118, %c0_119] : memref<32x512xf32, #tpu.memory_space<vmem>>, vector<24x512xf32>
    %c2_120 = arith.constant 2 : index
    %c0_121 = arith.constant 0 : index
    %c0_122 = arith.constant 0 : index
    %163 = vector.load %arg3[%c2_120, %c0_121, %c0_122] : memref<3x24x1xf32, #tpu.memory_space<vmem>>, vector<1x24x1xf32>
    %164 = vector.shape_cast %163 : vector<1x24x1xf32> to vector<24x1xf32>
    %c2_123 = arith.constant 2 : index
    %c0_124 = arith.constant 0 : index
    %c0_125 = arith.constant 0 : index
    %165 = vector.load %arg4[%c2_123, %c0_124, %c0_125] : memref<3x24x1xf32, #tpu.memory_space<vmem>>, vector<1x24x1xf32>
    %166 = vector.shape_cast %165 : vector<1x24x1xf32> to vector<24x1xf32>
    %167 = vector.broadcast %164 : vector<24x1xf32> to vector<24x512xf32>
    %168 = arith.mulf %162, %167 : vector<24x512xf32>
    %169 = vector.broadcast %166 : vector<24x1xf32> to vector<24x512xf32>
    %170 = arith.addf %168, %169 : vector<24x512xf32>
    %cst_126 = arith.constant 0.000000e+00 : f32
    %171 = vector.broadcast %cst_126 : f32 to vector<24x512xf32>
    %172 = arith.maximumf %170, %171 : vector<24x512xf32>
    %c2_127 = arith.constant 2 : index
    %c0_128 = arith.constant 0 : index
    %c0_129 = arith.constant 0 : index
    %173 = vector.load %arg5[%c2_127, %c0_128, %c0_129] : memref<3x32x24xbf16, #tpu.memory_space<vmem>>, vector<1x32x24xbf16>
    %174 = vector.shape_cast %173 : vector<1x32x24xbf16> to vector<32x24xbf16>
    %175 = arith.truncf %172 : vector<24x512xf32> to vector<24x512xbf16>
    %cst_130 = arith.constant dense<0.000000e+00> : vector<32x512xf32>
    %176 = tpu.matmul %174, %175, %cst_130 {dimension_numbers = #tpu.dot_dimension_numbers<[1], [0], [0], [1], [0, 0, 1, 1], [], []>} : vector<32x24xbf16>, vector<24x512xbf16>, vector<32x512xf32> -> vector<32x512xf32>
    %c2_131 = arith.constant 2 : index
    %c0_132 = arith.constant 0 : index
    %c0_133 = arith.constant 0 : index
    %177 = vector.load %arg6[%c2_131, %c0_132, %c0_133] : memref<3x32x1xf32, #tpu.memory_space<vmem>>, vector<1x32x1xf32>
    %178 = vector.shape_cast %177 : vector<1x32x1xf32> to vector<32x1xf32>
    %179 = vector.broadcast %178 : vector<32x1xf32> to vector<32x512xf32>
    %180 = arith.mulf %176, %179 : vector<32x512xf32>
    %c2_134 = arith.constant 2 : index
    %c0_135 = arith.constant 0 : index
    %c0_136 = arith.constant 0 : index
    %181 = vector.load %arg7[%c2_134, %c0_135, %c0_136] : memref<3x32x1xf32, #tpu.memory_space<vmem>>, vector<1x32x1xf32>
    %182 = vector.shape_cast %181 : vector<1x32x1xf32> to vector<32x1xf32>
    %183 = vector.broadcast %182 : vector<32x1xf32> to vector<32x512xf32>
    %184 = arith.addf %180, %183 : vector<32x512xf32>
    %cst_137 = arith.constant 0.000000e+00 : f32
    %185 = vector.broadcast %cst_137 : f32 to vector<32x512xf32>
    %186 = arith.maximumf %184, %185 : vector<32x512xf32>
    %c17_i32_138 = arith.constant 17 : i32
    %187 = tpu.dynamic_rotate %186 by %c17_i32_138 dim 1 : vector<32x512xf32>, i32 -> vector<32x512xf32>
    %c0_139 = arith.constant 0 : index
    %c0_140 = arith.constant 0 : index
    %188 = vector.load %arg2[%c0_139, %c0_140] : memref<9x512xf32, #tpu.memory_space<vmem>>, vector<1x512xf32>
    %189 = vector.broadcast %188 : vector<1x512xf32> to vector<32x512xf32>
    %190 = arith.mulf %187, %189 : vector<32x512xf32>
    %191 = arith.truncf %190 : vector<32x512xf32> to vector<32x512xbf16>
    %c0_141 = arith.constant 0 : index
    %c0_142 = arith.constant 0 : index
    %192 = vector.load %arg10[%c0_141, %c0_142] : memref<288x512xbf16, #tpu.memory_space<vmem>>, vector<32x512xbf16>
    tpu.vector_store %arg10[%c0_141, %c0_142], %191 {strides = array<i32>} : memref<288x512xbf16, #tpu.memory_space<vmem>>, vector<32x512xbf16>,
    %c16_i32_143 = arith.constant 16 : i32
    %193 = tpu.dynamic_rotate %186 by %c16_i32_143 dim 1 : vector<32x512xf32>, i32 -> vector<32x512xf32>
    %c1_144 = arith.constant 1 : index
    %c0_145 = arith.constant 0 : index
    %194 = vector.load %arg2[%c1_144, %c0_145] : memref<9x512xf32, #tpu.memory_space<vmem>>, vector<1x512xf32>
    %195 = vector.broadcast %194 : vector<1x512xf32> to vector<32x512xf32>
    %196 = arith.mulf %193, %195 : vector<32x512xf32>
    %197 = arith.truncf %196 : vector<32x512xf32> to vector<32x512xbf16>
    %c32_146 = arith.constant 32 : index
    %c0_147 = arith.constant 0 : index
    %198 = vector.load %arg10[%c32_146, %c0_147] : memref<288x512xbf16, #tpu.memory_space<vmem>>, vector<32x512xbf16>
    tpu.vector_store %arg10[%c32_146, %c0_147], %197 {strides = array<i32>} : memref<288x512xbf16, #tpu.memory_space<vmem>>, vector<32x512xbf16>,
    %c15_i32_148 = arith.constant 15 : i32
    %199 = tpu.dynamic_rotate %186 by %c15_i32_148 dim 1 : vector<32x512xf32>, i32 -> vector<32x512xf32>
    %c2_149 = arith.constant 2 : index
    %c0_150 = arith.constant 0 : index
    %200 = vector.load %arg2[%c2_149, %c0_150] : memref<9x512xf32, #tpu.memory_space<vmem>>, vector<1x512xf32>
    %201 = vector.broadcast %200 : vector<1x512xf32> to vector<32x512xf32>
    %202 = arith.mulf %199, %201 : vector<32x512xf32>
    %203 = arith.truncf %202 : vector<32x512xf32> to vector<32x512xbf16>
    %c64_151 = arith.constant 64 : index
    %c0_152 = arith.constant 0 : index
    %204 = vector.load %arg10[%c64_151, %c0_152] : memref<288x512xbf16, #tpu.memory_space<vmem>>, vector<32x512xbf16>
    tpu.vector_store %arg10[%c64_151, %c0_152], %203 {strides = array<i32>} : memref<288x512xbf16, #tpu.memory_space<vmem>>, vector<32x512xbf16>,
    %c1_i32_153 = arith.constant 1 : i32
    %205 = tpu.dynamic_rotate %186 by %c1_i32_153 dim 1 : vector<32x512xf32>, i32 -> vector<32x512xf32>
    %c3_154 = arith.constant 3 : index
    %c0_155 = arith.constant 0 : index
    %206 = vector.load %arg2[%c3_154, %c0_155] : memref<9x512xf32, #tpu.memory_space<vmem>>, vector<1x512xf32>
    %207 = vector.broadcast %206 : vector<1x512xf32> to vector<32x512xf32>
    %208 = arith.mulf %205, %207 : vector<32x512xf32>
    %209 = arith.truncf %208 : vector<32x512xf32> to vector<32x512xbf16>
    %c96_156 = arith.constant 96 : index
    %c0_157 = arith.constant 0 : index
    %210 = vector.load %arg10[%c96_156, %c0_157] : memref<288x512xbf16, #tpu.memory_space<vmem>>, vector<32x512xbf16>
    tpu.vector_store %arg10[%c96_156, %c0_157], %209 {strides = array<i32>} : memref<288x512xbf16, #tpu.memory_space<vmem>>, vector<32x512xbf16>,
    %211 = arith.truncf %186 : vector<32x512xf32> to vector<32x512xbf16>
    %c128_158 = arith.constant 128 : index
    %c0_159 = arith.constant 0 : index
    %212 = vector.load %arg10[%c128_158, %c0_159] : memref<288x512xbf16, #tpu.memory_space<vmem>>, vector<32x512xbf16>
    tpu.vector_store %arg10[%c128_158, %c0_159], %211 {strides = array<i32>} : memref<288x512xbf16, #tpu.memory_space<vmem>>, vector<32x512xbf16>,
    %c511_i32_160 = arith.constant 511 : i32
    %213 = tpu.dynamic_rotate %186 by %c511_i32_160 dim 1 : vector<32x512xf32>, i32 -> vector<32x512xf32>
    %c5_161 = arith.constant 5 : index
    %c0_162 = arith.constant 0 : index
    %214 = vector.load %arg2[%c5_161, %c0_162] : memref<9x512xf32, #tpu.memory_space<vmem>>, vector<1x512xf32>
    %215 = vector.broadcast %214 : vector<1x512xf32> to vector<32x512xf32>
    %216 = arith.mulf %213, %215 : vector<32x512xf32>
    %217 = arith.truncf %216 : vector<32x512xf32> to vector<32x512xbf16>
    %c160_163 = arith.constant 160 : index
    %c0_164 = arith.constant 0 : index
    %218 = vector.load %arg10[%c160_163, %c0_164] : memref<288x512xbf16, #tpu.memory_space<vmem>>, vector<32x512xbf16>
    tpu.vector_store %arg10[%c160_163, %c0_164], %217 {strides = array<i32>} : memref<288x512xbf16, #tpu.memory_space<vmem>>, vector<32x512xbf16>,
    %c497_i32_165 = arith.constant 497 : i32
    %219 = tpu.dynamic_rotate %186 by %c497_i32_165 dim 1 : vector<32x512xf32>, i32 -> vector<32x512xf32>
    %c6_166 = arith.constant 6 : index
    %c0_167 = arith.constant 0 : index
    %220 = vector.load %arg2[%c6_166, %c0_167] : memref<9x512xf32, #tpu.memory_space<vmem>>, vector<1x512xf32>
    %221 = vector.broadcast %220 : vector<1x512xf32> to vector<32x512xf32>
    %222 = arith.mulf %219, %221 : vector<32x512xf32>
    %223 = arith.truncf %222 : vector<32x512xf32> to vector<32x512xbf16>
    %c192_168 = arith.constant 192 : index
    %c0_169 = arith.constant 0 : index
    %224 = vector.load %arg10[%c192_168, %c0_169] : memref<288x512xbf16, #tpu.memory_space<vmem>>, vector<32x512xbf16>
    tpu.vector_store %arg10[%c192_168, %c0_169], %223 {strides = array<i32>} : memref<288x512xbf16, #tpu.memory_space<vmem>>, vector<32x512xbf16>,
    %c496_i32_170 = arith.constant 496 : i32
    %225 = tpu.dynamic_rotate %186 by %c496_i32_170 dim 1 : vector<32x512xf32>, i32 -> vector<32x512xf32>
    %c7_171 = arith.constant 7 : index
    %c0_172 = arith.constant 0 : index
    %226 = vector.load %arg2[%c7_171, %c0_172] : memref<9x512xf32, #tpu.memory_space<vmem>>, vector<1x512xf32>
    %227 = vector.broadcast %226 : vector<1x512xf32> to vector<32x512xf32>
    %228 = arith.mulf %225, %227 : vector<32x512xf32>
    %229 = arith.truncf %228 : vector<32x512xf32> to vector<32x512xbf16>
    %c224_173 = arith.constant 224 : index
    %c0_174 = arith.constant 0 : index
    %230 = vector.load %arg10[%c224_173, %c0_174] : memref<288x512xbf16, #tpu.memory_space<vmem>>, vector<32x512xbf16>
    tpu.vector_store %arg10[%c224_173, %c0_174], %229 {strides = array<i32>} : memref<288x512xbf16, #tpu.memory_space<vmem>>, vector<32x512xbf16>,
    %c495_i32_175 = arith.constant 495 : i32
    %231 = tpu.dynamic_rotate %186 by %c495_i32_175 dim 1 : vector<32x512xf32>, i32 -> vector<32x512xf32>
    %c8_176 = arith.constant 8 : index
    %c0_177 = arith.constant 0 : index
    %232 = vector.load %arg2[%c8_176, %c0_177] : memref<9x512xf32, #tpu.memory_space<vmem>>, vector<1x512xf32>
    %233 = vector.broadcast %232 : vector<1x512xf32> to vector<32x512xf32>
    %234 = arith.mulf %231, %233 : vector<32x512xf32>
    %235 = arith.truncf %234 : vector<32x512xf32> to vector<32x512xbf16>
    %c256_178 = arith.constant 256 : index
    %c0_179 = arith.constant 0 : index
    %236 = vector.load %arg10[%c256_178, %c0_179] : memref<288x512xbf16, #tpu.memory_space<vmem>>, vector<32x512xbf16>
    tpu.vector_store %arg10[%c256_178, %c0_179], %235 {strides = array<i32>} : memref<288x512xbf16, #tpu.memory_space<vmem>>, vector<32x512xbf16>,
    %c2_180 = arith.constant 2 : index
    %c0_181 = arith.constant 0 : index
    %c0_182 = arith.constant 0 : index
    %237 = vector.load %arg8[%c2_180, %c0_181, %c0_182] : memref<3x8x288xbf16, #tpu.memory_space<vmem>>, vector<1x8x288xbf16>
    %238 = vector.shape_cast %237 : vector<1x8x288xbf16> to vector<8x288xbf16>
    %c0_183 = arith.constant 0 : index
    %c0_184 = arith.constant 0 : index
    %239 = vector.load %arg10[%c0_183, %c0_184] : memref<288x512xbf16, #tpu.memory_space<vmem>>, vector<288x512xbf16>
    %cst_185 = arith.constant dense<0.000000e+00> : vector<8x512xf32>
    %240 = tpu.matmul %238, %239, %cst_185 {dimension_numbers = #tpu.dot_dimension_numbers<[1], [0], [0], [1], [0, 0, 1, 1], [], []>} : vector<8x288xbf16>, vector<288x512xbf16>, vector<8x512xf32> -> vector<8x512xf32>
    %c24 = arith.constant 24 : index
    %c0_186 = arith.constant 0 : index
    %241 = vector.load %arg9[%c24, %c0_186] : memref<32x512xf32, #tpu.memory_space<vmem>>, vector<8x512xf32>
    tpu.vector_store %arg9[%c24, %c0_186], %240 {strides = array<i32>} : memref<32x512xf32, #tpu.memory_space<vmem>>, vector<8x512xf32>,
    return
  }
  func.func @transform_0(%arg0: i32) -> (i32, i32) {
    %c0_i32 = arith.constant 0 : i32
    %c0_i32_0 = arith.constant 0 : i32
    return %c0_i32, %arg0 : i32, i32
  }
  func.func @transform_1(%arg0: i32) -> (i32, i32) {
    %c0_i32 = arith.constant 0 : i32
    %c0_i32_0 = arith.constant 0 : i32
    %c0_i32_1 = arith.constant 0 : i32
    return %c0_i32, %c0_i32_0 : i32, i32
  }
  func.func @transform_2(%arg0: i32) -> (i32, i32, i32) {
    %c0_i32 = arith.constant 0 : i32
    %c0_i32_0 = arith.constant 0 : i32
    %c0_i32_1 = arith.constant 0 : i32
    %c0_i32_2 = arith.constant 0 : i32
    return %c0_i32, %c0_i32_0, %c0_i32_1 : i32, i32, i32
  }
  func.func @transform_3(%arg0: i32) -> (i32, i32, i32) {
    %c0_i32 = arith.constant 0 : i32
    %c0_i32_0 = arith.constant 0 : i32
    %c0_i32_1 = arith.constant 0 : i32
    %c0_i32_2 = arith.constant 0 : i32
    return %c0_i32, %c0_i32_0, %c0_i32_1 : i32, i32, i32
  }
  func.func @transform_4(%arg0: i32) -> (i32, i32, i32) {
    %c0_i32 = arith.constant 0 : i32
    %c0_i32_0 = arith.constant 0 : i32
    %c0_i32_1 = arith.constant 0 : i32
    %c0_i32_2 = arith.constant 0 : i32
    return %c0_i32, %c0_i32_0, %c0_i32_1 : i32, i32, i32
  }
  func.func @transform_5(%arg0: i32) -> (i32, i32, i32) {
    %c0_i32 = arith.constant 0 : i32
    %c0_i32_0 = arith.constant 0 : i32
    %c0_i32_1 = arith.constant 0 : i32
    %c0_i32_2 = arith.constant 0 : i32
    return %c0_i32, %c0_i32_0, %c0_i32_1 : i32, i32, i32
  }
  func.func @transform_6(%arg0: i32) -> (i32, i32, i32) {
    %c0_i32 = arith.constant 0 : i32
    %c0_i32_0 = arith.constant 0 : i32
    %c0_i32_1 = arith.constant 0 : i32
    %c0_i32_2 = arith.constant 0 : i32
    return %c0_i32, %c0_i32_0, %c0_i32_1 : i32, i32, i32
  }
  func.func @transform_7(%arg0: i32) -> (i32, i32, i32) {
    %c0_i32 = arith.constant 0 : i32
    %c0_i32_0 = arith.constant 0 : i32
    %c0_i32_1 = arith.constant 0 : i32
    %c0_i32_2 = arith.constant 0 : i32
    return %c0_i32, %c0_i32_0, %c0_i32_1 : i32, i32, i32
  }
  func.func @transform_8(%arg0: i32) -> (i32, i32) {
    %c0_i32 = arith.constant 0 : i32
    %c0_i32_0 = arith.constant 0 : i32
    return %c0_i32, %arg0 : i32, i32
  }
}

</mosaic_0001>

<bundles_post_ra>
// kernel: tpu_custom_call.1
= control target key start
LH: loop header
LB: loop body
LE: loop exit
PB: predicated region body
PF: predicated region fallthrough
CT: control target
= control target key end

     0   :  { %v11721_v1 = vmov 0   ;;  %s11712_s0 = inlined_call_operand.vmem [shape: f32[8,512], index: 0, kind: input, shape index: {}]   ;;  %s11713_s1 = inlined_call_operand.vmem [shape: f32[9,512], index: 1, kind: input, shape index: {}]   ;;  %s11714_s2 = inlined_call_operand.vmem [shape: f32[3,24,1], index: 2, kind: input, shape index: {}]   ;;  %s11715_s3 = inlined_call_operand.vmem [shape: f32[3,24,1], index: 3, kind: input, shape index: {}]   ;;  %s11716_s4 = inlined_call_operand.vmem [shape: bf16[3,32,24], index: 4, kind: input, shape index: {}]   ;;  %s11717_s5 = inlined_call_operand.vmem [shape: f32[3,32,1], index: 5, kind: input, shape index: {}]   ;;  %s11718_s6 = inlined_call_operand.vmem [shape: f32[3,32,1], index: 6, kind: input, shape index: {}]   ;;  %s11719_s7 = inlined_call_operand.vmem [shape: bf16[3,8,288], index: 7, kind: input, shape index: {}]   ;;  %s11720_s8 = inlined_call_operand.hbm [shape: f32[32,512], index: 8, kind: output, shape index: {}]  }
   0x1   :  { %v43_v0 = vld [vmem:[%s11714_s2] sm:$0xff]  ;;  %7356 = vset.pattern.permute.xlu0 %v11721_v1  ;;  %v32_v3 = vld [vmem:[%s11712_s0 + $0x8] sm:$0xff]  ;;  %137 = vmatprep.mubr.bf16.mxu0 %v11721_v1  ;;  %v34_v4 = vld [vmem:[%s11712_s0 + $0x18] sm:$0xff] }
   0x2   :  { %v44_v2 = vld [vmem:[%s11715_s3] sm:$0xff]  ;;  %47 = vperm.xlu0 %7356, %v43_v0   ;;  %36 = vst [vmem:[#allocation3 + $0x8] sm:$0xff] %v32_v3  ;;  %v33_v6 = vld [vmem:[%s11712_s0 + $0x10] sm:$0xff]  ;;  %190 = vmatprep.mubr.bf16.mxu1 %v11721_v1  ;;  %38 = vst [vmem:[#allocation3 + $0x18] sm:$0xff] %v34_v4 }
   0x3   :  { %v31_v5 = vld [vmem:[%s11712_s0] sm:$0xff]  ;;  %37 = vst [vmem:[#allocation3 + $0x10] sm:$0xff] %v33_v6  ;;  %7357 = vset.pattern.permute.xlu1 %v11721_v1  ;;  %v253_v7 = vld [vmem:[%s11718_s6 + $0x10] sm:$0xff] }
   0x4   :  { %35 = vst [vmem:[#allocation3] sm:$0xff] %v31_v5 }
   0x6   :  { %56 = vperm.xlu0 %7356, %v44_v2  }
   0x7   :  { %13 = vsyncpa [#allocation4], 0  ;;  %v211_v8 = vld [vmem:[%s11717_s5] sm:$0xff]  ;;  %v213_v10 = vld [vmem:[%s11717_s5 + $0x10] sm:$0xff]  ;;  %vm92_vm0 = vcmask 1043456   ;;  %vm85_vm1 = vcmask 64512  }
   0x8   :  { %v251_v9 = vld [vmem:[%s11718_s6] sm:$0xff]  ;;  %227 = vperm.xlu1 %7357, %v213_v10   ;;  %v214_v11 = vld [vmem:[%s11717_s5 + $0x18] sm:$0xff]  ;;  %v212_v13 = vld [vmem:[%s11717_s5 + $0x8] sm:$0xff]  ;;  %s7397_s14 = smov 111   ;;  %s7398_s15 = smov 1   ;;  %vm1960_vm7 = vcmask 261120  }
   0x9   :  { %v254_v12 = vld [vmem:[%s11718_s6 + $0x18] sm:$0xff]  ;;  %v252_v14 = vld [vmem:[%s11718_s6 + $0x8] sm:$0xff]  ;;  %v7358_v35 = vld [vmem:[%s11716_s4] sm:$0xff]   ;;  %s7399_s16 = smov 15   ;;  %s7400_s17 = smov 16   ;;  %vm2209_vm11 = vcmask 130048  }
   0xa   :  { %267 = vperm.xlu0 %7356, %v253_v7   ;;  %v7359_v36 = vld [vmem:[%s11716_s4 + $0x8] sm:$0xff]   ;;  %s7401_s18 = smov 17   ;;  %s7402_s19 = smov 112   ;;  %vm4337_vm12 = vcmask 195584  }
   0xb   :  { %s7403_s20 = smov 113   ;;  %s7404_s0 = smov 127  }
   0xc   :  { %232 = vperm.xlu1 %7357, %v214_v11  }
   0xe   :  { %217 = vperm.xlu0 %7356, %v211_v8  }
  0x10   :  { %272 = vperm.xlu1 %7357, %v254_v12  }
  0x12   :  { %257 = vperm.xlu0 %7356, %v251_v9  }
  0x14   :  { %222 = vperm.xlu1 %7357, %v212_v13  }
  0x18   :  { %262 = vperm.xlu1 %7357, %v252_v14  }
  0x7d   :  { %v48_v15 = vpop.permute.xlu0 %47 }
  0x7e   :  { %v51_v16 = vmul.f32 %v48_v15, %v32_v3  ;;  %v53_v17 = vmul.f32 %v48_v15, %v34_v4  ;;  %v50_v18 = vmul.f32 %v48_v15, %v31_v5  ;;  %v52_v19 = vmul.f32 %v48_v15, %v33_v6 }
  0x81   :  { %v57_v20 = vpop.permute.xlu0 %56 }
  0x82   :  { %v60_v21 = vadd.f32 %v57_v20, %v51_v16  ;;  %v62_v22 = vadd.f32 %v57_v20, %v53_v17  ;;  %v59_v23 = vadd.f32 %v57_v20, %v50_v18  ;;  %v61_v24 = vadd.f32 %v57_v20, %v52_v19 }
  0x83   :  { %v7512_v37 = vpop.permute.xlu1 %227 }
  0x84   :  { %v64_v25 = vmax.f32 %v60_v21, 0.0  ;;  %v66_v26 = vmax.f32 %v62_v22, 0.0  ;;  %v63_v27 = vmax.f32 %v59_v23, 0.0  ;;  %v65_v28 = vmax.f32 %v61_v24, 0.0 }
  0x85   :  { %v7514_v38 = vpop.permute.xlu0 %267 }
  0x86   :  { %v72_v29 = vpack.c.bf16 %v64_v25, %v64_v25  ;;  %v74_v30 = vpack.c.bf16 %v66_v26, %v66_v26  ;;  %v71_v31 = vpack.c.bf16 %v63_v27, %v63_v27  ;;  %v73_v32 = vpack.c.bf16 %v65_v28, %v65_v28 }
  0x87   :  { %v7516_v39 = vpop.permute.xlu1 %232 }
  0x88   :  { %6386 = vmatprep.subr.msk.bf16.mxu0 %vm92_vm0, %v72_v29  ;;  %6389 = vmatprep.subr.msk.bf16.mxu1 %vm92_vm0, %v74_v30  ;;  %v94_v33 = vsel %vm92_vm0, %v71_v31, 0  ;;  %v100_v34 = vsel %vm92_vm0, %v73_v32, 0 }
  0x89   :  { %120 = vmatpush1.bf16.msra.mxu0 %v94_v33  ;;  %173 = vmatpush1.bf16.msra.mxu1 %v100_v34  ;;  %v218_v40 = vpop.permute.xlu0 %217 }
  0x8b   :  { %v7518_v41 = vpop.permute.xlu1 %272 }
  0x8c   :  { %6387 = vmatmul.mubr.msk.bf16.vlgmr.msra.gmra.mxu0 %vm85_vm1, %v7358_v35  ;;  %6390 = vmatmul.mubr.msk.bf16.vlgmr.msra.gmra.mxu1 %vm85_vm1, %v7358_v35 }
  0x8d   :  { %147 = vmatprep.mubr.bf16.mxu0 %v11721_v1  ;;  %200 = vmatprep.mubr.bf16.mxu1 %v11721_v1  ;;  %v7520_v44 = vpop.permute.xlu0 %257 }
  0x8f   :  { %v7522_v45 = vpop.permute.xlu1 %222 }
  0x93   :  { %v263_v57 = vpop.permute.xlu1 %262 }
  0x94   :  { %6388 = vmatmul.mubr.msk.bf16.gmra.mxu0 %vm85_vm1, %v7359_v36  ;;  %6391 = vmatmul.mubr.msk.bf16.gmra.mxu1 %vm85_vm1, %v7359_v36 }
  0x95   :  { %2037 = vmatprep.mubr.bf16.mxu1 %v11721_v1 }
 0x14c   :  { %v139_v42 = vpop.f32.mrf.mxu0  ;;  %v192_v43 = vpop.f32.mrf.mxu1 }
 0x14d   :  { %v235_v46 = vmul.f32 %v218_v40, %v139_v42  ;;  %v237_v47 = vmul.f32 %v218_v40, %v192_v43 }
 0x14e   :  { %v141_v48 = vpop.f32.mrf.mxu0  ;;  %v194_v49 = vpop.f32.mrf.mxu1 }
 0x14f   :  { %v277_v50 = vadd.f32 %v7520_v44, %v237_v47  ;;  %v275_v53 = vadd.f32 %v7520_v44, %v235_v46  ;;  %v236_v0 = vmul.f32 %v218_v40, %v141_v48  ;;  %v238_v4 = vmul.f32 %v218_v40, %v194_v49 }
 0x150   :  { %v143_v51 = vpop.f32.mrf.mxu0  ;;  %v196_v52 = vpop.f32.mrf.mxu1 }
 0x151   :  { %v7526_v54 = vmax.f32 %v277_v50, 0.0  ;;  %v239_v55 = vmul.f32 %v7522_v45, %v143_v51  ;;  %v241_v56 = vmul.f32 %v7522_v45, %v196_v52  ;;  %v7532_v60 = vmax.f32 %v275_v53, 0.0 }
 0x152   :  { %v145_v2 = vpop.f32.mrf.mxu0  ;;  %v276_v3 = vadd.f32 %v7520_v44, %v236_v0  ;;  %v198_v6 = vpop.f32.mrf.mxu1  ;;  %v278_v8 = vadd.f32 %v7520_v44, %v238_v4 }
 0x153   :  { %12021 = vst [vmem:[#allocation6_spill] sm:$0xff] %v7526_v54  ;;  %1388 = vrot.lane.b32.xlu0 %v7526_v54, %s7397_s14  ;;  %v279_v58 = vadd.f32 %v263_v57, %v239_v55  ;;  %v281_v59 = vadd.f32 %v263_v57, %v241_v56  ;;  %12022 = vst [vmem:[#allocation7_spill] sm:$0xff] %v7532_v60  ;;  %v240_v5 = vmul.f32 %v7522_v45, %v145_v2 }
 0x154   :  { %v7598_v7 = vmax.f32 %v276_v3, 0.0  ;;  %v242_v10 = vmul.f32 %v7522_v45, %v198_v6  ;;  %v7606_v11 = vmax.f32 %v278_v8, 0.0  ;;  %v202_v15 = vpop.f32.mrf.mxu1  ;;  %v149_v16 = vpop.f32.mrf.mxu0 }
 0x155   :  { %v7534_v61 = vmax.f32 %v279_v58, 0.0  ;;  %v7536_v62 = vmax.f32 %v281_v59, 0.0  ;;  %v280_v9 = vadd.f32 %v263_v57, %v240_v5  ;;  %v245_v18 = vmul.f32 %v7512_v37, %v202_v15 }
 0x156   :  { %12025 = vst [vmem:[#allocation10_spill] sm:$0xff] %v7598_v7  ;;  %12026 = vst [vmem:[#allocation11_spill] sm:$0xff] %v7606_v11  ;;  %v282_v13 = vadd.f32 %v263_v57, %v242_v10  ;;  %v7648_v17 = vpop.f32.mrf.mxu1  ;;  %v7655_v19 = vpop.f32.mrf.mxu0  ;;  %v243_v21 = vmul.f32 %v7512_v37, %v149_v16 }
 0x157   :  { %12023 = vst [vmem:[#allocation8_spill] sm:$0xff] %v7534_v61  ;;  %12024 = vst [vmem:[#allocation9_spill] sm:$0xff] %v7536_v62  ;;  %1372 = vrot.lane.b32.xlu0 %v7532_v60, %s7397_s14  ;;  %1390 = vrot.lane.b32.xlu1 %v7536_v62, %s7397_s14  ;;  %v7608_v12 = vmax.f32 %v280_v9, 0.0  ;;  %v285_v22 = vadd.f32 %v7514_v38, %v245_v18  ;;  %v244_v4 = vmul.f32 %v7512_v37, %v7655_v19 }
 0x158   :  { %v7614_v14 = vmax.f32 %v282_v13, 0.0  ;;  %v206_v20 = vpop.f32.mrf.mxu1  ;;  %v153_v24 = vpop.f32.mrf.mxu0  ;;  %v283_v25 = vadd.f32 %v7514_v38, %v243_v21  ;;  %v246_v10 = vmul.f32 %v7512_v37, %v7648_v17 }
 0x159   :  { %12027 = vst [vmem:[#allocation12_spill] sm:$0xff] %v7608_v12  ;;  %v249_v23 = vmul.f32 %v7516_v39, %v206_v20  ;;  %v7669_v26 = vmax.f32 %v285_v22, 0.0  ;;  %v247_v27 = vmul.f32 %v7516_v39, %v153_v24  ;;  %v284_v9 = vadd.f32 %v7514_v38, %v244_v4 }
 0x15a   :  { %12028 = vst [vmem:[#allocation13_spill] sm:$0xff] %v7614_v14  ;;  %v7677_v29 = vmax.f32 %v283_v25, 0.0  ;;  %v155_v8 = vpop.f32.mrf.mxu0  ;;  %v208_v18 = vpop.f32.mrf.mxu1  ;;  %v286_v20 = vadd.f32 %v7514_v38, %v246_v10 }
 0x15b   :  { %756 = vrot.lane.b32.xlu0 %v7526_v54, %s7398_s15  ;;  %1374 = vrot.lane.b32.xlu1 %v7534_v61, %s7397_s14  ;;  %12029 = vst [vmem:[#allocation14_spill] sm:$0xff] %v7669_v26  ;;  %v289_v28 = vadd.f32 %v7518_v41, %v249_v23  ;;  %v287_v31 = vadd.f32 %v7518_v41, %v247_v27  ;;  %v7808_v19 = vmax.f32 %v284_v9, 0.0 }
 0x15c   :  { %12030 = vst [vmem:[#allocation15_spill] sm:$0xff] %v7677_v29  ;;  %v248_v15 = vmul.f32 %v7516_v39, %v155_v8  ;;  %v250_v17 = vmul.f32 %v7516_v39, %v208_v18  ;;  %v7821_v23 = vmax.f32 %v286_v20, 0.0 }
 0x15d   :  { %v7682_v32 = vmax.f32 %v289_v28, 0.0  ;;  %v7690_v34 = vmax.f32 %v287_v31, 0.0  ;;  %12050 = vst [vmem:[#allocation35_spill] sm:$0xff] %v7808_v19 }
 0x15e   :  { %v288_v37 = vadd.f32 %v7518_v41, %v248_v15  ;;  %12052 = vst [vmem:[#allocation37_spill] sm:$0xff] %v7821_v23  ;;  %v290_v38 = vadd.f32 %v7518_v41, %v250_v17 }
 0x15f   :  { %740 = vrot.lane.b32.xlu0 %v7532_v60, %s7398_s15  ;;  %758 = vrot.lane.b32.xlu1 %v7536_v62, %s7398_s15  ;;  %12032 = vst [vmem:[#allocation17_spill] sm:$0xff] %v7682_v32  ;;  %12034 = vst [vmem:[#allocation19_spill] sm:$0xff] %v7690_v34 }
 0x160   :  { %v7825_v25 = vmax.f32 %v288_v37, 0.0  ;;  %v7836_v28 = vmax.f32 %v290_v38, 0.0 }
 0x162   :  { %12053 = vst [vmem:[#allocation38_spill] sm:$0xff] %v7825_v25  ;;  %12054 = vst [vmem:[#allocation39_spill] sm:$0xff] %v7836_v28 }
 0x163   :  { %612 = vrot.lane.b32.xlu0 %v7526_v54, %s7399_s16  ;;  %742 = vrot.lane.b32.xlu1 %v7534_v61, %s7398_s15 }
 0x167   :  { %596 = vrot.lane.b32.xlu0 %v7532_v60, %s7399_s16  ;;  %614 = vrot.lane.b32.xlu1 %v7536_v62, %s7399_s16 }
 0x16b   :  { %468 = vrot.lane.b32.xlu0 %v7526_v54, %s7400_s17  ;;  %598 = vrot.lane.b32.xlu1 %v7534_v61, %s7399_s16 }
 0x16f   :  { %452 = vrot.lane.b32.xlu0 %v7532_v60, %s7400_s17  ;;  %470 = vrot.lane.b32.xlu1 %v7536_v62, %s7400_s17 }
 0x173   :  { %323 = vrot.lane.b32.xlu0 %v7526_v54, %s7401_s18  ;;  %454 = vrot.lane.b32.xlu1 %v7534_v61, %s7400_s17 }
 0x177   :  { %307 = vrot.lane.b32.xlu0 %v7532_v60, %s7401_s18  ;;  %325 = vrot.lane.b32.xlu1 %v7536_v62, %s7401_s18 }
 0x17b   :  { %1228 = vrot.lane.b32.xlu0 %v7532_v60, %s7402_s19  ;;  %309 = vrot.lane.b32.xlu1 %v7534_v61, %s7401_s18 }
 0x17f   :  { %1244 = vrot.lane.b32.xlu0 %v7526_v54, %s7402_s19  ;;  %1230 = vrot.lane.b32.xlu1 %v7534_v61, %s7402_s19 }
 0x183   :  { %1084 = vrot.lane.b32.xlu0 %v7532_v60, %s7403_s20  ;;  %1246 = vrot.lane.b32.xlu1 %v7536_v62, %s7402_s19 }
 0x187   :  { %1100 = vrot.lane.b32.xlu0 %v7526_v54, %s7403_s20  ;;  %1086 = vrot.lane.b32.xlu1 %v7534_v61, %s7403_s20 }
 0x18b   :  { %940 = vrot.lane.b32.xlu0 %v7532_v60, %s7404_s0  ;;  %1102 = vrot.lane.b32.xlu1 %v7536_v62, %s7403_s20 }
 0x18f   :  { %1380 = vrot.lane.b32.xlu0 %v7598_v7, %s7397_s14  ;;  %942 = vrot.lane.b32.xlu1 %v7534_v61, %s7404_s0 }
 0x193   :  { %764 = vrot.lane.b32.xlu0 %v7606_v11, %s7398_s15  ;;  %1382 = vrot.lane.b32.xlu1 %v7608_v12, %s7397_s14 }
 0x197   :  { %748 = vrot.lane.b32.xlu0 %v7598_v7, %s7398_s15  ;;  %766 = vrot.lane.b32.xlu1 %v7614_v14, %s7398_s15 }
 0x19b   :  { %620 = vrot.lane.b32.xlu0 %v7606_v11, %s7399_s16  ;;  %750 = vrot.lane.b32.xlu1 %v7608_v12, %s7398_s15 }
 0x19f   :  { %604 = vrot.lane.b32.xlu0 %v7598_v7, %s7399_s16  ;;  %622 = vrot.lane.b32.xlu1 %v7614_v14, %s7399_s16 }
 0x1a3   :  { %476 = vrot.lane.b32.xlu0 %v7606_v11, %s7400_s17  ;;  %606 = vrot.lane.b32.xlu1 %v7608_v12, %s7399_s16 }
 0x1a7   :  { %460 = vrot.lane.b32.xlu0 %v7598_v7, %s7400_s17  ;;  %478 = vrot.lane.b32.xlu1 %v7614_v14, %s7400_s17 }
 0x1ab   :  { %331 = vrot.lane.b32.xlu0 %v7606_v11, %s7401_s18  ;;  %462 = vrot.lane.b32.xlu1 %v7608_v12, %s7400_s17 }
 0x1af   :  { %315 = vrot.lane.b32.xlu0 %v7598_v7, %s7401_s18  ;;  %333 = vrot.lane.b32.xlu1 %v7614_v14, %s7401_s18 }
 0x1b3   :  { %1252 = vrot.lane.b32.xlu0 %v7606_v11, %s7402_s19  ;;  %317 = vrot.lane.b32.xlu1 %v7608_v12, %s7401_s18 }
 0x1b7   :  { %1236 = vrot.lane.b32.xlu0 %v7598_v7, %s7402_s19  ;;  %1254 = vrot.lane.b32.xlu1 %v7614_v14, %s7402_s19 }
 0x1bb   :  { %1108 = vrot.lane.b32.xlu0 %v7606_v11, %s7403_s20  ;;  %1238 = vrot.lane.b32.xlu1 %v7608_v12, %s7402_s19 }
 0x1bf   :  { %1092 = vrot.lane.b32.xlu0 %v7598_v7, %s7403_s20  ;;  %1110 = vrot.lane.b32.xlu1 %v7614_v14, %s7403_s20 }
 0x1c3   :  { %1392 = vrot.lane.b32.xlu0 %v7669_v26, %s7397_s14  ;;  %1094 = vrot.lane.b32.xlu1 %v7608_v12, %s7403_s20 }
 0x1c5   :  { %v7679_v30 = vpop.permute.xlu0 %1388 }
 0x1c6   :  { %12031 = vst [vmem:[#allocation16_spill] sm:$0xff] %v7679_v30 }
 0x1c7   :  { %1376 = vrot.lane.b32.xlu0 %v7677_v29, %s7397_s14  ;;  %1394 = vrot.lane.b32.xlu1 %v7682_v32, %s7397_s14 }
 0x1c9   :  { %v7688_v33 = vpop.permute.xlu0 %1372  ;;  %v7692_v35 = vpop.permute.xlu1 %1390 }
 0x1ca   :  { %12033 = vst [vmem:[#allocation18_spill] sm:$0xff] %v7688_v33  ;;  %12035 = vst [vmem:[#allocation20_spill] sm:$0xff] %v7692_v35 }
 0x1cb   :  { %760 = vrot.lane.b32.xlu0 %v7669_v26, %s7398_s15  ;;  %1378 = vrot.lane.b32.xlu1 %v7690_v34, %s7397_s14 }
 0x1cd   :  { %v7698_v36 = vpop.permute.xlu0 %756  ;;  %v7700_v40 = vpop.permute.xlu1 %1374 }
 0x1ce   :  { %12036 = vst [vmem:[#allocation21_spill] sm:$0xff] %v7700_v40 }
 0x1cf   :  { %744 = vrot.lane.b32.xlu0 %v7677_v29, %s7398_s15  ;;  %762 = vrot.lane.b32.xlu1 %v7682_v32, %s7398_s15 }
 0x1d1   :  { %v7706_v42 = vpop.permute.xlu0 %740  ;;  %v7708_v43 = vpop.permute.xlu1 %758 }
 0x1d3   :  { %616 = vrot.lane.b32.xlu0 %v7669_v26, %s7399_s16  ;;  %746 = vrot.lane.b32.xlu1 %v7690_v34, %s7398_s15 }
 0x1d5   :  { %v7714_v44 = vpop.permute.xlu0 %612  ;;  %v7716_v45 = vpop.permute.xlu1 %742 }
 0x1d7   :  { %600 = vrot.lane.b32.xlu0 %v7677_v29, %s7399_s16  ;;  %618 = vrot.lane.b32.xlu1 %v7682_v32, %s7399_s16 }
 0x1d9   :  { %v7722_v46 = vpop.permute.xlu0 %596  ;;  %v7724_v47 = vpop.permute.xlu1 %614 }
 0x1db   :  { %472 = vrot.lane.b32.xlu0 %v7669_v26, %s7400_s17  ;;  %602 = vrot.lane.b32.xlu1 %v7690_v34, %s7399_s16 }
 0x1dd   :  { %v7730_v48 = vpop.permute.xlu0 %468  ;;  %v7732_v49 = vpop.permute.xlu1 %598 }
 0x1df   :  { %456 = vrot.lane.b32.xlu0 %v7677_v29, %s7400_s17  ;;  %474 = vrot.lane.b32.xlu1 %v7682_v32, %s7400_s17 }
 0x1e1   :  { %v7738_v50 = vpop.permute.xlu0 %452  ;;  %v7740_v51 = vpop.permute.xlu1 %470 }
 0x1e3   :  { %327 = vrot.lane.b32.xlu0 %v7669_v26, %s7401_s18  ;;  %458 = vrot.lane.b32.xlu1 %v7690_v34, %s7400_s17 }
 0x1e5   :  { %v7746_v52 = vpop.permute.xlu0 %323  ;;  %v7748_v53 = vpop.permute.xlu1 %454 }
 0x1e6   :  { %12037 = vst [vmem:[#allocation22_spill] sm:$0xff] %v7746_v52 }
 0x1e7   :  { %311 = vrot.lane.b32.xlu0 %v7677_v29, %s7401_s18  ;;  %329 = vrot.lane.b32.xlu1 %v7682_v32, %s7401_s18 }
 0x1e9   :  { %v7754_v55 = vpop.permute.xlu0 %307  ;;  %v7756_v56 = vpop.permute.xlu1 %325 }
 0x1ea   :  { %12038 = vst [vmem:[#allocation23_spill] sm:$0xff] %v7754_v55  ;;  %12039 = vst [vmem:[#allocation24_spill] sm:$0xff] %v7756_v56 }
 0x1eb   :  { %1232 = vrot.lane.b32.xlu0 %v7677_v29, %s7402_s19  ;;  %313 = vrot.lane.b32.xlu1 %v7690_v34, %s7401_s18 }
 0x1ed   :  { %v7762_v57 = vpop.permute.xlu0 %1228  ;;  %v7764_v58 = vpop.permute.xlu1 %309 }
 0x1ee   :  { %12040 = vst [vmem:[#allocation25_spill] sm:$0xff] %v7762_v57  ;;  %12041 = vst [vmem:[#allocation26_spill] sm:$0xff] %v7764_v58  ;;  %v339_v57 = vlaneseq }
 0x1ef   :  { %1248 = vrot.lane.b32.xlu0 %v7669_v26, %s7402_s19  ;;  %1234 = vrot.lane.b32.xlu1 %v7690_v34, %s7402_s19 }
 0x1f1   :  { %v7770_v59 = vpop.permute.xlu0 %1244  ;;  %v7772_v0 = vpop.permute.xlu1 %1230 }
 0x1f2   :  { %12042 = vst [vmem:[#allocation27_spill] sm:$0xff] %v7770_v59  ;;  %12043 = vst [vmem:[#allocation28_spill] sm:$0xff] %v7772_v0 }
 0x1f3   :  { %1088 = vrot.lane.b32.xlu0 %v7677_v29, %s7403_s20  ;;  %1250 = vrot.lane.b32.xlu1 %v7682_v32, %s7402_s19 }
 0x1f5   :  { %v7778_v2 = vpop.permute.xlu0 %1084  ;;  %v7780_v3 = vpop.permute.xlu1 %1246 }
 0x1f6   :  { %12044 = vst [vmem:[#allocation29_spill] sm:$0xff] %v7778_v2  ;;  %12045 = vst [vmem:[#allocation30_spill] sm:$0xff] %v7780_v3 }
 0x1f7   :  { %1104 = vrot.lane.b32.xlu0 %v7669_v26, %s7403_s20  ;;  %1090 = vrot.lane.b32.xlu1 %v7690_v34, %s7403_s20 }
 0x1f9   :  { %v7788_v5 = vpop.permute.xlu0 %1100  ;;  %v7790_v6 = vpop.permute.xlu1 %1086 }
 0x1fa   :  { %12046 = vst [vmem:[#allocation31_spill] sm:$0xff] %v7788_v5  ;;  %12047 = vst [vmem:[#allocation32_spill] sm:$0xff] %v7790_v6 }
 0x1fb   :  { %944 = vrot.lane.b32.xlu0 %v7677_v29, %s7404_s0  ;;  %1106 = vrot.lane.b32.xlu1 %v7682_v32, %s7403_s20 }
 0x1fd   :  { %v7799_v13 = vpop.permute.xlu0 %940  ;;  %v7802_v16 = vpop.permute.xlu1 %1102 }
 0x1fe   :  { %12048 = vst [vmem:[#allocation33_spill] sm:$0xff] %v7799_v13  ;;  %12049 = vst [vmem:[#allocation34_spill] sm:$0xff] %v7802_v16 }
 0x1ff   :  { %960 = vrot.lane.b32.xlu0 %v7669_v26, %s7404_s0  ;;  %946 = vrot.lane.b32.xlu1 %v7690_v34, %s7404_s0 }
 0x201   :  { %v7811_v21 = vpop.permute.xlu0 %1380  ;;  %v7815_v22 = vpop.permute.xlu1 %942 }
 0x202   :  { %12051 = vst [vmem:[#allocation36_spill] sm:$0xff] %v7815_v22 }
 0x203   :  { %1384 = vrot.lane.b32.xlu0 %v7808_v19, %s7397_s14  ;;  %962 = vrot.lane.b32.xlu1 %v7682_v32, %s7404_s0 }
 0x205   :  { %v7823_v24 = vpop.permute.xlu0 %764  ;;  %v7828_v27 = vpop.permute.xlu1 %1382 }
 0x207   :  { %768 = vrot.lane.b32.xlu0 %v7821_v23, %s7398_s15  ;;  %1386 = vrot.lane.b32.xlu1 %v7825_v25, %s7397_s14 }
 0x209   :  { %v7834_v39 = vpop.permute.xlu0 %748  ;;  %v7838_v31 = vpop.permute.xlu1 %766 }
 0x20b   :  { %752 = vrot.lane.b32.xlu0 %v7808_v19, %s7398_s15  ;;  %770 = vrot.lane.b32.xlu1 %v7836_v28, %s7398_s15 }
 0x20d   :  { %v7844_v41 = vpop.permute.xlu0 %620  ;;  %v7846_v4 = vpop.permute.xlu1 %750 }
 0x20f   :  { %624 = vrot.lane.b32.xlu0 %v7821_v23, %s7399_s16  ;;  %754 = vrot.lane.b32.xlu1 %v7825_v25, %s7398_s15 }
 0x211   :  { %v7852_v8 = vpop.permute.xlu0 %604  ;;  %v7854_v9 = vpop.permute.xlu1 %622 }
 0x213   :  { %608 = vrot.lane.b32.xlu0 %v7808_v19, %s7399_s16  ;;  %626 = vrot.lane.b32.xlu1 %v7836_v28, %s7399_s16 }
 0x215   :  { %v7860_v10 = vpop.permute.xlu0 %476  ;;  %v7862_v15 = vpop.permute.xlu1 %606 }
 0x217   :  { %480 = vrot.lane.b32.xlu0 %v7821_v23, %s7400_s17  ;;  %610 = vrot.lane.b32.xlu1 %v7825_v25, %s7399_s16 }
 0x219   :  { %v7868_v18 = vpop.permute.xlu0 %460  ;;  %v7870_v20 = vpop.permute.xlu1 %478 }
 0x21b   :  { %464 = vrot.lane.b32.xlu0 %v7808_v19, %s7400_s17  ;;  %482 = vrot.lane.b32.xlu1 %v7836_v28, %s7400_s17 }
 0x21d   :  { %v7876_v37 = vpop.permute.xlu0 %331  ;;  %v7878_v17 = vpop.permute.xlu1 %462 }
 0x21e   :  { %12055 = vst [vmem:[#allocation40_spill] sm:$0xff] %v7876_v37 }
 0x21f   :  { %335 = vrot.lane.b32.xlu0 %v7821_v23, %s7401_s18  ;;  %466 = vrot.lane.b32.xlu1 %v7825_v25, %s7400_s17 }
 0x221   :  { %v7884_v38 = vpop.permute.xlu0 %315  ;;  %v7886_v63 = vpop.permute.xlu1 %333 }
 0x222   :  { %12056 = vst [vmem:[#allocation41_spill] sm:$0xff] %v7884_v38  ;;  %12057 = vst [vmem:[#allocation42_spill] sm:$0xff] %v7886_v63 }
 0x223   :  { %319 = vrot.lane.b32.xlu0 %v7808_v19, %s7401_s18  ;;  %337 = vrot.lane.b32.xlu1 %v7836_v28, %s7401_s18 }
 0x225   :  { %v7892_v1 = vpop.permute.xlu0 %1252  ;;  %v7894_v60 = vpop.permute.xlu1 %317 }
 0x226   :  { %12058 = vst [vmem:[#allocation43_spill] sm:$0xff] %v7892_v1  ;;  %12059 = vst [vmem:[#allocation44_spill] sm:$0xff] %v7894_v60  ;;  %v6565_v60 = vld [vmem:[%s11717_s5 + $0x38] sm:$0xff] }
 0x227   :  { %964 = vrot.lane.b32.xlu0 %v7606_v11, %s7404_s0  ;;  %321 = vrot.lane.b32.xlu1 %v7825_v25, %s7401_s18 }
 0x229   :  { %v7900_v61 = vpop.permute.xlu0 %1236  ;;  %v7902_v34 = vpop.permute.xlu1 %1254 }
 0x22a   :  { %12060 = vst [vmem:[#allocation45_spill] sm:$0xff] %v7900_v61  ;;  %12061 = vst [vmem:[#allocation46_spill] sm:$0xff] %v7902_v34 }
 0x22b   :  { %1256 = vrot.lane.b32.xlu0 %v7821_v23, %s7402_s19  ;;  %966 = vrot.lane.b32.xlu1 %v7614_v14, %s7404_s0 }
 0x22d   :  { %v7908_v29 = vpop.permute.xlu0 %1108  ;;  %v7910_v32 = vpop.permute.xlu1 %1238 }
 0x22e   :  { %12062 = vst [vmem:[#allocation47_spill] sm:$0xff] %v7908_v29  ;;  %12063 = vst [vmem:[#allocation48_spill] sm:$0xff] %v7910_v32 }
 0x22f   :  { %1240 = vrot.lane.b32.xlu0 %v7808_v19, %s7402_s19  ;;  %1258 = vrot.lane.b32.xlu1 %v7836_v28, %s7402_s19 }
 0x231   :  { %v7916_v26 = vpop.permute.xlu0 %1092  ;;  %v7918_v13 = vpop.permute.xlu1 %1110 }
 0x232   :  { %12064 = vst [vmem:[#allocation49_spill] sm:$0xff] %v7916_v26  ;;  %12065 = vst [vmem:[#allocation50_spill] sm:$0xff] %v7918_v13 }
 0x233   :  { %1112 = vrot.lane.b32.xlu0 %v7821_v23, %s7403_s20  ;;  %1242 = vrot.lane.b32.xlu1 %v7825_v25, %s7402_s19 }
 0x235   :  { %v7924_v22 = vpop.permute.xlu0 %1392  ;;  %v7926_v16 = vpop.permute.xlu1 %1094 }
 0x236   :  { %12066 = vst [vmem:[#allocation51_spill] sm:$0xff] %v7924_v22  ;;  %12067 = vst [vmem:[#allocation52_spill] sm:$0xff] %v7926_v16 }
 0x237   :  { %1096 = vrot.lane.b32.xlu0 %v7808_v19, %s7403_s20  ;;  %1114 = vrot.lane.b32.xlu1 %v7836_v28, %s7403_s20 }
 0x239   :  { %v7932_v6 = vpop.permute.xlu0 %1376  ;;  %v7934_v26 = vpop.permute.xlu1 %1394 }
 0x23a   :  { %12068 = vst [vmem:[#allocation53_spill] sm:$0xff] %v7932_v6  ;;  %12069 = vst [vmem:[#allocation54_spill] sm:$0xff] %v7934_v26 }
 0x23b   :  { %968 = vrot.lane.b32.xlu0 %v7821_v23, %s7404_s0  ;;  %1098 = vrot.lane.b32.xlu1 %v7825_v25, %s7403_s20 }
 0x23d   :  { %v7940_v13 = vpop.permute.xlu0 %760  ;;  %v7942_v2 = vpop.permute.xlu1 %1378 }
 0x23e   :  { %12070 = vst [vmem:[#allocation55_spill] sm:$0xff] %v7942_v2 }
 0x23f   :  { %956 = vrot.lane.b32.xlu0 %v7526_v54, %s7404_s0  ;;  %970 = vrot.lane.b32.xlu1 %v7836_v28, %s7404_s0  ;;  %v1516_v54 = vld [vmem:[%s11719_s7] sm:$0xff] }
 0x240   :  { %v7965_v0 = vcombine.high %v1516_v54, %v1516_v54  ;;  %v6548_v54 = vld [vmem:[%s11714_s2 + $0x18] sm:$0xff] }
 0x241   :  { %v7948_v16 = vpop.permute.xlu0 %744  ;;  %v7950_v5 = vpop.permute.xlu1 %762 }
 0x242   :  { %12071 = vst [vmem:[#allocation56_spill] sm:$0xff] %v7948_v16  ;;  %12072 = vst [vmem:[#allocation57_spill] sm:$0xff] %v7950_v5  ;;  %1996 = vmatprep.mubr.bf16.mxu0 %v7965_v0 }
 0x243   :  { %952 = vrot.lane.b32.xlu0 %v7808_v19, %s7404_s0  ;;  %958 = vrot.lane.b32.xlu1 %v7536_v62, %s7404_s0  ;;  %12075 = vst [vmem:[#allocation60_spill] sm:$0xff] %v7965_v0 }
 0x245   :  { %v7956_v29 = vpop.permute.xlu0 %616  ;;  %v7958_v32 = vpop.permute.xlu1 %746 }
 0x246   :  { %12073 = vst [vmem:[#allocation58_spill] sm:$0xff] %v7956_v29  ;;  %12074 = vst [vmem:[#allocation59_spill] sm:$0xff] %v7958_v32 }
 0x247   :  { %948 = vrot.lane.b32.xlu0 %v7598_v7, %s7404_s0  ;;  %954 = vrot.lane.b32.xlu1 %v7825_v25, %s7404_s0 }
 0x249   :  { %v7969_v19 = vpop.permute.xlu0 %600  ;;  %v7972_v62 = vpop.permute.xlu1 %618 }
 0x24a   :  { %12076 = vst [vmem:[#allocation61_spill] sm:$0xff] %v7969_v19  ;;  %12077 = vst [vmem:[#allocation62_spill] sm:$0xff] %v7972_v62  ;;  %v6453_v62 = vld [vmem:[%s11713_s1 + $0x7] ss:$8 sm:$0xf] }
 0x24b   :  { %1400 = vrot.lane.b32.xlu0 %v7821_v23, %s7397_s14  ;;  %950 = vrot.lane.b32.xlu1 %v7608_v12, %s7404_s0  ;;  %v6550_v12 = vld [vmem:[%s11715_s3 + $0x18] sm:$0xff] }
 0x24d   :  { %v7978_v3 = vpop.permute.xlu0 %472  ;;  %v7980_v7 = vpop.permute.xlu1 %602 }
 0x24e   :  { %12078 = vst [vmem:[#allocation63_spill] sm:$0xff] %v7978_v3  ;;  %12079 = vst [vmem:[#allocation64_spill] sm:$0xff] %v7980_v7  ;;  %v6400_v3 = vld [vmem:[%s11713_s1 + $0x1] ss:$8 sm:$0xf] }
 0x24f   :  { %1396 = vrot.lane.b32.xlu0 %v7606_v11, %s7397_s14  ;;  %1402 = vrot.lane.b32.xlu1 %v7836_v28, %s7397_s14  ;;  %v6549_v28 = vld [vmem:[%s11714_s2 + $0x20] sm:$0xff] }
 0x251   :  { %v7989_v25 = vpop.permute.xlu0 %456  ;;  %v7991_v23 = vpop.permute.xlu1 %474 }
 0x252   :  { %12080 = vst [vmem:[#allocation65_spill] sm:$0xff] %v7989_v25  ;;  %12081 = vst [vmem:[#allocation66_spill] sm:$0xff] %v7991_v23 }
 0x253   :  { %2148 = vperm.xlu0 %7356, %v6548_v54   ;;  %1398 = vrot.lane.b32.xlu1 %v7614_v14, %s7397_s14  ;;  %v6564_v54 = vld [vmem:[%s11717_s5 + $0x30] sm:$0xff]  ;;  %v6551_v14 = vld [vmem:[%s11715_s3 + $0x20] sm:$0xff] }
 0x255   :  { %v7998_v11 = vpop.permute.xlu0 %327  ;;  %v8003_v34 = vpop.permute.xlu1 %458 }
 0x256   :  { %12082 = vst [vmem:[#allocation67_spill] sm:$0xff] %v7998_v11  ;;  %12083 = vst [vmem:[#allocation68_spill] sm:$0xff] %v8003_v34 }
 0x257   :  { %2166 = vperm.xlu0 %7356, %v6550_v12   ;;  %2153 = vperm.xlu1 %7357, %v6549_v28   ;;  %v6568_v12 = vld [vmem:[%s11718_s6 + $0x30] sm:$0xff] }
 0x259   :  { %v8008_v61 = vpop.permute.xlu0 %311  ;;  %v8013_v11 = vpop.permute.xlu1 %329 }
 0x25a   :  { %12084 = vst [vmem:[#allocation69_spill] sm:$0xff] %v8008_v61  ;;  %12085 = vst [vmem:[#allocation70_spill] sm:$0xff] %v8013_v11  ;;  %v361_v61 = vshrl.u32 %v339_v57, 7  ;;  %v6569_v11 = vld [vmem:[%s11718_s6 + $0x38] sm:$0xff] }
 0x25b   :  { %2339 = vperm.xlu0 %7356, %v6564_v54   ;;  %2171 = vperm.xlu1 %7357, %v6551_v14   ;;  %v6562_v54 = vld [vmem:[%s11717_s5 + $0x20] sm:$0xff] }
 0x25c   :  { %v8035_v1 = vsub.s32 0, %v361_v61  ;;  %v8037_v34 = vsub.s32 1, %v361_v61 }
 0x25d   :  { %v8018_v28 = vpop.permute.xlu0 %1232  ;;  %v8023_v59 = vpop.permute.xlu1 %313 }
 0x25e   :  { %12086 = vst [vmem:[#allocation71_spill] sm:$0xff] %v8018_v28  ;;  %12087 = vst [vmem:[#allocation72_spill] sm:$0xff] %v8023_v59  ;;  %v8033_v28 = vand.u32 127, %v339_v57  ;;  %v8051_v57 = vsub.s32 2, %v361_v61  ;;  %v6566_v59 = vld [vmem:[%s11718_s6 + $0x20] sm:$0xff]  ;;  %v8122_v55 = vrot.slane %v6400_v3, %v8037_v34 }
 0x25f   :  { %2380 = vperm.xlu0 %7356, %v6568_v12   ;;  %2344 = vperm.xlu1 %7357, %v6565_v60   ;;  %12089 = vst [vmem:[#allocation74_spill] sm:$0xff] %v8035_v1  ;;  %12090 = vst [vmem:[#allocation75_spill] sm:$0xff] %v8037_v34  ;;  %v8044_v60 = vld [vmem:[%s11713_s1 + $0x20] ss:$8 sm:$0xf]  ;;  %v8046_v12 = vsub.s32 3, %v361_v61 }
 0x260   :  { %12092 = vst [vmem:[#allocation77_spill] sm:$0xff] %v8044_v60  ;;  %12094 = vst [vmem:[#allocation79_spill] sm:$0xff] %v8051_v57  ;;  %vm1404_vm2 = vcmp.lt.s32.totalorder %v8033_v28, 111  ;;  %v8067_v61 = vrot.slane %v8044_v60, %v8035_v1  ;;  %vm772_vm3 = vcmp.lt.s32.totalorder %v8033_v28, 1  ;;  %vm628_vm4 = vcmp.lt.s32.totalorder %v8033_v28, 15 }
 0x261   :  { %v8028_v14 = vpop.permute.xlu0 %1248  ;;  %v8039_v25 = vpop.permute.xlu1 %1234  ;;  %12093 = vst [vmem:[#allocation78_spill] sm:$0xff] %v8046_v12  ;;  %v1410_v16 = vsel %vm1404_vm2, %v7828_v27, %v7692_v35  ;;  %vm484_vm5 = vcmp.lt.s32.totalorder %v8033_v28, 16  ;;  %v8158_v35 = vrot.slane %v6453_v62, %v8051_v57  ;;  %v8161_v5 = vrot.slane %v6453_v62, %v8046_v12 }
 0x262   :  { %12088 = vst [vmem:[#allocation73_spill] sm:$0xff] %v8028_v14  ;;  %12091 = vst [vmem:[#allocation76_spill] sm:$0xff] %v8039_v25  ;;  %v6418_v14 = vld [vmem:[%s11713_s1 + $0x3] ss:$8 sm:$0xf]  ;;  %vm341_vm6 = vcmp.lt.s32.totalorder %v8033_v28, 17 }
 0x263   :  { %2329 = vperm.xlu0 %7356, %v6562_v54   ;;  %2385 = vperm.xlu1 %7357, %v6569_v11   ;;  %v6409_v25 = vld [vmem:[%s11713_s1 + $0x2] ss:$8 sm:$0xf]  ;;  %v8071_v11 = vrot.slane %v8044_v60, %v8037_v34  ;;  %v8083_v0 = vrot.slane %v6418_v14, %v8046_v12  ;;  %v8086_v63 = vrot.slane %v6418_v14, %v8037_v34  ;;  %v358_v60 = vld [vmem:[%s11713_s1] ss:$8 sm:$0xf] }
 0x264   :  { %v6563_v54 = vld [vmem:[%s11717_s5 + $0x28] sm:$0xff]  ;;  %v8092_v58 = vrot.slane %v6418_v14, %v8051_v57  ;;  %v8099_v38 = vrot.slane %v6409_v25, %v8046_v12  ;;  %v8102_v7 = vrot.slane %v6409_v25, %v8037_v34  ;;  %v8105_v19 = vrot.slane %v6409_v25, %v8051_v57  ;;  %12101 = vst [vmem:[#allocation86_spill] sm:$0xff] %v8158_v35 }
 0x265   :  { %v8059_v23 = vpop.permute.xlu0 %1088  ;;  %v8076_v56 = vpop.permute.xlu1 %1250  ;;  %v8128_v52 = vrot.slane %v358_v60, %v8035_v1  ;;  %v8131_v37 = vrot.slane %v358_v60, %v8046_v12  ;;  %12102 = vst [vmem:[#allocation87_spill] sm:$0xff] %v8161_v5  ;;  %vm1260_vm8 = vcmp.lt.s32.totalorder %v8033_v28, 112  ;;  %vm1116_vm9 = vcmp.lt.s32.totalorder %v8033_v28, 113 }
 0x266   :  { %12095 = vst [vmem:[#allocation80_spill] sm:$0xff] %v8059_v23  ;;  %12096 = vst [vmem:[#allocation81_spill] sm:$0xff] %v8076_v56  ;;  %v8080_v23 = vrot.slane %v6418_v14, %v8035_v1  ;;  %v8096_v56 = vrot.slane %v6409_v25, %v8035_v1  ;;  %v8111_v14 = vrot.slane %v6400_v3, %v8046_v12  ;;  %vm972_vm10 = vcmp.lt.s32.totalorder %v8033_v28, 127 }
 0x267   :  { %2370 = vperm.xlu0 %7356, %v6566_v59   ;;  %2334 = vperm.xlu1 %7357, %v6563_v54   ;;  %v8108_v59 = vrot.slane %v6400_v3, %v8035_v1  ;;  %v6567_v54 = vld [vmem:[%s11718_s6 + $0x28] sm:$0xff]  ;;  %v8125_v25 = vrot.slane %v6400_v3, %v8051_v57  ;;  %12098 = vst [vmem:[#allocation83_spill] sm:$0xff] %v8128_v52  ;;  %12099 = vst [vmem:[#allocation84_spill] sm:$0xff] %v8131_v37 }
 0x268   :  { %v1414_v3 = vsel %vm1404_vm2, %v7700_v40, %v7828_v27  ;;  %v8147_v52 = vrot.slane %v358_v60, %v8037_v34  ;;  %v8150_v37 = vrot.slane %v358_v60, %v8051_v57  ;;  %v8164_v27 = vrot.slane %v6453_v62, %v8035_v1 }
 0x269   :  { %v8116_v29 = vpop.permute.xlu0 %1104  ;;  %v8136_v32 = vpop.permute.xlu1 %1090  ;;  %v1409_v60 = vsel %vm1404_vm2, %v7811_v21, %v7679_v30  ;;  %v785_v40 = vsel %vm772_vm3, %v7823_v24, %v7706_v42 }
 0x26a   :  { %12097 = vst [vmem:[#allocation82_spill] sm:$0xff] %v8116_v29  ;;  %v6444_v29 = vld [vmem:[%s11713_s1 + $0x6] ss:$8 sm:$0xf]  ;;  %12100 = vst [vmem:[#allocation85_spill] sm:$0xff] %v8136_v32  ;;  %v1413_v32 = vsel %vm1404_vm2, %v7688_v33, %v7811_v21  ;;  %v8175_v33 = vrot.slane %v6453_v62, %v8037_v34  ;;  %v786_v21 = vsel %vm772_vm3, %v7838_v31, %v7716_v45 }
 0x26b   :  { %12103 = vst [vmem:[#allocation88_spill] sm:$0xff] %v8164_v27  ;;  %2375 = vperm.xlu1 %7357, %v6567_v54   ;;  %v8178_v35 = vrot.slane %v6444_v29, %v8051_v57  ;;  %v8183_v54 = vmul.f32 %v8067_v61, %v1414_v3  ;;  %v8186_v27 = vmul.f32 %v8071_v11, %v1410_v16 }
 0x26c   :  { %12104 = vst [vmem:[#allocation89_spill] sm:$0xff] %v8175_v33  ;;  %v8193_v30 = vrot.slane %v6444_v29, %v8046_v12  ;;  %v8198_v57 = vmul.f32 %v8067_v61, %v1413_v32  ;;  %v773_v3 = vsel %vm772_vm3, %v7698_v36, %v7823_v24  ;;  %v8205_v16 = vrot.slane %v6444_v29, %v8035_v1 }
 0x26d   :  { %12105 = vst [vmem:[#allocation90_spill] sm:$0xff] %v8178_v35  ;;  %v8180_v5 = vpop.permute.xlu0 %944  ;;  %v8195_v62 = vpop.permute.xlu1 %1106  ;;  %v8211_v35 = vmul.f32 %v8071_v11, %v1409_v60  ;;  %v774_v32 = vsel %vm772_vm3, %v7708_v43, %v7838_v31  ;;  %v778_v24 = vsel %vm772_vm3, %v7846_v4, %v7708_v43  ;;  %v8229_v60 = vmul.f32 %v8080_v23, %v786_v21 }
 0x26e   :  { %12106 = vst [vmem:[#allocation91_spill] sm:$0xff] %v8180_v5  ;;  %12107 = vst [vmem:[#allocation92_spill] sm:$0xff] %v8193_v30  ;;  %v8208_v5 = vrot.slane %v6444_v29, %v8037_v34  ;;  %v8214_v30 = vmul.f32 %v8080_v23, %v785_v40  ;;  %v781_v29 = vsel %vm772_vm3, %v7706_v42, %v7834_v39 }
 0x26f   :  { %12108 = vst [vmem:[#allocation93_spill] sm:$0xff] %v8195_v62  ;;  %12109 = vst [vmem:[#allocation94_spill] sm:$0xff] %v8205_v16  ;;  %v782_v40 = vsel %vm772_vm3, %v7716_v45, %v7846_v4  ;;  %v642_v31 = vsel %vm628_vm4, %v7854_v9, %v7732_v49  ;;  %v8242_v43 = vmul.f32 %v8083_v0, %v773_v3  ;;  %v12119_v62 = vld [vmem:[#allocation59_spill] sm:$0xff] }
 0x270   :  { %12110 = vst [vmem:[#allocation95_spill] sm:$0xff] %v8208_v5  ;;  %v777_v21 = vsel %vm772_vm3, %v7834_v39, %v7698_v36  ;;  %v8255_v4 = vmul.f32 %v8083_v0, %v774_v32  ;;  %v641_v3 = vsel %vm628_vm4, %v7844_v41, %v7722_v46  ;;  %v8262_v42 = vmul.f32 %v8092_v58, %v778_v24  ;;  %v12121_v5 = vld [vmem:[#allocation22_spill] sm:$0xff] }
 0x271   :  { %v8239_v34 = vpop.permute.xlu0 %960  ;;  %v8250_v1 = vpop.permute.xlu1 %946  ;;  %v630_v36 = vsel %vm628_vm4, %v7724_v47, %v7854_v9  ;;  %v8269_v39 = vmul.f32 %v8086_v63, %v781_v29  ;;  %v629_v32 = vsel %vm628_vm4, %v7714_v44, %v7844_v41  ;;  %v8276_v45 = vmul.f32 %v8086_v63, %v782_v40 }
 0x272   :  { %12111 = vst [vmem:[#allocation96_spill] sm:$0xff] %v8239_v34  ;;  %12112 = vst [vmem:[#allocation97_spill] sm:$0xff] %v8250_v1  ;;  %v8279_v1 = vmul.f32 %v8096_v56, %v642_v31  ;;  %v8282_v24 = vmul.f32 %v8092_v58, %v777_v21  ;;  %v633_v29 = vsel %vm628_vm4, %v7852_v8, %v7714_v44 }
 0x273   :  { %v637_v41 = vsel %vm628_vm4, %v7722_v46, %v7852_v8  ;;  %v8295_v31 = vmul.f32 %v8096_v56, %v641_v3  ;;  %v8298_v21 = vmul.f32 %v8099_v38, %v630_v36  ;;  %v634_v9 = vsel %vm628_vm4, %v7862_v15, %v7724_v47 }
 0x274   :  { %v638_v44 = vsel %vm628_vm4, %v7732_v49, %v7862_v15  ;;  %v8312_v8 = vmul.f32 %v8099_v38, %v629_v32  ;;  %v497_v47 = vsel %vm484_vm5, %v7860_v10, %v7738_v50  ;;  %v8323_v49 = vmul.f32 %v8102_v7, %v637_v41 }
 0x275   :  { %v1385_v40 = vpop.permute.xlu0 %1384  ;;  %12113 = vst [vmem:[#allocation98_spill] sm:$0xff] %v8295_v31  ;;  %v8309_v46 = vpop.permute.xlu1 %962  ;;  %v8326_v15 = vmul.f32 %v8105_v19, %v633_v29  ;;  %v8336_v34 = vmul.f32 %v8105_v19, %v634_v9  ;;  %v485_v32 = vsel %vm484_vm5, %v7730_v48, %v7860_v10  ;;  %v489_v9 = vsel %vm484_vm5, %v7868_v18, %v7730_v48 }
 0x276   :  { %12114 = vst [vmem:[#allocation99_spill] sm:$0xff] %v8309_v46  ;;  %v8333_v46 = vmul.f32 %v8102_v7, %v638_v44  ;;  %v1411_v41 = vsel %vm1404_vm2, %v1385_v40, %v7924_v22  ;;  %v1415_v29 = vsel %vm1404_vm2, %v7932_v6, %v1385_v40  ;;  %v8349_v44 = vmul.f32 %v8108_v59, %v497_v47 }
 0x277   :  { %12115 = vst [vmem:[#allocation100_spill] sm:$0xff] %v8326_v15  ;;  %12116 = vst [vmem:[#allocation101_spill] sm:$0xff] %v8336_v34  ;;  %v493_v40 = vsel %vm484_vm5, %v7738_v50, %v7868_v18  ;;  %v498_v10 = vsel %vm484_vm5, %v7870_v20, %v7748_v53  ;;  %v1452_v22 = vmul.f32 %v8067_v61, %v1415_v29  ;;  %v12122_v15 = vld [vmem:[#allocation23_spill] sm:$0xff] }
 0x278   :  { %v1453_v6 = vmul.f32 %v8071_v11, %v1411_v41  ;;  %v8376_v18 = vmul.f32 %v8111_v14, %v485_v32 }
 0x279   :  { %v769_v36 = vpop.permute.xlu0 %768  ;;  %v1387_v3 = vpop.permute.xlu1 %1386 }
 0x27a   :  { %v1412_v47 = vsel %vm1404_vm2, %v1387_v3, %v7934_v26  ;;  %v1416_v48 = vsel %vm1404_vm2, %v7942_v2, %v1387_v3  ;;  %v486_v26 = vsel %vm484_vm5, %v7740_v51, %v7870_v20  ;;  %v8398_v20 = vmul.f32 %v8108_v59, %v498_v10  ;;  %v12120_v2 = vld [vmem:[#allocation40_spill] sm:$0xff] }
 0x27b   :  { %v1456_v16 = vmul.f32 %v8067_v61, %v1416_v48  ;;  %v1457_v50 = vmul.f32 %v8071_v11, %v1412_v47  ;;  %v8387_v61 = vmul.f32 %v8122_v55, %v493_v40  ;;  %v8390_v11 = vmul.f32 %v8125_v25, %v489_v9  ;;  %v8395_v48 = vld [vmem:[%s11713_s1 + $0x5] ss:$8 sm:$0xf] }
 0x27c   :  { %v490_v40 = vsel %vm484_vm5, %v7878_v17, %v7740_v51  ;;  %v775_v9 = vsel %vm772_vm3, %v7940_v13, %v769_v36  ;;  %v342_v33 = vsel %vm341_vm6, %v12121_v5, %v12120_v2 }
 0x27d   :  { %v753_v3 = vpop.permute.xlu0 %752  ;;  %v7196_v32 = vpack.c.bf16 %v1456_v16, %v1452_v22  ;;  %v771_v29 = vpop.permute.xlu1 %770  ;;  %v7197_v47 = vpack.c.bf16 %v1457_v50, %v1453_v6  ;;  %v12117_v22 = vld [vmem:[#allocation57_spill] sm:$0xff]  ;;  %v8411_v16 = vmul.f32 %v8111_v14, %v486_v26  ;;  %v12118_v50 = vld [vmem:[#allocation56_spill] sm:$0xff]  ;;  %v354_v26 = vsel %vm341_vm6, %v12120_v2, %v12122_v15 }
 0x27e   :  { %v776_v6 = vsel %vm772_vm3, %v12117_v22, %v771_v29  ;;  %v783_v10 = vsel %vm772_vm3, %v12118_v50, %v753_v3  ;;  %v788_v41 = vsel %vm772_vm3, %v771_v29, %v12119_v62  ;;  %v779_v34 = vsel %vm772_vm3, %v753_v3, %v7940_v13 }
 0x27f   :  { %v827_v51 = vmul.f32 %v8083_v0, %v776_v6  ;;  %2017 = vmatprep.subr.bf16.mxu1 %v7197_v47  ;;  %v8433_v29 = vrot.slane %v8395_v48, %v8046_v12  ;;  %v494_v47 = vsel %vm484_vm5, %v7748_v53, %v7878_v17  ;;  %v8440_v6 = vmul.f32 %v8125_v25, %v490_v40  ;;  %v8463_v40 = vld [vmem:[%s11719_s7 + $0x8] ss:$0 sps:$4 sm:$0xff]  }
 0x280   :  { %2018 = vmatpush1.bf16.msra.mxu1 %v7196_v32  ;;  %v787_v2 = vsel %vm772_vm3, %v769_v36, %v12118_v50  ;;  %v823_v13 = vmul.f32 %v8083_v0, %v775_v9  ;;  %v12124_v3 = vpack.c.bf16 %v8186_v27, %v8211_v35  ;;  %v821_v12 = vmul.f32 %v8086_v63, %v783_v10  ;;  %v12125_v9 = vld [vmem:[#allocation83_spill] sm:$0xff]  ;;  %v12127_v50 = vld [vmem:[#allocation84_spill] sm:$0xff] }
 0x281   :  { %v625_v31 = vpop.permute.xlu0 %624  ;;  %12123 = vst [vmem:[#allocation57_spill] sm:$0xff] %v8433_v29  ;;  %v755_v32 = vpop.permute.xlu1 %754  ;;  %v824_v29 = vmul.f32 %v8080_v23, %v788_v41  ;;  %v822_v36 = vmul.f32 %v8092_v58, %v779_v34  ;;  %v7136_v41 = vpack.c.bf16 %v8398_v20, %v8349_v44  ;;  %v12126_v34 = vpack.c.bf16 %v8183_v54, %v8198_v57  ;;  %v12128_v57 = vld [vmem:[#allocation58_spill] sm:$0xff]  ;;  %v12166_v20 = vld [vmem:[#allocation48_spill] sm:$0xff] }
 0x282   :  { %2019 = vmatprep.subr.bf16.mxu1 %v12124_v3  ;;  %v780_v53 = vsel %vm772_vm3, %v755_v32, %v12117_v22  ;;  %v784_v17 = vsel %vm772_vm3, %v12119_v62, %v755_v32  ;;  %v7159_v27 = vpack.c.bf16 %v827_v51, %v823_v13  ;;  %v8468_v22 = vmul.f32 %v12125_v9, %v354_v26  ;;  %v12129_v32 = vld [vmem:[#allocation62_spill] sm:$0xff] }
 0x283   :  { %v825_v0 = vmul.f32 %v8086_v63, %v784_v17  ;;  %v826_v35 = vmul.f32 %v8092_v58, %v780_v53  ;;  %v820_v62 = vmul.f32 %v8080_v23, %v787_v2  ;;  %v7139_v58 = vpack.c.bf16 %v8411_v16, %v8376_v18  ;;  %v12130_v53 = vld [vmem:[#allocation61_spill] sm:$0xff]  ;;  %v12131_v17 = vld [vmem:[#allocation64_spill] sm:$0xff] }
 0x284   :  { %2020 = vmatpush1.bf16.msra.mxu1 %v12126_v34  ;;  %v8477_v10 = vmul.f32 %v12127_v50, %v342_v33  ;;  %v8480_v51 = vmul.f32 %v8122_v55, %v494_v47  ;;  %v7138_v23 = vpack.c.bf16 %v8440_v6, %v8390_v11  ;;  %v631_v54 = vsel %vm628_vm4, %v12128_v57, %v625_v31  ;;  %v12133_v34 = vld [vmem:[#allocation26_spill] sm:$0xff] }
 0x285   :  { %v609_v63 = vpop.permute.xlu0 %608  ;;  %v7158_v13 = vpack.c.bf16 %v826_v35, %v822_v36  ;;  %2046 = vmatprep.subr.bf16.mxu1 %v7159_v27  ;;  %v627_v26 = vpop.permute.xlu1 %626  ;;  %v7157_v3 = vpack.c.bf16 %v825_v0, %v821_v12  ;;  %v7156_v2 = vpack.c.bf16 %v824_v29, %v820_v62  ;;  %v12132_v29 = vld [vmem:[#allocation41_spill] sm:$0xff] }
 0x286   :  { %v632_v33 = vsel %vm628_vm4, %v12129_v32, %v627_v26  ;;  %v639_v47 = vsel %vm628_vm4, %v12130_v53, %v609_v63  ;;  %v644_v12 = vsel %vm628_vm4, %v627_v26, %v12131_v17  ;;  %v346_v0 = vsel %vm341_vm6, %v12132_v29, %v12121_v5  ;;  %v12134_v26 = vld [vmem:[#allocation42_spill] sm:$0xff] }
 0x287   :  { %v683_v36 = vmul.f32 %v8099_v38, %v632_v33  ;;  %1964 = vmatprep.subr.bf16.mxu0 %v7157_v3  ;;  %6546 = vmatmul.mubr.msk.bf16.vlgmr.msra.gmra.mxu1 %vm1960_vm7, %v8463_v40  ;;  %v350_v35 = vsel %vm341_vm6, %v12122_v15, %v12132_v29  ;;  %v635_v27 = vsel %vm628_vm4, %v609_v63, %v12128_v57 }
 0x288   :  { %1965 = vmatpush1.bf16.msra.mxu0 %v7156_v2  ;;  %2047 = vmatpush1.bf16.msra.mxu1 %v7158_v13  ;;  %v355_v3 = vsel %vm341_vm6, %v12134_v26, %v12133_v34  ;;  %v643_v5 = vsel %vm628_vm4, %v625_v31, %v12130_v53  ;;  %v679_v33 = vmul.f32 %v8099_v38, %v631_v54  ;;  %v12137_v31 = vld [vmem:[#allocation60_spill] sm:$0xff] }
 0x289   :  { %v481_v62 = vpop.permute.xlu0 %480  ;;  %v12135_v15 = vpack.c.bf16 %v8276_v45, %v8269_v39  ;;  %v12136_v63 = vpack.c.bf16 %v8255_v4, %v8242_v43  ;;  %v611_v13 = vpop.permute.xlu1 %610  ;;  %v677_v2 = vmul.f32 %v8102_v7, %v639_v47  ;;  %v680_v57 = vmul.f32 %v8096_v56, %v644_v12  ;;  %2078 = vmatprep.mubr.bf16.mxu1 %v12137_v31  ;;  %v12138_v54 = vld [vmem:[#allocation24_spill] sm:$0xff] }
 0x28a   :  { %v636_v29 = vsel %vm628_vm4, %v611_v13, %v12129_v32  ;;  %v640_v38 = vsel %vm628_vm4, %v12131_v17, %v611_v13  ;;  %v678_v45 = vmul.f32 %v8105_v19, %v635_v27  ;;  %v7151_v39 = vpack.c.bf16 %v683_v36, %v679_v33  ;;  %v12143_v33 = vld [vmem:[#allocation65_spill] sm:$0xff]  ;;  %v12145_v13 = vld [vmem:[#allocation43_spill] sm:$0xff]  ;;  %v12147_v31 = vld [vmem:[#allocation44_spill] sm:$0xff] }
 0x28b   :  { %1966 = vmatprep.subr.bf16.mxu0 %v12135_v15  ;;  %2048 = vmatprep.subr.bf16.mxu1 %v12136_v63  ;;  %v681_v43 = vmul.f32 %v8102_v7, %v640_v38  ;;  %v682_v4 = vmul.f32 %v8105_v19, %v636_v29  ;;  %v343_v53 = vsel %vm341_vm6, %v12138_v54, %v12134_v26 }
 0x28c   :  { %v8541_v32 = vmul.f32 %v12125_v9, %v355_v3  ;;  %v676_v47 = vmul.f32 %v8096_v56, %v643_v5  ;;  %v12139_v17 = vpack.c.bf16 %v8229_v60, %v8214_v30  ;;  %v12140_v7 = vpack.c.bf16 %v8262_v42, %v8282_v24  ;;  %v12141_v60 = vld [vmem:[#allocation63_spill] sm:$0xff]  ;;  %v12142_v24 = vld [vmem:[#allocation66_spill] sm:$0xff] }
 0x28d   :  { %v465_v19 = vpop.permute.xlu0 %464  ;;  %v8552_v12 = vmul.f32 %v8147_v52, %v350_v35  ;;  %v7150_v36 = vpack.c.bf16 %v682_v4, %v678_v45  ;;  %v483_v27 = vpop.permute.xlu1 %482  ;;  %v7149_v26 = vpack.c.bf16 %v681_v43, %v677_v2  ;;  %v7137_v3 = vpack.c.bf16 %v8480_v51, %v8387_v61  ;;  %v12144_v61 = vld [vmem:[#allocation68_spill] sm:$0xff]  ;;  %v12146_v2 = vld [vmem:[#allocation27_spill] sm:$0xff] }
 0x28e   :  { %1967 = vmatpush1.bf16.msra.mxu0 %v12139_v17  ;;  %2049 = vmatpush1.bf16.msra.mxu1 %v12140_v7  ;;  %v8557_v56 = vmul.f32 %v8150_v37, %v346_v0  ;;  %v7148_v30 = vpack.c.bf16 %v680_v57, %v676_v47  ;;  %v487_v42 = vsel %vm484_vm5, %v12141_v60, %v481_v62 }
 0x28f   :  { %2050 = vmatprep.subr.bf16.mxu1 %v7151_v39  ;;  %v488_v35 = vsel %vm484_vm5, %v12142_v24, %v483_v27  ;;  %v8566_v5 = vmul.f32 %v12127_v50, %v343_v53  ;;  %v495_v15 = vsel %vm484_vm5, %v12143_v33, %v465_v19  ;;  %v500_v51 = vsel %vm484_vm5, %v483_v27, %v12144_v61 }
 0x290   :  { %v539_v0 = vmul.f32 %v8111_v14, %v488_v35  ;;  %1968 = vmatprep.subr.bf16.mxu0 %v7149_v26  ;;  %v7128_v63 = vpack.c.bf16 %v8541_v32, %v8468_v22  ;;  %v1261_v57 = vsel %vm1260_vm8, %v12146_v2, %v12145_v13  ;;  %v491_v29 = vsel %vm484_vm5, %v465_v19, %v12141_v60  ;;  %v12151_v26 = vld [vmem:[#allocation98_spill] sm:$0xff]  ;;  %v12154_v60 = vld [vmem:[#allocation100_spill] sm:$0xff] }
 0x291   :  { %v336_v38 = vpop.permute.xlu0 %335  ;;  %v351_v45 = vsel %vm341_vm6, %v12133_v34, %v12147_v31  ;;  %v499_v43 = vsel %vm484_vm5, %v481_v62, %v12143_v33  ;;  %v535_v4 = vmul.f32 %v8111_v14, %v487_v42  ;;  %v12148_v39 = vpack.c.bf16 %v8333_v46, %v8323_v49  ;;  %v467_v47 = vpop.permute.xlu1 %466  ;;  %v12150_v62 = vld [vmem:[#allocation25_spill] sm:$0xff]  ;;  %v12181_v22 = vld [vmem:[#allocation50_spill] sm:$0xff] }
 0x292   :  { %1969 = vmatpush1.bf16.msra.mxu0 %v7148_v30  ;;  %2051 = vmatpush1.bf16.msra.mxu1 %v7150_v36  ;;  %v12149_v53 = vpack.c.bf16 %v8298_v21, %v8312_v8  ;;  %v533_v17 = vmul.f32 %v8122_v55, %v495_v15  ;;  %v536_v7 = vmul.f32 %v8108_v59, %v500_v51 }
 0x293   :  { %1970 = vmatprep.subr.bf16.mxu0 %v12148_v39  ;;  %v492_v34 = vsel %vm484_vm5, %v467_v47, %v12142_v24  ;;  %v496_v14 = vsel %vm484_vm5, %v12144_v61, %v467_v47  ;;  %v534_v46 = vmul.f32 %v8125_v25, %v491_v29  ;;  %v7143_v8 = vpack.c.bf16 %v539_v0, %v535_v4  ;;  %v12156_v24 = vld [vmem:[#allocation86_spill] sm:$0xff]  ;;  %v12160_v4 = vld [vmem:[#allocation72_spill] sm:$0xff] }
 0x294   :  { %2052 = vmatprep.subr.bf16.mxu1 %v12149_v53  ;;  %v537_v49 = vmul.f32 %v8122_v55, %v496_v14  ;;  %v538_v21 = vmul.f32 %v8125_v25, %v492_v34  ;;  %v1273_v19 = vsel %vm1260_vm8, %v12145_v13, %v12150_v62  ;;  %v347_v36 = vsel %vm341_vm6, %v12147_v31, %v12138_v54  ;;  %v12153_v55 = vld [vmem:[#allocation101_spill] sm:$0xff]  ;;  %v12158_v13 = vld [vmem:[#allocation70_spill] sm:$0xff]  ;;  %v12164_v14 = vld [vmem:[#allocation28_spill] sm:$0xff] }
 0x295   :  { %v532_v27 = vmul.f32 %v8108_v59, %v499_v43  ;;  %v12152_v30 = vpack.c.bf16 %v8279_v1, %v12151_v26  ;;  %v12155_v25 = vpack.c.bf16 %v12153_v55, %v12154_v60  ;;  %v320_v42 = vpop.permute.xlu0 %319  ;;  %v8625_v35 = vmul.f32 %v12156_v24, %v1261_v57  ;;  %v338_v15 = vpop.permute.xlu1 %337  ;;  %v12157_v1 = vld [vmem:[#allocation67_spill] sm:$0xff]  ;;  %v12159_v31 = vld [vmem:[#allocation69_spill] sm:$0xff]  ;;  %v12162_v53 = vld [vmem:[#allocation46_spill] sm:$0xff] }
 0x296   :  { %v7142_v33 = vpack.c.bf16 %v538_v21, %v534_v46  ;;  %v7141_v61 = vpack.c.bf16 %v537_v49, %v533_v17  ;;  %v7131_v54 = vpack.c.bf16 %v8566_v5, %v8477_v10  ;;  %v385_v59 = vmul.f32 %v8147_v52, %v351_v45  ;;  %v12161_v45 = vld [vmem:[#allocation45_spill] sm:$0xff]  ;;  %v12163_v47 = vld [vmem:[#allocation30_spill] sm:$0xff] }
 0x297   :  { %1971 = vmatpush1.bf16.msra.mxu0 %v12152_v30  ;;  %2053 = vmatpush1.bf16.msra.mxu1 %v12155_v25  ;;  %v7140_v51 = vpack.c.bf16 %v536_v7, %v532_v27  ;;  %v344_v0 = vsel %vm341_vm6, %v12157_v1, %v336_v38  ;;  %v345_v29 = vsel %vm341_vm6, %v12158_v13, %v338_v15 }
 0x298   :  { %2054 = vmatprep.subr.bf16.mxu1 %v7143_v8  ;;  %v8637_v57 = vmul.f32 %v8150_v37, %v347_v36  ;;  %v352_v43 = vsel %vm341_vm6, %v12159_v31, %v320_v42  ;;  %v357_v10 = vsel %vm341_vm6, %v338_v15, %v12160_v4  ;;  %v395_v5 = vmul.f32 %v12127_v50, %v345_v29  ;;  %v12169_v15 = vld [vmem:[#allocation47_spill] sm:$0xff] }
 0x299   :  { %1972 = vmatprep.subr.bf16.mxu0 %v7141_v61  ;;  %v1265_v39 = vsel %vm1260_vm8, %v12161_v45, %v12146_v2  ;;  %v1262_v17 = vsel %vm1260_vm8, %v12163_v47, %v12162_v53  ;;  %v348_v7 = vsel %vm341_vm6, %v320_v42, %v12157_v1  ;;  %v8657_v34 = vpop.permute.xlu0 %964  ;;  %v1274_v46 = vsel %vm1260_vm8, %v12162_v53, %v12164_v14  ;;  %v322_v21 = vpop.permute.xlu1 %321  ;;  %v12168_v42 = vld [vmem:[#allocation89_spill] sm:$0xff]  ;;  %v12170_v61 = vld [vmem:[#allocation31_spill] sm:$0xff] }
 0x29a   :  { %v356_v2 = vsel %vm341_vm6, %v336_v38, %v12159_v31  ;;  %v391_v49 = vmul.f32 %v12127_v50, %v344_v0  ;;  %v389_v8 = vmul.f32 %v8147_v52, %v352_v43  ;;  %v392_v36 = vmul.f32 %v12125_v9, %v357_v10 }
 0x29b   :  { %1973 = vmatpush1.bf16.msra.mxu0 %v7140_v51  ;;  %2055 = vmatpush1.bf16.msra.mxu1 %v7142_v33  ;;  %v349_v27 = vsel %vm341_vm6, %v322_v21, %v12158_v13  ;;  %v353_v38 = vsel %vm341_vm6, %v12160_v4, %v322_v21  ;;  %v390_v50 = vmul.f32 %v8150_v37, %v348_v7  ;;  %v12173_v13 = vld [vmem:[#allocation71_spill] sm:$0xff] }
 0x29c   :  { %1974 = vmatprep.subr.bf16.mxu0 %v7137_v3  ;;  %2056 = vmatprep.subr.bf16.mxu1 %v7139_v58  ;;  %v393_v3 = vmul.f32 %v8147_v52, %v353_v38  ;;  %v394_v18 = vmul.f32 %v8150_v37, %v349_v27  ;;  %v7135_v16 = vpack.c.bf16 %v395_v5, %v391_v49  ;;  %v12165_v37 = vld [vmem:[#allocation87_spill] sm:$0xff]  ;;  %v12174_v5 = vld [vmem:[#allocation90_spill] sm:$0xff] }
 0x29d   :  { %v1269_v58 = vsel %vm1260_vm8, %v12150_v62, %v12161_v45  ;;  %v8686_v26 = vmul.f32 %v12156_v24, %v1262_v17  ;;  %v388_v30 = vmul.f32 %v12125_v9, %v356_v2  ;;  %v1257_v52 = vpop.permute.xlu0 %1256  ;;  %v8697_v55 = vmul.f32 %v12165_v37, %v1273_v19  ;;  %v8702_v25 = vpop.permute.xlu1 %966  ;;  %v12176_v17 = vld [vmem:[#allocation81_spill] sm:$0xff] }
 0x29e   :  { %v8700_v62 = vmul.f32 %v12165_v37, %v1274_v46  ;;  %v7134_v60 = vpack.c.bf16 %v394_v18, %v390_v50  ;;  %v7133_v9 = vpack.c.bf16 %v393_v3, %v389_v8  ;;  %v7130_v44 = vpack.c.bf16 %v8637_v57, %v8557_v56  ;;  %v12171_v56 = vld [vmem:[#allocation29_spill] sm:$0xff]  ;;  %v12178_v18 = vld [vmem:[#allocation79_spill] sm:$0xff] }
 0x29f   :  { %1975 = vmatpush1.bf16.msra.mxu0 %v7136_v41  ;;  %2057 = vmatpush1.bf16.msra.mxu1 %v7138_v23  ;;  %v1270_v11 = vsel %vm1260_vm8, %v12164_v14, %v12166_v20  ;;  %v7132_v6 = vpack.c.bf16 %v392_v36, %v388_v30  ;;  %v7129_v41 = vpack.c.bf16 %v385_v59, %v8552_v12  ;;  %v12167_v23 = vld [vmem:[#allocation88_spill] sm:$0xff]  ;;  %v12172_v59 = vld [vmem:[#allocation73_spill] sm:$0xff] }
 0x2a0   :  { %2058 = vmatprep.subr.bf16.mxu1 %v7135_v16  ;;  %v8712_v19 = vmul.f32 %v12167_v23, %v1269_v58  ;;  %v8715_v33 = vmul.f32 %v12168_v42, %v1265_v39  ;;  %v1117_v51 = vsel %vm1116_vm9, %v12170_v61, %v12169_v15  ;;  %v1129_v1 = vsel %vm1116_vm9, %v12169_v15, %v12171_v56  ;;  %v12175_v39 = vld [vmem:[#allocation92_spill] sm:$0xff]  ;;  %v12179_v58 = vld [vmem:[#allocation49_spill] sm:$0xff] }
 0x2a1   :  { %1976 = vmatprep.subr.bf16.mxu0 %v7133_v9  ;;  %v7186_v12 = vpack.c.bf16 %v8686_v26, %v8625_v35  ;;  %v1263_v0 = vsel %vm1260_vm8, %v12172_v59, %v1257_v52  ;;  %v1275_v29 = vsel %vm1260_vm8, %v1257_v52, %v12173_v13  ;;  %v1241_v57 = vpop.permute.xlu0 %1240  ;;  %v1266_v31 = vsel %vm1260_vm8, %v12166_v20, %v12163_v47  ;;  %v1259_v4 = vpop.permute.xlu1 %1258  ;;  %v12177_v47 = vld [vmem:[#allocation76_spill] sm:$0xff]  ;;  %v12182_v20 = vld [vmem:[#allocation82_spill] sm:$0xff] }
 0x2a2   :  { %v8738_v43 = vmul.f32 %v12167_v23, %v1270_v11  ;;  %v7187_v10 = vpack.c.bf16 %v8700_v62, %v8697_v55  ;;  %v8743_v45 = vmul.f32 %v12174_v5, %v1117_v51  ;;  %v8746_v53 = vmul.f32 %v12175_v39, %v1129_v1  ;;  %v12180_v52 = vld [vmem:[#allocation32_spill] sm:$0xff] }
 0x2a3   :  { %1977 = vmatpush1.bf16.msra.mxu0 %v7132_v6  ;;  %2059 = vmatpush1.bf16.msra.mxu1 %v7134_v60  ;;  %v1264_v7 = vsel %vm1260_vm8, %v12176_v17, %v1259_v4  ;;  %v1276_v14 = vsel %vm1260_vm8, %v1259_v4, %v12177_v47  ;;  %v1311_v46 = vmul.f32 %v12165_v37, %v1275_v29  ;;  %v12183_v6 = vld [vmem:[#allocation80_spill] sm:$0xff] }
 0x2a4   :  { %1978 = vmatprep.subr.bf16.mxu0 %v7129_v41  ;;  %2060 = vmatprep.subr.bf16.mxu1 %v7131_v54  ;;  %v1310_v54 = vmul.f32 %v12156_v24, %v1263_v0  ;;  %v1314_v2 = vmul.f32 %v12156_v24, %v1264_v7  ;;  %v1315_v49 = vmul.f32 %v12165_v37, %v1276_v14 }
 0x2a5   :  { %v1305_v21 = vmul.f32 %v12168_v42, %v1266_v31  ;;  %v1267_v8 = vsel %vm1260_vm8, %v1241_v57, %v12172_v59  ;;  %v1271_v36 = vsel %vm1260_vm8, %v12173_v13, %v1241_v57  ;;  %v1113_v27 = vpop.permute.xlu0 %1112  ;;  %v7184_v24 = vpack.c.bf16 %v8738_v43, %v8712_v19  ;;  %v1243_v50 = vpop.permute.xlu1 %1242  ;;  %v12185_v59 = vld [vmem:[#allocation95_spill] sm:$0xff]  ;;  %v12186_v13 = vld [vmem:[#allocation52_spill] sm:$0xff]  ;;  %v12187_v57 = vld [vmem:[#allocation93_spill] sm:$0xff] }
 0x2a6   :  { %v7190_v38 = vpack.c.bf16 %v1314_v2, %v1310_v54  ;;  %v7191_v3 = vpack.c.bf16 %v1315_v49, %v1311_v46  ;;  %v8772_v16 = vrot.slane %v8395_v48, %v12178_v18  ;;  %v1121_v30 = vsel %vm1116_vm9, %v12179_v58, %v12170_v61  ;;  %v12188_v31 = vld [vmem:[#allocation85_spill] sm:$0xff] }
 0x2a7   :  { %1979 = vmatpush1.bf16.msra.mxu0 %v7128_v63  ;;  %2061 = vmatpush1.bf16.msra.mxu1 %v7130_v44  ;;  %v1130_v32 = vsel %vm1116_vm9, %v12181_v22, %v12180_v52  ;;  %v1268_v63 = vsel %vm1260_vm8, %v1243_v50, %v12176_v17  ;;  %v1272_v37 = vsel %vm1260_vm8, %v12177_v47, %v1243_v50 }
 0x2a8   :  { %v1308_v55 = vmul.f32 %v12167_v23, %v1271_v36  ;;  %v1309_v62 = vmul.f32 %v12168_v42, %v1267_v8  ;;  %v1312_v60 = vmul.f32 %v12167_v23, %v1272_v37  ;;  %v1313_v9 = vmul.f32 %v12168_v42, %v1268_v63  ;;  %2062 = vmatprep.subr.bf16.mxu1 %v7191_v3  ;;  %v12184_v42 = vld [vmem:[#allocation34_spill] sm:$0xff]  ;;  %v12189_v36 = vld [vmem:[#allocation36_spill] sm:$0xff] }
 0x2a9   :  { %v8796_v44 = vsel %vm1116_vm9, %v12171_v56, %v12179_v58  ;;  %v1119_v11 = vsel %vm1116_vm9, %v12182_v20, %v1113_v27  ;;  %v1131_v41 = vsel %vm1116_vm9, %v1113_v27, %v12183_v6  ;;  %v1097_v19 = vpop.permute.xlu0 %1096  ;;  %v7185_v23 = vpack.c.bf16 %v1305_v21, %v8715_v33  ;;  %v1115_v56 = vpop.permute.xlu1 %1114  ;;  %v12190_v27 = vld [vmem:[#allocation94_spill] sm:$0xff] }
 0x2aa   :  { %v1118_v15 = vsel %vm1116_vm9, %v12184_v42, %v12181_v22  ;;  %v1163_v61 = vmul.f32 %v12175_v39, %v1130_v32  ;;  %v7188_v51 = vpack.c.bf16 %v1312_v60, %v1308_v55  ;;  %v7189_v1 = vpack.c.bf16 %v1313_v9, %v1309_v62  ;;  %v12192_v22 = vld [vmem:[#allocation91_spill] sm:$0xff] }
 0x2ab   :  { %2063 = vmatpush2.bf16.msra.mxu1 %v7190_v38  ;;  %v1157_v0 = vmul.f32 %v12185_v59, %v1121_v30  ;;  %v1122_v29 = vsel %vm1116_vm9, %v12186_v13, %v12184_v42  ;;  %v1120_v33 = vsel %vm1116_vm9, %v12187_v57, %v1115_v56  ;;  %v1132_v43 = vsel %vm1116_vm9, %v1115_v56, %v12188_v31  ;;  %v12191_v30 = vld [vmem:[#allocation96_spill] sm:$0xff] }
 0x2ac   :  { %2064 = vmatprep.subr.bf16.mxu1 %v7187_v10  ;;  %v1166_v4 = vmul.f32 %v12174_v5, %v1119_v11  ;;  %v1167_v10 = vmul.f32 %v12175_v39, %v1131_v41  ;;  %v1170_v17 = vmul.f32 %v12174_v5, %v1120_v33  ;;  %v1171_v7 = vmul.f32 %v12175_v39, %v1132_v43  ;;  %v12194_v11 = vld [vmem:[#allocation57_spill] sm:$0xff]  ;;  %v12195_v41 = vld [vmem:[#allocation99_spill] sm:$0xff] }
 0x2ad   :  { %1980 = vmatprep.subr.bf16.mxu0 %v7189_v1  ;;  %v1162_v47 = vmul.f32 %v12174_v5, %v1118_v15  ;;  %v1123_v14 = vsel %vm1116_vm9, %v1097_v19, %v12182_v20  ;;  %v1127_v54 = vsel %vm1116_vm9, %v12183_v6, %v1097_v19  ;;  %v969_v46 = vpop.permute.xlu0 %968  ;;  %v1161_v39 = vmul.f32 %v12185_v59, %v1122_v29  ;;  %v1099_v5 = vpop.permute.xlu1 %1098  ;;  %v12193_v20 = vld [vmem:[#allocation33_spill] sm:$0xff] }
 0x2ae   :  { %1981 = vmatpush2.bf16.msra.mxu0 %v7188_v51  ;;  %v7182_v2 = vpack.c.bf16 %v1170_v17, %v1166_v4  ;;  %v7183_v49 = vpack.c.bf16 %v1171_v7, %v1167_v10  ;;  %v7179_v21 = vpack.c.bf16 %v1163_v61, %v8746_v53  ;;  %v1126_v8 = vsel %vm1116_vm9, %v12180_v52, %v12186_v13  ;;  %v12196_v19 = vld [vmem:[#allocation97_spill] sm:$0xff]  ;;  %v12198_v4 = vld [vmem:[#allocation75_spill] sm:$0xff] }
 0x2af   :  { %2065 = vmatpush2.bf16.msra.mxu1 %v7186_v12  ;;  %1982 = vmatprep.subr.bf16.mxu0 %v7185_v23  ;;  %v986_v35 = vsel %vm972_vm10, %v8702_v25, %v12189_v36  ;;  %v1124_v26 = vsel %vm1116_vm9, %v1099_v5, %v12187_v57  ;;  %v1128_v12 = vsel %vm1116_vm9, %v12188_v31, %v1099_v5  ;;  %v12197_v31 = vld [vmem:[#allocation74_spill] sm:$0xff]  ;;  %v12200_v5 = vld [vmem:[#allocation39_spill] sm:$0xff] }
 0x2b0   :  { %v1164_v53 = vmul.f32 %v12190_v27, %v1127_v54  ;;  %v1165_v38 = vmul.f32 %v12185_v59, %v1123_v14  ;;  %v1168_v50 = vmul.f32 %v12190_v27, %v1128_v12  ;;  %v1169_v3 = vmul.f32 %v12185_v59, %v1124_v26  ;;  %2066 = vmatprep.subr.bf16.mxu1 %v7183_v49 }
 0x2b1   :  { %v7178_v58 = vpack.c.bf16 %v1162_v47, %v8743_v45  ;;  %v975_v52 = vsel %vm972_vm10, %v12191_v30, %v969_v46  ;;  %v987_v32 = vsel %vm972_vm10, %v969_v46, %v12192_v22  ;;  %v957_v63 = vpop.permute.xlu0 %956  ;;  %v1160_v37 = vmul.f32 %v12190_v27, %v1126_v8  ;;  %v971_v62 = vpop.permute.xlu1 %970 }
 0x2b2   :  { %1983 = vmatpush2.bf16.msra.mxu0 %v7184_v24  ;;  %v7180_v55 = vpack.c.bf16 %v1168_v50, %v1164_v53  ;;  %v7181_v60 = vpack.c.bf16 %v1169_v3, %v1165_v38  ;;  %v7177_v9 = vpack.c.bf16 %v1161_v39, %v1157_v0  ;;  %v985_v45 = vsel %vm972_vm10, %v8657_v34, %v12193_v20  ;;  %v12201_v53 = vld [vmem:[#allocation11_spill] sm:$0xff]  ;;  %v12202_v38 = vld [vmem:[#allocation13_spill] sm:$0xff] }
 0x2b3   :  { %2067 = vmatpush2.bf16.msra.mxu1 %v7182_v2  ;;  %v1019_v6 = vmul.f32 %v12194_v11, %v986_v35  ;;  %v976_v24 = vsel %vm972_vm10, %v12195_v41, %v971_v62  ;;  %v988_v23 = vsel %vm972_vm10, %v971_v62, %v12196_v19  ;;  %v1022_v42 = vmul.f32 %v8772_v16, %v975_v52  ;;  %v12199_v2 = vld [vmem:[#allocation37_spill] sm:$0xff] }
 0x2b4   :  { %2068 = vmatprep.subr.bf16.mxu1 %v7179_v21  ;;  %v1023_v15 = vmul.f32 %v12194_v11, %v987_v32  ;;  %v1026_v61 = vmul.f32 %v8772_v16, %v976_v24  ;;  %v1027_v51 = vmul.f32 %v12194_v11, %v988_v23  ;;  %1984 = vmatprep.subr.bf16.mxu0 %v7181_v60  ;;  %v12204_v32 = vld [vmem:[#allocation14_spill] sm:$0xff] }
 0x2b5   :  { %v1156_v56 = vmul.f32 %v12190_v27, %v8796_v44  ;;  %v973_v1 = vsel %vm972_vm10, %v957_v63, %v8657_v34  ;;  %v953_v59 = vpop.permute.xlu0 %952  ;;  %v1015_v0 = vmul.f32 %v12194_v11, %v985_v45  ;;  %v959_v29 = vpop.permute.xlu1 %958  ;;  %v995_v43 = vrot.slane %v8395_v48, %v12197_v31  ;;  %v12206_v60 = vld [vmem:[#allocation78_spill] sm:$0xff]  ;;  %v12207_v11 = vld [vmem:[#allocation51_spill] sm:$0xff] }
 0x2b6   :  { %1985 = vmatpush2.bf16.msra.mxu0 %v7180_v55  ;;  %v7174_v13 = vpack.c.bf16 %v1026_v61, %v1022_v42  ;;  %v7175_v57 = vpack.c.bf16 %v1027_v51, %v1023_v15  ;;  %v999_v44 = vrot.slane %v8395_v48, %v12198_v4  ;;  %v974_v34 = vsel %vm972_vm10, %v959_v29, %v8702_v25 }
 0x2b7   :  { %2069 = vmatpush2.bf16.msra.mxu1 %v7178_v58  ;;  %1986 = vmatprep.subr.bf16.mxu0 %v7177_v9  ;;  %v7176_v33 = vpack.c.bf16 %v1160_v37, %v1156_v56  ;;  %v1014_v10 = vmul.f32 %v8772_v16, %v973_v1  ;;  %v983_v17 = vsel %vm972_vm10, %v12192_v22, %v953_v59  ;;  %v12203_v58 = vld [vmem:[#allocation77_spill] sm:$0xff] }
 0x2b8   :  { %v1018_v7 = vmul.f32 %v8772_v16, %v974_v34  ;;  %2070 = vmatprep.subr.bf16.mxu1 %v7175_v57  ;;  %v7171_v47 = vpack.c.bf16 %v1019_v6, %v1015_v0  ;;  %v979_v14 = vsel %vm972_vm10, %v953_v59, %v12191_v30  ;;  %v1020_v46 = vmul.f32 %v995_v43, %v983_v17  ;;  %v12205_v37 = vld [vmem:[#allocation17_spill] sm:$0xff]  ;;  %v12211_v59 = vld [vmem:[#allocation35_spill] sm:$0xff]  ;;  %v12212_v0 = vld [vmem:[#allocation38_spill] sm:$0xff] }
 0x2b9   :  { %v949_v48 = vpop.permute.xlu0 %948  ;;  %v955_v25 = vpop.permute.xlu1 %954  ;;  %v7167_v49 = vpack.c.bf16 %v12200_v5, %v12199_v2  ;;  %v1021_v21 = vmul.f32 %v999_v44, %v979_v14  ;;  %v7163_v50 = vpack.c.bf16 %v12202_v38, %v12201_v53  ;;  %v1435_v30 = vrot.slane %v12203_v58, %v12178_v18  ;;  %v12210_v56 = vld [vmem:[#allocation9_spill] sm:$0xff]  ;;  %v12213_v57 = vld [vmem:[#allocation54_spill] sm:$0xff]  ;;  %v12218_v5 = vld [vmem:[#allocation12_spill] sm:$0xff] }
 0x2ba   :  { %1987 = vmatpush2.bf16.msra.mxu0 %v7176_v33  ;;  %v7170_v54 = vpack.c.bf16 %v1018_v7, %v1014_v10  ;;  %v980_v39 = vsel %vm972_vm10, %v955_v25, %v12195_v41  ;;  %v984_v16 = vsel %vm972_vm10, %v12196_v19, %v955_v25  ;;  %v981_v8 = vsel %vm972_vm10, %v12193_v20, %v949_v48  ;;  %v12208_v19 = vld [vmem:[#allocation53_spill] sm:$0xff]  ;;  %v7373_v34 = vld [vmem:[%s11719_s7] sm:$0xff]  ;;  %v12215_v7 = vld [vmem:[#allocation16_spill] sm:$0xff] }
 0x2bb   :  { %2071 = vmatpush2.bf16.msra.mxu1 %v7174_v13  ;;  %v1024_v35 = vmul.f32 %v995_v43, %v984_v16  ;;  %v1025_v26 = vmul.f32 %v999_v44, %v980_v39  ;;  %v977_v12 = vsel %vm972_vm10, %v949_v48, %v957_v63  ;;  %v7166_v55 = vpack.c.bf16 %v12205_v37, %v12204_v32  ;;  %v12217_v2 = vld [vmem:[#allocation10_spill] sm:$0xff]  ;;  %v12222_v53 = vld [vmem:[#allocation19_spill] sm:$0xff]  ;;  %v12224_v37 = vld [vmem:[#allocation8_spill] sm:$0xff] }
 0x2bc   :  { %2072 = vmatprep.subr.bf16.mxu1 %v7171_v47  ;;  %v1012_v62 = vmul.f32 %v995_v43, %v981_v8  ;;  %v1439_v9 = vrot.slane %v12203_v58, %v12206_v60  ;;  %v1013_v45 = vmul.f32 %v999_v44, %v977_v12  ;;  %v7165_v13 = vpack.c.bf16 %v12212_v0, %v12211_v59  ;;  %v12219_v8 = vld [vmem:[#allocation20_spill] sm:$0xff] }
 0x2bd   :  { %v1401_v27 = vpop.permute.xlu0 %1400  ;;  %v7172_v3 = vpack.c.bf16 %v1024_v35, %v1020_v46  ;;  %v951_v52 = vpop.permute.xlu1 %950  ;;  %v7173_v22 = vpack.c.bf16 %v1025_v26, %v1021_v21  ;;  %v6471_v10 = vcombine.low %v7373_v34, %v7373_v34  ;;  %v12220_v26 = vld [vmem:[#allocation21_spill] sm:$0xff]  ;;  %v12223_v32 = vmov 0  }
 0x2be   :  { %v978_v63 = vsel %vm972_vm10, %v951_v52, %v959_v29  ;;  %v982_v20 = vsel %vm972_vm10, %v12189_v36, %v951_v52  ;;  %v1407_v6 = vsel %vm1404_vm2, %v12207_v11, %v1401_v27  ;;  %v1419_v23 = vsel %vm1404_vm2, %v1401_v27, %v12208_v19  ;;  %v12209_v36 = vld [vmem:[#allocation6_spill] sm:$0xff]  ;;  %v12221_v27 = vld [vmem:[#allocation15_spill] sm:$0xff] }
 0x2bf   :  { %2073 = vmatpush2.bf16.msra.mxu1 %v7170_v54  ;;  %v1016_v41 = vmul.f32 %v995_v43, %v982_v20  ;;  %v1017_v24 = vmul.f32 %v999_v44, %v978_v63  ;;  %1988 = vmatprep.subr.bf16.mxu0 %v7173_v22  ;;  %v7162_v1 = vpack.c.bf16 %v12210_v56, %v12209_v36  ;;  %v12214_v43 = vld [vmem:[#allocation55_spill] sm:$0xff]  ;;  %v12216_v54 = vld [vmem:[#allocation18_spill] sm:$0xff] }
 0x2c0   :  { %2074 = vmatprep.subr.bf16.mxu1 %v7167_v49  ;;  %1989 = vmatpush2.bf16.msra.mxu0 %v7172_v3  ;;  %v1454_v29 = vmul.f32 %v1435_v30, %v1407_v6  ;;  %v1455_v17 = vmul.f32 %v1439_v9, %v1419_v23  ;;  %v7161_v49 = vpack.c.bf16 %v12218_v5, %v12217_v2  ;;  %v2133_v23 = vld [vmem:[#allocation3 + $0x8] sm:$0xff] }
 0x2c1   :  { %v1397_v42 = vpop.permute.xlu0 %1396  ;;  %v7168_v15 = vpack.c.bf16 %v1016_v41, %v1012_v62  ;;  %v1403_v61 = vpop.permute.xlu1 %1402  ;;  %v7169_v51 = vpack.c.bf16 %v1017_v24, %v1013_v45  ;;  %v7164_v38 = vpack.c.bf16 %v12222_v53, %v12221_v27 }
 0x2c2   :  { %v1408_v33 = vsel %vm1404_vm2, %v12213_v57, %v1403_v61  ;;  %v1420_v44 = vsel %vm1404_vm2, %v1403_v61, %v12214_v43  ;;  %v1405_v47 = vsel %vm1404_vm2, %v12215_v7, %v1397_v42  ;;  %v1417_v25 = vsel %vm1404_vm2, %v1397_v42, %v12216_v54  ;;  %v2135_v42 = vld [vmem:[#allocation3 + $0x18] sm:$0xff] }
 0x2c3   :  { %2075 = vmatpush2.bf16.msra.mxu1 %v7166_v55  ;;  %v1458_v14 = vmul.f32 %v1435_v30, %v1408_v33  ;;  %v1459_v48 = vmul.f32 %v1439_v9, %v1420_v44  ;;  %1990 = vmatprep.subr.bf16.mxu0 %v7169_v51  ;;  %v1446_v21 = vmul.f32 %v1435_v30, %v1405_v47  ;;  %v12225_v55 = vld [vmem:[#allocation7_spill] sm:$0xff]  ;;  %v2132_v51 = vld [vmem:[#allocation3] sm:$0xff] }
 0x2c4   :  { %2076 = vmatprep.subr.bf16.mxu1 %v7163_v50  ;;  %1991 = vmatpush2.bf16.msra.mxu0 %v7168_v15  ;;  %v1447_v50 = vmul.f32 %v1439_v9, %v1417_v25  ;;  %v12226_v62 = vpack.c.bf16 %v12224_v37, %v12225_v55  ;;  %v7363_v55 = vld [vmem:[%s11716_s4 + $0x10] sm:$0xff]  }
 0x2c5   :  { %v7198_v46 = vpack.c.bf16 %v1458_v14, %v1454_v29  ;;  %v1399_v39 = vpop.permute.xlu1 %1398  ;;  %1992 = vmatprep.subr.bf16.mxu0 %v7165_v13  ;;  %v7199_v16 = vpack.c.bf16 %v1459_v48, %v1455_v17 }
 0x2c6   :  { %v1406_v35 = vsel %vm1404_vm2, %v12219_v8, %v1399_v39  ;;  %v1418_v12 = vsel %vm1404_vm2, %v1399_v39, %v12220_v26 }
 0x2c7   :  { %2077 = vmatpush2.bf16.msra.mxu1 %v7162_v1  ;;  %v1450_v3 = vmul.f32 %v1435_v30, %v1406_v35  ;;  %v1451_v58 = vmul.f32 %v1439_v9, %v1418_v12 }
 0x2c8   :  { %2099 = vmatprep.subr.bf16.mxu1 %v7199_v16  ;;  %1993 = vmatpush2.bf16.msra.mxu0 %v7164_v38 }
 0x2c9   :  { %v7194_v52 = vpack.c.bf16 %v1450_v3, %v1446_v21  ;;  %1994 = vmatprep.subr.bf16.mxu0 %v7161_v49  ;;  %v7195_v22 = vpack.c.bf16 %v1451_v58, %v1447_v50 }
 0x2ca   :  { %2079 = vmatmul.mubr.bf16.vlgmr.msra.gmra.mxu1 %v6471_v10 }
 0x2cb   :  { %2100 = vmatpush1.bf16.msra.mxu1 %v7198_v46  ;;  %2119 = vmatprep.mubr.bf16.mxu1 %v12223_v32 }
 0x2cc   :  { %2101 = vmatprep.subr.bf16.mxu1 %v7195_v22  ;;  %1995 = vmatpush2.bf16.msra.mxu0 %v12226_v62  ;;  %v7364_v62 = vld [vmem:[%s11716_s4 + $0x18] sm:$0xff]  }
 0x2ce   :  { %v2149_v6 = vpop.permute.xlu0 %2148 }
 0x2cf   :  { %2102 = vmatpush1.bf16.msra.mxu1 %v7194_v52  ;;  %1997 = vmatmul.mubr.bf16.vlgmr.msra.gmra.mxu0 %v6471_v10  ;;  %v2157_v13 = vmul.f32 %v2149_v6, %v2133_v23  ;;  %v2159_v29 = vmul.f32 %v2149_v6, %v2135_v42  ;;  %v2156_v10 = vmul.f32 %v2149_v6, %v2132_v51 }
 0x2d0   :  { %2248 = vmatprep.mubr.bf16.mxu0 %v12223_v32 }
 0x2d2   :  { %6547 = vmatmul.mubr.msk.bf16.vlgmr.msra.gmra.mxu1 %vm1960_vm7, %v8463_v40  ;;  %v2154_v24 = vpop.permute.xlu1 %2153  ;;  %v2134_v40 = vld [vmem:[#allocation3 + $0x10] sm:$0xff]  ;;  %v2167_v36 = vpop.permute.xlu0 %2166 }
 0x2d3   :  { %2301 = vmatprep.mubr.bf16.mxu1 %v12223_v32  ;;  %v2158_v17 = vmul.f32 %v2149_v6, %v2134_v40  ;;  %v2175_v47 = vadd.f32 %v2167_v36, %v2157_v13  ;;  %v2177_v14 = vadd.f32 %v2167_v36, %v2159_v29  ;;  %v2174_v16 = vadd.f32 %v2167_v36, %v2156_v10 }
 0x2d5   :  { %v2176_v2 = vadd.f32 %v2167_v36, %v2158_v17  ;;  %v2183_v12 = vmax.f32 %v2175_v47, 0.0  ;;  %v2185_v53 = vmax.f32 %v2177_v14, 0.0  ;;  %v2182_v50 = vmax.f32 %v2174_v16, 0.0 }
 0x2d6   :  { %v2172_v57 = vpop.permute.xlu1 %2171 }
 0x2d7   :  { %v2184_v3 = vmax.f32 %v2176_v2, 0.0 }
 0x347   :  { %v2039_v30 = vpop.f32.mrf.mxu1 }
 0x349   :  { %v2041_v9 = vpop.f32.mrf.mxu1 }
 0x34b   :  { %v2043_v63 = vpop.f32.mrf.mxu1 }
 0x34d   :  { %v2044_v20 = vpop.f32.mrf.mxu1 }
 0x38a   :  { %v2080_v45 = vpop.f32.mrf.mxu1 }
 0x38c   :  { %v2082_v11 = vpop.f32.mrf.mxu1 }
 0x38e   :  { %v2084_v41 = vpop.f32.mrf.mxu1 }
 0x38f   :  { %v1998_v15 = vpop.f32.mrf.mxu0 }
 0x390   :  { %v2085_v19 = vpop.f32.mrf.mxu1  ;;  %v2040_v56 = vadd.f32 %v2039_v30, %v1998_v15  ;;  %v8978_v30 = vpop.permute.xlu0 %2339 }
 0x391   :  { %v2000_v59 = vpop.f32.mrf.mxu0 }
 0x392   :  { %v2121_v61 = vpop.f32.mrf.mxu1  ;;  %2128 = vst [vmem:[#allocation3 + $0x20] sm:$0xff] %v2040_v56  ;;  %v2042_v33 = vadd.f32 %v2041_v9, %v2000_v59  ;;  %v2160_v44 = vmul.f32 %v2154_v24, %v2040_v56  ;;  %v8980_v9 = vpop.permute.xlu1 %2344 }
 0x393   :  { %v2122_v1 = vadd.f32 %v2121_v61, %v2080_v45  ;;  %v2002_v7 = vpop.f32.mrf.mxu0 }
 0x394   :  { %v2123_v0 = vpop.f32.mrf.mxu1  ;;  %2129 = vst [vmem:[#allocation3 + $0x28] sm:$0xff] %v2042_v33  ;;  %v2161_v54 = vmul.f32 %v2154_v24, %v2042_v33  ;;  %v2178_v46 = vadd.f32 %v2172_v57, %v2160_v44  ;;  %v8982_v63 = vpop.permute.xlu0 %2380 }
 0x395   :  { %2130 = vst [vmem:[#allocation3 + $0x30] sm:$0xff] %v2122_v1  ;;  %v2124_v43 = vadd.f32 %v2123_v0, %v2082_v11  ;;  %v2162_v34 = vmul.f32 %v2154_v24, %v2122_v1  ;;  %v2003_v5 = vpop.f32.mrf.mxu0 }
 0x396   :  { %v2125_v48 = vpop.f32.mrf.mxu1  ;;  %v2179_v21 = vadd.f32 %v2172_v57, %v2161_v54  ;;  %v2186_v35 = vmax.f32 %v2178_v46, 0.0  ;;  %v8984_v20 = vpop.permute.xlu1 %2385 }
 0x397   :  { %2131 = vst [vmem:[#allocation3 + $0x38] sm:$0xff] %v2124_v43  ;;  %v2163_v25 = vmul.f32 %v2154_v24, %v2124_v43  ;;  %v2180_v39 = vadd.f32 %v2172_v57, %v2162_v34 }
 0x398   :  { %v2126_v49 = vpop.f32.mrf.mxu1  ;;  %v2187_v27 = vmax.f32 %v2179_v21, 0.0  ;;  %v2195_v22 = vpack.c.bf16 %v2186_v35, %v2182_v50  ;;  %v8986_v45 = vpop.permute.xlu0 %2329 }
 0x399   :  { %v2181_v8 = vadd.f32 %v2172_v57, %v2163_v25  ;;  %v2188_v26 = vmax.f32 %v2180_v39, 0.0 }
 0x39a   :  { %v2196_v58 = vpack.c.bf16 %v2187_v27, %v2183_v12  ;;  %v8988_v6 = vpop.permute.xlu1 %2334 }
 0x39b   :  { %v2189_v38 = vmax.f32 %v2181_v8, 0.0  ;;  %v2197_v37 = vpack.c.bf16 %v2188_v26, %v2184_v3 }
 0x39c   :  { %2230 = vmatprep.subr.bf16.mxu0 %v2196_v58  ;;  %v8991_v24 = vpop.permute.xlu0 %2370 }
 0x39d   :  { %v2198_v52 = vpack.c.bf16 %v2189_v38, %v2185_v53  ;;  %2231 = vmatpush1.bf16.msra.mxu0 %v2195_v22 }
 0x39e   :  { %v8997_v51 = vpop.permute.xlu1 %2375 }
 0x39f   :  { %2283 = vmatprep.subr.bf16.mxu1 %v2198_v52 }
 0x3a0   :  { %2284 = vmatpush1.bf16.msra.mxu1 %v2197_v37  ;;  %6558 = vmatmul.mubr.msk.bf16.vlgmr.msra.gmra.mxu0 %vm2209_vm11, %v7363_v55 }
 0x3a1   :  { %2258 = vmatprep.mubr.bf16.mxu0 %v12223_v32 }
 0x3a3   :  { %6560 = vmatmul.mubr.msk.bf16.vlgmr.msra.gmra.mxu1 %vm2209_vm11, %v7363_v55 }
 0x3a4   :  { %2311 = vmatprep.mubr.bf16.mxu1 %v12223_v32 }
 0x3a8   :  { %6559 = vmatmul.mubr.msk.bf16.gmra.mxu0 %vm2209_vm11, %v7364_v62 }
 0x3ab   :  { %6561 = vmatmul.mubr.msk.bf16.gmra.mxu1 %vm2209_vm11, %v7364_v62 }
 0x3ac   :  { %4133 = vmatprep.mubr.bf16.mxu1 %v12223_v32 }
 0x460   :  { %v2250_v11 = vpop.f32.mrf.mxu0 }
 0x461   :  { %v2347_v41 = vmul.f32 %v8986_v45, %v2250_v11 }
 0x462   :  { %v2252_v19 = vpop.f32.mrf.mxu0 }
 0x463   :  { %v2388_v23 = vadd.f32 %v8991_v24, %v2347_v41  ;;  %v2348_v56 = vmul.f32 %v8986_v45, %v2252_v19  ;;  %v2303_v5 = vpop.f32.mrf.mxu1 }
 0x464   :  { %v2254_v42 = vpop.f32.mrf.mxu0  ;;  %v2349_v21 = vmul.f32 %v8986_v45, %v2303_v5 }
 0x465   :  { %v8994_v15 = vmax.f32 %v2388_v23, 0.0  ;;  %v2351_v61 = vmul.f32 %v8988_v6, %v2254_v42  ;;  %v2389_v59 = vadd.f32 %v8991_v24, %v2348_v56  ;;  %v2305_v49 = vpop.f32.mrf.mxu1 }
 0x466   :  { %v2256_v1 = vpop.f32.mrf.mxu0  ;;  %v2390_v35 = vadd.f32 %v8991_v24, %v2349_v21  ;;  %v2350_v58 = vmul.f32 %v8986_v45, %v2305_v49 }
 0x467   :  { %12227 = vst [vmem:[#allocation56_spill] sm:$0xff] %v8994_v15  ;;  %2846 = vrot.lane.b32.xlu0 %v8994_v15, %s7398_s15  ;;  %v2392_v40 = vadd.f32 %v8997_v51, %v2351_v61  ;;  %v2352_v0 = vmul.f32 %v8988_v6, %v2256_v1  ;;  %v9027_v13 = vmax.f32 %v2389_v59, 0.0  ;;  %v2307_v8 = vpop.f32.mrf.mxu1 }
 0x468   :  { %v2260_v33 = vpop.f32.mrf.mxu0  ;;  %v2353_v26 = vmul.f32 %v8988_v6, %v2307_v8  ;;  %v9135_v12 = vmax.f32 %v2390_v35, 0.0  ;;  %v2391_v55 = vadd.f32 %v8991_v24, %v2350_v58 }
 0x469   :  { %v9002_v36 = vmax.f32 %v2392_v40, 0.0  ;;  %12229 = vst [vmem:[#allocation40_spill] sm:$0xff] %v9027_v13  ;;  %v2393_v29 = vadd.f32 %v8997_v51, %v2352_v0  ;;  %v2355_v44 = vmul.f32 %v8978_v30, %v2260_v33  ;;  %v2309_v37 = vpop.f32.mrf.mxu1 }
 0x46a   :  { %v2262_v43 = vpop.f32.mrf.mxu0  ;;  %12235 = vst [vmem:[#allocation62_spill] sm:$0xff] %v9135_v12  ;;  %v2394_v27 = vadd.f32 %v8997_v51, %v2353_v26  ;;  %v2354_v11 = vmul.f32 %v8988_v6, %v2309_v37  ;;  %v9181_v45 = vmax.f32 %v2391_v55, 0.0 }
 0x46b   :  { %12228 = vst [vmem:[#allocation59_spill] sm:$0xff] %v9002_v36  ;;  %2704 = vrot.lane.b32.xlu0 %v8994_v15, %s7399_s16  ;;  %2848 = vrot.lane.b32.xlu1 %v9002_v36, %s7398_s15  ;;  %v9034_v57 = vmax.f32 %v2393_v29, 0.0  ;;  %v2396_v10 = vadd.f32 %v8982_v63, %v2355_v44  ;;  %v2356_v48 = vmul.f32 %v8978_v30, %v2262_v43  ;;  %v2313_v24 = vpop.f32.mrf.mxu1 }
 0x46c   :  { %v2264_v34 = vpop.f32.mrf.mxu0  ;;  %v9142_v53 = vmax.f32 %v2394_v27, 0.0  ;;  %12240 = vst [vmem:[#allocation42_spill] sm:$0xff] %v9181_v45  ;;  %v2395_v23 = vadd.f32 %v8997_v51, %v2354_v11  ;;  %v2357_v51 = vmul.f32 %v8978_v30, %v2313_v24 }
 0x46d   :  { %12230 = vst [vmem:[#allocation22_spill] sm:$0xff] %v9034_v57  ;;  %v2359_v17 = vmul.f32 %v8980_v9, %v2264_v34  ;;  %v9063_v7 = vmax.f32 %v2396_v10, 0.0  ;;  %v2397_v25 = vadd.f32 %v8982_v63, %v2356_v48  ;;  %v2315_v56 = vpop.f32.mrf.mxu1 }
 0x46e   :  { %v2266_v54 = vpop.f32.mrf.mxu0  ;;  %12236 = vst [vmem:[#allocation61_spill] sm:$0xff] %v9142_v53  ;;  %v9194_v61 = vmax.f32 %v2395_v23, 0.0  ;;  %v2398_v29 = vadd.f32 %v8982_v63, %v2357_v51  ;;  %v2358_v35 = vmul.f32 %v8978_v30, %v2315_v56 }
 0x46f   :  { %3470 = vrot.lane.b32.xlu0 %v8994_v15, %s7397_s14  ;;  %2706 = vrot.lane.b32.xlu1 %v9002_v36, %s7399_s16  ;;  %12231 = vst [vmem:[#allocation23_spill] sm:$0xff] %v9063_v7  ;;  %v2400_v47 = vadd.f32 %v8984_v20, %v2359_v17  ;;  %v2360_v46 = vmul.f32 %v8980_v9, %v2266_v54  ;;  %v9099_v39 = vmax.f32 %v2397_v25, 0.0  ;;  %v2317_v0 = vpop.f32.mrf.mxu1 }
 0x470   :  { %12243 = vst [vmem:[#allocation63_spill] sm:$0xff] %v9194_v61  ;;  %v2361_v43 = vmul.f32 %v8980_v9, %v2317_v0  ;;  %v9221_v34 = vmax.f32 %v2398_v29, 0.0  ;;  %v2399_v37 = vadd.f32 %v8982_v63, %v2358_v35 }
 0x471   :  { %v9070_v14 = vmax.f32 %v2400_v47, 0.0  ;;  %12233 = vst [vmem:[#allocation84_spill] sm:$0xff] %v9099_v39  ;;  %v2401_v16 = vadd.f32 %v8984_v20, %v2360_v46  ;;  %v2319_v58 = vpop.f32.mrf.mxu1 }
 0x472   :  { %12246 = vst [vmem:[#allocation68_spill] sm:$0xff] %v9221_v34  ;;  %v2402_v17 = vadd.f32 %v8984_v20, %v2361_v43  ;;  %v2362_v11 = vmul.f32 %v8980_v9, %v2319_v58  ;;  %v9285_v30 = vmax.f32 %v2399_v37, 0.0 }
 0x473   :  { %2562 = vrot.lane.b32.xlu0 %v8994_v15, %s7400_s17  ;;  %3472 = vrot.lane.b32.xlu1 %v9002_v36, %s7397_s14  ;;  %12232 = vst [vmem:[#allocation83_spill] sm:$0xff] %v9070_v14  ;;  %v9106_v2 = vmax.f32 %v2401_v16, 0.0 }
 0x474   :  { %v9234_v54 = vmax.f32 %v2402_v17, 0.0  ;;  %12256 = vst [vmem:[#allocation70_spill] sm:$0xff] %v9285_v30  ;;  %v2403_v56 = vadd.f32 %v8984_v20, %v2362_v11 }
 0x475   :  { %12234 = vst [vmem:[#allocation58_spill] sm:$0xff] %v9106_v2 }
 0x476   :  { %12247 = vst [vmem:[#allocation43_spill] sm:$0xff] %v9234_v54  ;;  %v9298_v63 = vmax.f32 %v2403_v56, 0.0  ;;  %v9337_v56 = vld [vmem:[%s11713_s1 + $0x3] ss:$8 sm:$0xf] }
 0x477   :  { %2420 = vrot.lane.b32.xlu0 %v8994_v15, %s7401_s18  ;;  %2564 = vrot.lane.b32.xlu1 %v9002_v36, %s7400_s17 }
 0x478   :  { %12258 = vst [vmem:[#allocation72_spill] sm:$0xff] %v9298_v63 }
 0x47b   :  { %3328 = vrot.lane.b32.xlu0 %v8994_v15, %s7402_s19  ;;  %2422 = vrot.lane.b32.xlu1 %v9002_v36, %s7401_s18 }
 0x47f   :  { %2854 = vrot.lane.b32.xlu0 %v9027_v13, %s7398_s15  ;;  %3330 = vrot.lane.b32.xlu1 %v9002_v36, %s7402_s19 }
 0x483   :  { %2712 = vrot.lane.b32.xlu0 %v9027_v13, %s7399_s16  ;;  %2856 = vrot.lane.b32.xlu1 %v9034_v57, %s7398_s15 }
 0x487   :  { %3478 = vrot.lane.b32.xlu0 %v9027_v13, %s7397_s14  ;;  %2714 = vrot.lane.b32.xlu1 %v9034_v57, %s7399_s16 }
 0x48b   :  { %2570 = vrot.lane.b32.xlu0 %v9027_v13, %s7400_s17  ;;  %3480 = vrot.lane.b32.xlu1 %v9034_v57, %s7397_s14 }
 0x48f   :  { %2428 = vrot.lane.b32.xlu0 %v9027_v13, %s7401_s18  ;;  %2572 = vrot.lane.b32.xlu1 %v9034_v57, %s7400_s17 }
 0x493   :  { %3336 = vrot.lane.b32.xlu0 %v9027_v13, %s7402_s19  ;;  %2430 = vrot.lane.b32.xlu1 %v9034_v57, %s7401_s18 }
 0x497   :  { %3194 = vrot.lane.b32.xlu0 %v9027_v13, %s7403_s20  ;;  %3338 = vrot.lane.b32.xlu1 %v9034_v57, %s7402_s19 }
 0x49b   :  { %2850 = vrot.lane.b32.xlu0 %v9063_v7, %s7398_s15  ;;  %3196 = vrot.lane.b32.xlu1 %v9034_v57, %s7403_s20 }
 0x49f   :  { %2708 = vrot.lane.b32.xlu0 %v9063_v7, %s7399_s16  ;;  %2852 = vrot.lane.b32.xlu1 %v9070_v14, %s7398_s15 }
 0x4a3   :  { %3474 = vrot.lane.b32.xlu0 %v9063_v7, %s7397_s14  ;;  %2710 = vrot.lane.b32.xlu1 %v9070_v14, %s7399_s16 }
 0x4a7   :  { %2566 = vrot.lane.b32.xlu0 %v9063_v7, %s7400_s17  ;;  %3476 = vrot.lane.b32.xlu1 %v9070_v14, %s7397_s14 }
 0x4ab   :  { %2424 = vrot.lane.b32.xlu0 %v9063_v7, %s7401_s18  ;;  %2568 = vrot.lane.b32.xlu1 %v9070_v14, %s7400_s17 }
 0x4af   :  { %3332 = vrot.lane.b32.xlu0 %v9063_v7, %s7402_s19  ;;  %2426 = vrot.lane.b32.xlu1 %v9070_v14, %s7401_s18 }
 0x4b3   :  { %3190 = vrot.lane.b32.xlu0 %v9063_v7, %s7403_s20  ;;  %3334 = vrot.lane.b32.xlu1 %v9070_v14, %s7402_s19 }
 0x4b7   :  { %2858 = vrot.lane.b32.xlu0 %v9099_v39, %s7398_s15  ;;  %3192 = vrot.lane.b32.xlu1 %v9070_v14, %s7403_s20 }
 0x4bb   :  { %2716 = vrot.lane.b32.xlu0 %v9099_v39, %s7399_s16  ;;  %2860 = vrot.lane.b32.xlu1 %v9106_v2, %s7398_s15 }
 0x4bf   :  { %3482 = vrot.lane.b32.xlu0 %v9099_v39, %s7397_s14  ;;  %2718 = vrot.lane.b32.xlu1 %v9106_v2, %s7399_s16 }
 0x4c3   :  { %2574 = vrot.lane.b32.xlu0 %v9099_v39, %s7400_s17  ;;  %3484 = vrot.lane.b32.xlu1 %v9106_v2, %s7397_s14 }
 0x4c7   :  { %2432 = vrot.lane.b32.xlu0 %v9099_v39, %s7401_s18  ;;  %2576 = vrot.lane.b32.xlu1 %v9106_v2, %s7400_s17 }
 0x4cb   :  { %3340 = vrot.lane.b32.xlu0 %v9099_v39, %s7402_s19  ;;  %2434 = vrot.lane.b32.xlu1 %v9106_v2, %s7401_s18 }
 0x4cf   :  { %3198 = vrot.lane.b32.xlu0 %v9099_v39, %s7403_s20  ;;  %3342 = vrot.lane.b32.xlu1 %v9106_v2, %s7402_s19 }
 0x4d3   :  { %3486 = vrot.lane.b32.xlu0 %v9135_v12, %s7397_s14  ;;  %3200 = vrot.lane.b32.xlu1 %v9106_v2, %s7403_s20 }
 0x4d7   :  { %2862 = vrot.lane.b32.xlu0 %v9135_v12, %s7398_s15  ;;  %3488 = vrot.lane.b32.xlu1 %v9142_v53, %s7397_s14 }
 0x4d9   :  { %v9148_v38 = vpop.permute.xlu0 %2846 }
 0x4db   :  { %2720 = vrot.lane.b32.xlu0 %v9135_v12, %s7399_s16  ;;  %2864 = vrot.lane.b32.xlu1 %v9142_v53, %s7398_s15 }
 0x4dd   :  { %v9154_v50 = vpop.permute.xlu0 %2704  ;;  %v9156_v3 = vpop.permute.xlu1 %2848 }
 0x4df   :  { %2578 = vrot.lane.b32.xlu0 %v9135_v12, %s7400_s17  ;;  %2722 = vrot.lane.b32.xlu1 %v9142_v53, %s7399_s16 }
 0x4e1   :  { %v9163_v52 = vpop.permute.xlu0 %3470  ;;  %v9165_v22 = vpop.permute.xlu1 %2706 }
 0x4e2   :  { %12237 = vst [vmem:[#allocation64_spill] sm:$0xff] %v9163_v52 }
 0x4e3   :  { %3344 = vrot.lane.b32.xlu0 %v9135_v12, %s7402_s19  ;;  %2580 = vrot.lane.b32.xlu1 %v9142_v53, %s7400_s17 }
 0x4e5   :  { %v9172_v62 = vpop.permute.xlu0 %2562  ;;  %v9175_v41 = vpop.permute.xlu1 %3472 }
 0x4e6   :  { %12238 = vst [vmem:[#allocation41_spill] sm:$0xff] %v9172_v62  ;;  %12239 = vst [vmem:[#allocation26_spill] sm:$0xff] %v9175_v41 }
 0x4e7   :  { %2436 = vrot.lane.b32.xlu0 %v9135_v12, %s7401_s18  ;;  %3346 = vrot.lane.b32.xlu1 %v9142_v53, %s7402_s19 }
 0x4e9   :  { %v9183_v19 = vpop.permute.xlu0 %2420  ;;  %v9186_v42 = vpop.permute.xlu1 %2564 }
 0x4ea   :  { %12241 = vst [vmem:[#allocation60_spill] sm:$0xff] %v9183_v19 }
 0x4eb   :  { %2870 = vrot.lane.b32.xlu0 %v9181_v45, %s7398_s15  ;;  %2438 = vrot.lane.b32.xlu1 %v9142_v53, %s7401_s18 }
 0x4ed   :  { %v9192_v6 = vpop.permute.xlu0 %3328  ;;  %v9196_v40 = vpop.permute.xlu1 %2422 }
 0x4ee   :  { %12242 = vst [vmem:[#allocation24_spill] sm:$0xff] %v9192_v6  ;;  %12244 = vst [vmem:[#allocation66_spill] sm:$0xff] %v9196_v40 }
 0x4ef   :  { %2728 = vrot.lane.b32.xlu0 %v9181_v45, %s7399_s16  ;;  %2872 = vrot.lane.b32.xlu1 %v9194_v61, %s7398_s15 }
 0x4f1   :  { %v9203_v1 = vpop.permute.xlu0 %2854  ;;  %v9205_v59 = vpop.permute.xlu1 %3330 }
 0x4f2   :  { %12245 = vst [vmem:[#allocation65_spill] sm:$0xff] %v9205_v59 }
 0x4f3   :  { %2586 = vrot.lane.b32.xlu0 %v9181_v45, %s7400_s17  ;;  %2730 = vrot.lane.b32.xlu1 %v9194_v61, %s7399_s16 }
 0x4f5   :  { %v9212_v33 = vpop.permute.xlu0 %2712  ;;  %v9215_v44 = vpop.permute.xlu1 %2856 }
 0x4f7   :  { %2444 = vrot.lane.b32.xlu0 %v9181_v45, %s7401_s18  ;;  %2588 = vrot.lane.b32.xlu1 %v9194_v61, %s7400_s17 }
 0x4f9   :  { %v9223_v10 = vpop.permute.xlu0 %3478  ;;  %v9226_v47 = vpop.permute.xlu1 %2714 }
 0x4fb   :  { %3490 = vrot.lane.b32.xlu0 %v9221_v34, %s7397_s14  ;;  %2446 = vrot.lane.b32.xlu1 %v9194_v61, %s7401_s18 }
 0x4fd   :  { %v9232_v48 = vpop.permute.xlu0 %2570  ;;  %v9236_v25 = vpop.permute.xlu1 %3480 }
 0x4ff   :  { %2866 = vrot.lane.b32.xlu0 %v9221_v34, %s7398_s15  ;;  %3492 = vrot.lane.b32.xlu1 %v9234_v54, %s7397_s14 }
 0x501   :  { %v9242_v46 = vpop.permute.xlu0 %2428  ;;  %v9244_v16 = vpop.permute.xlu1 %2572 }
 0x502   :  { %12248 = vst [vmem:[#allocation27_spill] sm:$0xff] %v9242_v46 }
 0x503   :  { %2724 = vrot.lane.b32.xlu0 %v9221_v34, %s7399_s16  ;;  %2868 = vrot.lane.b32.xlu1 %v9234_v54, %s7398_s15 }
 0x505   :  { %v9250_v5 = vpop.permute.xlu0 %3336  ;;  %v9252_v49 = vpop.permute.xlu1 %2430 }
 0x506   :  { %12249 = vst [vmem:[#allocation44_spill] sm:$0xff] %v9250_v5  ;;  %12250 = vst [vmem:[#allocation25_spill] sm:$0xff] %v9252_v49 }
 0x507   :  { %2582 = vrot.lane.b32.xlu0 %v9221_v34, %s7400_s17  ;;  %2726 = vrot.lane.b32.xlu1 %v9234_v54, %s7399_s16 }
 0x509   :  { %v9258_v21 = vpop.permute.xlu0 %3194  ;;  %v9260_v8 = vpop.permute.xlu1 %3338 }
 0x50a   :  { %12251 = vst [vmem:[#allocation98_spill] sm:$0xff] %v9258_v21  ;;  %12252 = vst [vmem:[#allocation101_spill] sm:$0xff] %v9260_v8 }
 0x50b   :  { %3348 = vrot.lane.b32.xlu0 %v9221_v34, %s7402_s19  ;;  %2584 = vrot.lane.b32.xlu1 %v9234_v54, %s7400_s17 }
 0x50d   :  { %v9267_v26 = vpop.permute.xlu0 %2850  ;;  %v9269_v27 = vpop.permute.xlu1 %3196 }
 0x50e   :  { %12253 = vst [vmem:[#allocation100_spill] sm:$0xff] %v9267_v26  ;;  %12254 = vst [vmem:[#allocation86_spill] sm:$0xff] %v9269_v27 }
 0x50f   :  { %2440 = vrot.lane.b32.xlu0 %v9221_v34, %s7401_s18  ;;  %3350 = vrot.lane.b32.xlu1 %v9234_v54, %s7402_s19 }
 0x511   :  { %v9276_v55 = vpop.permute.xlu0 %2708  ;;  %v9279_v23 = vpop.permute.xlu1 %2852 }
 0x512   :  { %12255 = vst [vmem:[#allocation67_spill] sm:$0xff] %v9279_v23 }
 0x513   :  { %3206 = vrot.lane.b32.xlu0 %v9221_v34, %s7403_s20  ;;  %2442 = vrot.lane.b32.xlu1 %v9234_v54, %s7401_s18 }
 0x515   :  { %v9287_v24 = vpop.permute.xlu0 %3474  ;;  %v9290_v51 = vpop.permute.xlu1 %2710 }
 0x516   :  { %12257 = vst [vmem:[#allocation69_spill] sm:$0xff] %v9287_v24 }
 0x517   :  { %2874 = vrot.lane.b32.xlu0 %v9285_v30, %s7398_s15  ;;  %3208 = vrot.lane.b32.xlu1 %v9234_v54, %s7403_s20 }
 0x519   :  { %v9296_v9 = vpop.permute.xlu0 %2566  ;;  %v9300_v0 = vpop.permute.xlu1 %3476 }
 0x51a   :  { %12259 = vst [vmem:[#allocation45_spill] sm:$0xff] %v9300_v0 }
 0x51b   :  { %3202 = vrot.lane.b32.xlu0 %v9135_v12, %s7403_s20  ;;  %2876 = vrot.lane.b32.xlu1 %v9298_v63, %s7398_s15 }
 0x51d   :  { %v9306_v20 = vpop.permute.xlu0 %2424  ;;  %v9308_v29 = vpop.permute.xlu1 %2568 }
 0x51e   :  { %12260 = vst [vmem:[#allocation46_spill] sm:$0xff] %v9308_v29 }
 0x51f   :  { %2732 = vrot.lane.b32.xlu0 %v9285_v30, %s7399_s16  ;;  %3204 = vrot.lane.b32.xlu1 %v9142_v53, %s7403_s20 }
 0x521   :  { %v9314_v43 = vpop.permute.xlu0 %3332  ;;  %v9316_v17 = vpop.permute.xlu1 %2426 }
 0x522   :  { %12261 = vst [vmem:[#allocation30_spill] sm:$0xff] %v9314_v43  ;;  %12262 = vst [vmem:[#allocation28_spill] sm:$0xff] %v9316_v17 }
 0x523   :  { %2590 = vrot.lane.b32.xlu0 %v9285_v30, %s7400_s17  ;;  %2734 = vrot.lane.b32.xlu1 %v9298_v63, %s7399_s16 }
 0x525   :  { %v9322_v35 = vpop.permute.xlu0 %3190  ;;  %v9324_v58 = vpop.permute.xlu1 %3334 }
 0x526   :  { %12263 = vst [vmem:[#allocation87_spill] sm:$0xff] %v9322_v35  ;;  %12264 = vst [vmem:[#allocation48_spill] sm:$0xff] %v9324_v58  ;;  %v9351_v35 = vrot.slane %v9337_v56, %v12198_v4 }
 0x527   :  { %2448 = vrot.lane.b32.xlu0 %v9285_v30, %s7401_s18  ;;  %3188 = vrot.lane.b32.xlu1 %v9002_v36, %s7403_s20 }
 0x529   :  { %v9330_v37 = vpop.permute.xlu0 %2858  ;;  %v9332_v11 = vpop.permute.xlu1 %3192 }
 0x52a   :  { %12265 = vst [vmem:[#allocation88_spill] sm:$0xff] %v9330_v37  ;;  %12266 = vst [vmem:[#allocation89_spill] sm:$0xff] %v9332_v11  ;;  %v2888_v32 = vsel %vm772_vm3, %v9267_v26, %v9330_v37 }
 0x52b   :  { %3186 = vrot.lane.b32.xlu0 %v8994_v15, %s7403_s20  ;;  %2592 = vrot.lane.b32.xlu1 %v9298_v63, %s7400_s17  ;;  %v2925_v6 = vmul.f32 %v9351_v35, %v2888_v32 }
 0x52d   :  { %v9347_v21 = vpop.permute.xlu0 %2716  ;;  %v9353_v27 = vpop.permute.xlu1 %2860 }
 0x52e   :  { %v2889_v11 = vsel %vm772_vm3, %v9279_v23, %v9353_v27 }
 0x52f   :  { %3056 = vrot.lane.b32.xlu0 %v9099_v39, %s7404_s0  ;;  %v2929_v59 = vmul.f32 %v9351_v35, %v2889_v11  ;;  %3058 = vrot.lane.b32.xlu1 %v9106_v2, %s7404_s0  ;;  %v9432_v2 = vld [vmem:[%s11719_s7 + $0xc] sm:$0xff] }
 0x530   :  { %12274 = vst [vmem:[#allocation81_spill] sm:$0xff] %v9432_v2 }
 0x531   :  { %v9365_v5 = vpop.permute.xlu0 %3482  ;;  %v9367_v43 = vpop.permute.xlu1 %2718  ;;  %v7229_v8 = vpack.c.bf16 %v2929_v59, %v2925_v6 }
 0x533   :  { %3064 = vrot.lane.b32.xlu0 %v9221_v34, %s7404_s0  ;;  %2450 = vrot.lane.b32.xlu1 %v9298_v63, %s7401_s18 }
 0x534   :  { %4060 = vmatprep.subr.bf16.mxu0 %v7229_v8 }
 0x535   :  { %v9373_v39 = vpop.permute.xlu0 %2574  ;;  %v9375_v32 = vpop.permute.xlu1 %3484 }
 0x537   :  { %3356 = vrot.lane.b32.xlu0 %v9285_v30, %s7402_s19  ;;  %3066 = vrot.lane.b32.xlu1 %v9234_v54, %s7404_s0 }
 0x539   :  { %v9381_v11 = vpop.permute.xlu0 %2432  ;;  %v9383_v6 = vpop.permute.xlu1 %2576 }
 0x53b   :  { %3048 = vrot.lane.b32.xlu0 %v9063_v7, %s7404_s0  ;;  %3050 = vrot.lane.b32.xlu1 %v9070_v14, %s7404_s0 }
 0x53d   :  { %v9389_v59 = vpop.permute.xlu0 %3340  ;;  %v9391_v8 = vpop.permute.xlu1 %2434 }
 0x53e   :  { %12267 = vst [vmem:[#allocation47_spill] sm:$0xff] %v9389_v59 }
 0x53f   :  { %3052 = vrot.lane.b32.xlu0 %v9027_v13, %s7404_s0  ;;  %3054 = vrot.lane.b32.xlu1 %v9034_v57, %s7404_s0 }
 0x541   :  { %v9397_v54 = vpop.permute.xlu0 %3198  ;;  %v9399_v34 = vpop.permute.xlu1 %3342 }
 0x542   :  { %12268 = vst [vmem:[#allocation31_spill] sm:$0xff] %v9397_v54  ;;  %12269 = vst [vmem:[#allocation29_spill] sm:$0xff] %v9399_v34 }
 0x543   :  { %3060 = vrot.lane.b32.xlu0 %v9135_v12, %s7404_s0  ;;  %3062 = vrot.lane.b32.xlu1 %v9142_v53, %s7404_s0 }
 0x545   :  { %v9405_v14 = vpop.permute.xlu0 %3486  ;;  %v9407_v7 = vpop.permute.xlu1 %3200 }
 0x546   :  { %12270 = vst [vmem:[#allocation73_spill] sm:$0xff] %v9405_v14  ;;  %12271 = vst [vmem:[#allocation71_spill] sm:$0xff] %v9407_v7 }
 0x547   :  { %3352 = vrot.lane.b32.xlu0 %v9181_v45, %s7402_s19  ;;  %3354 = vrot.lane.b32.xlu1 %v9194_v61, %s7402_s19 }
 0x549   :  { %v9413_v57 = vpop.permute.xlu0 %2862  ;;  %v9415_v13 = vpop.permute.xlu1 %3488 }
 0x54a   :  { %12272 = vst [vmem:[#allocation90_spill] sm:$0xff] %v9415_v13 }
 0x54b   :  { %3044 = vrot.lane.b32.xlu0 %v8994_v15, %s7404_s0  ;;  %3358 = vrot.lane.b32.xlu1 %v9298_v63, %s7402_s19  ;;  %v9438_v15 = vcombine.high %v9432_v2, %v9432_v2 }
 0x54d   :  { %v9421_v53 = vpop.permute.xlu0 %2720  ;;  %v9423_v12 = vpop.permute.xlu1 %2864  ;;  %4092 = vmatprep.mubr.bf16.mxu0 %v9438_v15 }
 0x54e   :  { %12273 = vst [vmem:[#allocation92_spill] sm:$0xff] %v9421_v53  ;;  %v3507_v53 = vsel %vm1404_vm2, %v9236_v25, %v9415_v13 }
 0x54f   :  { %3214 = vrot.lane.b32.xlu0 %v9285_v30, %s7403_s20  ;;  %3046 = vrot.lane.b32.xlu1 %v9002_v36, %s7404_s0 }
 0x551   :  { %v9434_v54 = vpop.permute.xlu0 %2578  ;;  %v9440_v7 = vpop.permute.xlu1 %2722 }
 0x552   :  { %12275 = vst [vmem:[#allocation76_spill] sm:$0xff] %v9434_v54 }
 0x553   :  { %3210 = vrot.lane.b32.xlu0 %v9181_v45, %s7403_s20  ;;  %3216 = vrot.lane.b32.xlu1 %v9298_v63, %s7403_s20 }
 0x555   :  { %v9447_v36 = vpop.permute.xlu0 %3344  ;;  %v9449_v58 = vpop.permute.xlu1 %2580 }
 0x556   :  { %12276 = vst [vmem:[#allocation49_spill] sm:$0xff] %v9447_v36  ;;  %12277 = vst [vmem:[#allocation32_spill] sm:$0xff] %v9449_v58 }
 0x557   :  { %3072 = vrot.lane.b32.xlu0 %v9285_v30, %s7404_s0  ;;  %3212 = vrot.lane.b32.xlu1 %v9194_v61, %s7403_s20 }
 0x559   :  { %v9455_v2 = vpop.permute.xlu0 %2436  ;;  %v9457_v59 = vpop.permute.xlu1 %3346 }
 0x55a   :  { %12278 = vst [vmem:[#allocation50_spill] sm:$0xff] %v9455_v2  ;;  %12279 = vst [vmem:[#allocation82_spill] sm:$0xff] %v9457_v59  ;;  %v6730_v59 = vld [vmem:[%s11714_s2 + $0x40] sm:$0xff] }
 0x55b   :  { %3068 = vrot.lane.b32.xlu0 %v9181_v45, %s7404_s0  ;;  %3074 = vrot.lane.b32.xlu1 %v9298_v63, %s7404_s0 }
 0x55d   :  { %v9463_v34 = vpop.permute.xlu0 %2870  ;;  %v9465_v36 = vpop.permute.xlu1 %2438 }
 0x55e   :  { %12280 = vst [vmem:[#allocation80_spill] sm:$0xff] %v9463_v34  ;;  %12281 = vst [vmem:[#allocation34_spill] sm:$0xff] %v9465_v36 }
 0x55f   :  { %3498 = vrot.lane.b32.xlu0 %v9285_v30, %s7397_s14  ;;  %3070 = vrot.lane.b32.xlu1 %v9194_v61, %s7404_s0 }
 0x561   :  { %v9471_v58 = vpop.permute.xlu0 %2728  ;;  %v9473_v2 = vpop.permute.xlu1 %2872 }
 0x562   :  { %12282 = vst [vmem:[#allocation95_spill] sm:$0xff] %v9471_v58  ;;  %v6728_v58 = vld [vmem:[%s11714_s2 + $0x30] sm:$0xff] }
 0x563   :  { %3494 = vrot.lane.b32.xlu0 %v9181_v45, %s7397_s14  ;;  %3500 = vrot.lane.b32.xlu1 %v9298_v63, %s7397_s14  ;;  %v6733_v63 = vld [vmem:[%s11715_s3 + $0x40] sm:$0xff] }
 0x565   :  { %v9482_v36 = vpop.permute.xlu0 %2586  ;;  %v9484_v30 = vpop.permute.xlu1 %2730 }
 0x566   :  { %12283 = vst [vmem:[#allocation52_spill] sm:$0xff] %v9482_v36  ;;  %12284 = vst [vmem:[#allocation93_spill] sm:$0xff] %v9484_v30 }
 0x567   :  { %4260 = vperm.xlu0 %7356, %v6730_v59   ;;  %3496 = vrot.lane.b32.xlu1 %v9194_v61, %s7397_s14  ;;  %v6731_v59 = vld [vmem:[%s11715_s3 + $0x30] sm:$0xff]  ;;  %v6729_v61 = vld [vmem:[%s11714_s2 + $0x38] sm:$0xff] }
 0x569   :  { %v9491_v45 = vpop.permute.xlu0 %2444  ;;  %v9496_v54 = vpop.permute.xlu1 %2588 }
 0x56a   :  { %12285 = vst [vmem:[#allocation85_spill] sm:$0xff] %v9491_v45  ;;  %12286 = vst [vmem:[#allocation36_spill] sm:$0xff] %v9496_v54  ;;  %v9509_v45 = vld [vmem:[%s11713_s1 + $0x20] ss:$8 sm:$0xf] }
 0x56b   :  { %4250 = vperm.xlu0 %7356, %v6728_v58   ;;  %4287 = vperm.xlu1 %7357, %v6733_v63   ;;  %12288 = vst [vmem:[#allocation96_spill] sm:$0xff] %v9509_v45  ;;  %v3513_v63 = vsel %vm1404_vm2, %v9300_v0, %v9375_v32  ;;  %v6748_v58 = vld [vmem:[%s11717_s5 + $0x50] sm:$0xff]  ;;  %v3523_v54 = vrot.slane %v9509_v45, %v12197_v31 }
 0x56c   :  { %v3512_v0 = vsel %vm1404_vm2, %v9287_v24, %v9365_v5  ;;  %v3527_v23 = vrot.slane %v9509_v45, %v12198_v4 }
 0x56d   :  { %v9501_v36 = vpop.permute.xlu0 %3490  ;;  %v9511_v30 = vpop.permute.xlu1 %2446  ;;  %v3552_v37 = vmul.f32 %v3523_v54, %v3513_v63  ;;  %v6752_v63 = vld [vmem:[%s11718_s6 + $0x50] sm:$0xff] }
 0x56e   :  { %12287 = vst [vmem:[#allocation94_spill] sm:$0xff] %v9501_v36  ;;  %12289 = vst [vmem:[#allocation91_spill] sm:$0xff] %v9511_v30  ;;  %v3545_v24 = vmul.f32 %v3527_v23, %v3507_v53 }
 0x56f   :  { %4277 = vperm.xlu0 %7356, %v6731_v59   ;;  %4255 = vperm.xlu1 %7357, %v6729_v61   ;;  %v3508_v59 = vsel %vm1404_vm2, %v9365_v5, %v9501_v36  ;;  %v6732_v61 = vld [vmem:[%s11715_s3 + $0x38] sm:$0xff]  ;;  %v3506_v36 = vsel %vm1404_vm2, %v9223_v10, %v9405_v14  ;;  %v3511_v5 = vsel %vm1404_vm2, %v9175_v41, %v9236_v25  ;;  %v6746_v41 = vld [vmem:[%s11717_s5 + $0x40] sm:$0xff] }
 0x570   :  { %v3549_v45 = vmul.f32 %v3527_v23, %v3508_v59  ;;  %v3548_v14 = vmul.f32 %v3523_v54, %v3512_v0  ;;  %v3510_v25 = vsel %vm1404_vm2, %v9163_v52, %v9223_v10  ;;  %v3541_v53 = vmul.f32 %v3527_v23, %v3506_v36  ;;  %v6753_v36 = vld [vmem:[%s11718_s6 + $0x58] sm:$0xff] }
 0x571   :  { %v9530_v30 = vpop.permute.xlu0 %2866  ;;  %v9541_v13 = vpop.permute.xlu1 %3492  ;;  %v3544_v59 = vmul.f32 %v3523_v54, %v3511_v5  ;;  %v6578_v10 = vld [vmem:[%s11713_s1 + $0x1] ss:$8 sm:$0xf] }
 0x572   :  { %12290 = vst [vmem:[#allocation33_spill] sm:$0xff] %v9530_v30  ;;  %12291 = vst [vmem:[#allocation57_spill] sm:$0xff] %v9541_v13  ;;  %v3509_v34 = vsel %vm1404_vm2, %v9375_v32, %v9541_v13  ;;  %v6749_v32 = vld [vmem:[%s11717_s5 + $0x58] sm:$0xff]  ;;  %v7265_v0 = vpack.c.bf16 %v3545_v24, %v3541_v53  ;;  %v3540_v13 = vmul.f32 %v3523_v54, %v3510_v25  ;;  %v6750_v24 = vld [vmem:[%s11718_s6 + $0x40] sm:$0xff] }
 0x573   :  { %4479 = vperm.xlu0 %7356, %v6748_v58   ;;  %v3553_v26 = vmul.f32 %v3527_v23, %v3509_v34  ;;  %4282 = vperm.xlu1 %7357, %v6732_v61   ;;  %v7268_v61 = vpack.c.bf16 %v3552_v37, %v3548_v14  ;;  %v6587_v14 = vld [vmem:[%s11713_s1 + $0x2] ss:$8 sm:$0xf]  ;;  %v2468_v54 = vld [vmem:[%s11713_s1] ss:$8 sm:$0xf] }
 0x574   :  { %v9591_v23 = vld [vmem:[%s11713_s1 + $0x7] ss:$8 sm:$0xf]  ;;  %v9599_v37 = vld [vmem:[%s11719_s7 + $0x14] ss:$0 sps:$4 sm:$0xff]   ;;  %v2761_v5 = vrot.slane %v6587_v14, %v12198_v4  ;;  %v2477_v25 = vrot.slane %v2468_v54, %v12198_v4  ;;  %v9643_v52 = vrot.slane %v6587_v14, %v12197_v31 }
 0x575   :  { %v9558_v30 = vpop.permute.xlu0 %2724  ;;  %v9567_v58 = vpop.permute.xlu1 %2868  ;;  %v7269_v34 = vpack.c.bf16 %v3553_v26, %v3549_v45  ;;  %v7264_v26 = vpack.c.bf16 %v3544_v59, %v3540_v13  ;;  %12293 = vst [vmem:[#allocation97_spill] sm:$0xff] %v9591_v23  ;;  %12294 = vst [vmem:[#allocation37_spill] sm:$0xff] %v9599_v37  ;;  %v9613_v53 = vrot.slane %v9591_v23, %v12197_v31 }
 0x576   :  { %12292 = vst [vmem:[#allocation99_spill] sm:$0xff] %v9558_v30  ;;  %v9620_v59 = vrot.slane %v6587_v14, %v12178_v18 }
 0x577   :  { %4520 = vperm.xlu0 %7356, %v6752_v63   ;;  %4484 = vperm.xlu1 %7357, %v6749_v32   ;;  %v2619_v32 = vrot.slane %v6578_v10, %v12198_v4  ;;  %12296 = vst [vmem:[#allocation11_spill] sm:$0xff] %v9613_v53 }
 0x578   :  { %4113 = vmatprep.subr.bf16.mxu1 %v7269_v34  ;;  %v9617_v34 = vrot.slane %v9337_v56, %v12178_v18 }
 0x579   :  { %4114 = vmatpush1.bf16.msra.mxu1 %v7268_v61  ;;  %v9572_v30 = vpop.permute.xlu0 %2582  ;;  %v9580_v45 = vpop.permute.xlu1 %2726  ;;  %v9623_v61 = vrot.slane %v6578_v10, %v12178_v18 }
 0x57a   :  { %4115 = vmatprep.subr.bf16.mxu1 %v7265_v0  ;;  %v9627_v0 = vrot.slane %v9591_v23, %v12198_v4  ;;  %v9662_v4 = vrot.slane %v6578_v10, %v12206_v60 }
 0x57b   :  { %4469 = vperm.xlu0 %7356, %v6746_v41   ;;  %4525 = vperm.xlu1 %7357, %v6753_v36   ;;  %v6747_v41 = vld [vmem:[%s11717_s5 + $0x48] sm:$0xff]  ;;  %v9632_v36 = vrot.slane %v2468_v54, %v12178_v18  ;;  %v9656_v18 = vrot.slane %v6587_v14, %v12206_v60  ;;  %v9675_v14 = vrot.slane %v2468_v54, %v12197_v31 }
 0x57c   :  { %12297 = vst [vmem:[#allocation13_spill] sm:$0xff] %v9627_v0  ;;  %12301 = vst [vmem:[#allocation51_spill] sm:$0xff] %v9662_v4  ;;  %v2603_v0 = vsel %vm484_vm5, %v9186_v42, %v9244_v16 }
 0x57d   :  { %4116 = vmatpush1.bf16.msra.mxu1 %v7264_v26  ;;  %v9601_v13 = vpop.permute.xlu0 %3348  ;;  %v9607_v63 = vpop.permute.xlu1 %2584  ;;  %12298 = vst [vmem:[#allocation77_spill] sm:$0xff] %v9632_v36  ;;  %v9636_v26 = vrot.slane %v9337_v56, %v12197_v31  ;;  %12303 = vst [vmem:[#allocation6_spill] sm:$0xff] %v9675_v14  ;;  %v2461_v36 = vsel %vm341_vm6, %v9196_v40, %v9252_v49  ;;  %v2602_v14 = vsel %vm484_vm5, %v9172_v62, %v9232_v48 }
 0x57e   :  { %12295 = vst [vmem:[#allocation39_spill] sm:$0xff] %v9601_v13  ;;  %v9678_v13 = vrot.slane %v2468_v54, %v12206_v60  ;;  %v2605_v54 = vsel %vm484_vm5, %v9308_v29, %v9383_v6  ;;  %v2604_v49 = vsel %vm484_vm5, %v9296_v9, %v9373_v39 }
 0x57f   :  { %4510 = vperm.xlu0 %7356, %v6750_v24   ;;  %4474 = vperm.xlu1 %7357, %v6747_v41   ;;  %v9640_v24 = vrot.slane %v9337_v56, %v12206_v60  ;;  %v6751_v41 = vld [vmem:[%s11718_s6 + $0x48] sm:$0xff]  ;;  %v9659_v56 = vrot.slane %v6578_v10, %v12197_v31  ;;  %v2886_v10 = vsel %vm772_vm3, %v9148_v38, %v9203_v1 }
 0x580   :  { %6726 = vmatmul.mubr.msk.bf16.vlgmr.msra.gmra.mxu1 %vm1960_vm7, %v9599_v37  ;;  %v2887_v37 = vsel %vm772_vm3, %v9156_v3, %v9215_v44  ;;  %12304 = vst [vmem:[#allocation9_spill] sm:$0xff] %v9678_v13  ;;  %v2744_v60 = vsel %vm628_vm4, %v9154_v50, %v9212_v33  ;;  %v2460_v13 = vsel %vm341_vm6, %v9183_v19, %v9242_v46 }
 0x581   :  { %v9645_v23 = vpop.permute.xlu0 %2440  ;;  %4174 = vmatprep.mubr.bf16.mxu1 %v9438_v15  ;;  %12300 = vst [vmem:[#allocation17_spill] sm:$0xff] %v9659_v56  ;;  %v9664_v53 = vpop.permute.xlu1 %3350  ;;  %v2745_v15 = vsel %vm628_vm4, %v9165_v22, %v9226_v47  ;;  %v9701_v31 = vmul.f32 %v9351_v35, %v2887_v37  ;;  %v2746_v37 = vsel %vm628_vm4, %v9276_v55, %v9347_v21 }
 0x582   :  { %12299 = vst [vmem:[#allocation14_spill] sm:$0xff] %v9645_v23  ;;  %12302 = vst [vmem:[#allocation53_spill] sm:$0xff] %v9664_v53  ;;  %v2747_v53 = vsel %vm628_vm4, %v9290_v51, %v9367_v43  ;;  %v9715_v23 = vmul.f32 %v2619_v32, %v2603_v0  ;;  %v9728_v19 = vmul.f32 %v9351_v35, %v2886_v10 }
 0x583   :  { %4515 = vperm.xlu1 %7357, %v6751_v41   ;;  %v9713_v41 = vmul.f32 %v2761_v5, %v2745_v15  ;;  %v9732_v15 = vmul.f32 %v2761_v5, %v2747_v53  ;;  %v9734_v0 = vmul.f32 %v2619_v32, %v2605_v54  ;;  %v9736_v46 = vmul.f32 %v2761_v5, %v2744_v60 }
 0x584   :  { %v9738_v56 = vmul.f32 %v2619_v32, %v2602_v14  ;;  %v9740_v29 = vmul.f32 %v2477_v25, %v2460_v13  ;;  %v9746_v4 = vmul.f32 %v2761_v5, %v2746_v37  ;;  %v9748_v35 = vmul.f32 %v2619_v32, %v2604_v49  ;;  %v12313_v32 = vld [vmem:[#allocation80_spill] sm:$0xff] }
 0x585   :  { %v9711_v40 = vpop.permute.xlu0 %3206  ;;  %v9725_v62 = vpop.permute.xlu1 %2442  ;;  %v2463_v53 = vsel %vm341_vm6, %v9316_v17, %v9391_v8  ;;  %v2882_v60 = vsel %vm772_vm3, %v9203_v1, %v9413_v57  ;;  %v7225_v49 = vpack.c.bf16 %v9701_v31, %v9728_v19  ;;  %v2885_v19 = vsel %vm772_vm3, %v9353_v27, %v9567_v58  ;;  %v12314_v1 = vld [vmem:[#allocation88_spill] sm:$0xff] }
 0x586   :  { %12305 = vst [vmem:[#allocation35_spill] sm:$0xff] %v9711_v40  ;;  %12306 = vst [vmem:[#allocation38_spill] sm:$0xff] %v9725_v62  ;;  %v9730_v40 = vmul.f32 %v2477_v25, %v2461_v36  ;;  %v2462_v62 = vsel %vm341_vm6, %v9306_v20, %v9381_v11  ;;  %v2883_v36 = vsel %vm772_vm3, %v9215_v44, %v9423_v12  ;;  %v12311_v44 = vld [vmem:[#allocation100_spill] sm:$0xff] }
 0x587   :  { %12308 = vst [vmem:[#allocation55_spill] sm:$0xff] %v9740_v29  ;;  %v9770_v10 = vmul.f32 %v2477_v25, %v2462_v62  ;;  %v9778_v37 = vmul.f32 %v2477_v25, %v2463_v53  ;;  %v9781_v31 = vmul.f32 %v9617_v34, %v2882_v60  ;;  %v2879_v62 = vsel %vm772_vm3, %v9423_v12, %v9473_v2  ;;  %v12310_v53 = vld [vmem:[#allocation33_spill] sm:$0xff]  ;;  %v12317_v17 = vld [vmem:[#allocation76_spill] sm:$0xff] }
 0x588   :  { %12307 = vst [vmem:[#allocation54_spill] sm:$0xff] %v9730_v40  ;;  %v2922_v14 = vmul.f32 %v9617_v34, %v2883_v36  ;;  %v2741_v25 = vsel %vm628_vm4, %v9226_v47, %v9440_v7  ;;  %v2878_v27 = vsel %vm772_vm3, %v9413_v57, %v12313_v32  ;;  %v2890_v47 = vsel %vm772_vm3, %v12313_v32, %v9148_v38  ;;  %v12315_v38 = vld [vmem:[#allocation67_spill] sm:$0xff] }
 0x589   :  { %v2875_v13 = vpop.permute.xlu0 %2874  ;;  %v9762_v5 = vpop.permute.xlu1 %3208  ;;  %v2891_v36 = vsel %vm772_vm3, %v9473_v2, %v9156_v3  ;;  %v2930_v57 = vmul.f32 %v9617_v34, %v2885_v19 }
 0x58a   :  { %12309 = vst [vmem:[#allocation16_spill] sm:$0xff] %v9762_v5  ;;  %v2880_v60 = vsel %vm772_vm3, %v12310_v53, %v2875_v13  ;;  %v2892_v12 = vsel %vm772_vm3, %v2875_v13, %v12311_v44  ;;  %v2884_v13 = vsel %vm772_vm3, %v12314_v1, %v12310_v53  ;;  %v12316_v53 = vld [vmem:[#allocation92_spill] sm:$0xff]  ;;  %v7226_v19 = vpack.c.bf16 %v2922_v14, %v9781_v31 }
 0x58b   :  { %v2924_v2 = vmul.f32 %v9636_v26, %v2892_v12  ;;  %v2927_v3 = vmul.f32 %v9640_v24, %v2880_v60  ;;  %v2919_v12 = vmul.f32 %v9640_v24, %v2878_v27  ;;  %v2920_v60 = vmul.f32 %v9636_v26, %v2891_v36 }
 0x58c   :  { %v9849_v14 = vmul.f32 %v9620_v59, %v2741_v25 }
 0x58d   :  { %v9802_v54 = vpop.permute.xlu0 %3202  ;;  %v2877_v44 = vpop.permute.xlu1 %2876 }
 0x58e   :  { %12312 = vst [vmem:[#allocation18_spill] sm:$0xff] %v9802_v54  ;;  %v2923_v54 = vmul.f32 %v9640_v24, %v2879_v62  ;;  %v2881_v5 = vsel %vm772_vm3, %v9567_v58, %v2877_v44  ;;  %v2893_v32 = vsel %vm772_vm3, %v2877_v44, %v12315_v38  ;;  %v2740_v62 = vsel %vm628_vm4, %v9212_v33, %v12316_v53 }
 0x58f   :  { %v2928_v29 = vmul.f32 %v9636_v26, %v2893_v32  ;;  %v2931_v1 = vmul.f32 %v9640_v24, %v2881_v5  ;;  %v2926_v58 = vmul.f32 %v9617_v34, %v2884_v13  ;;  %v7205_v44 = vpack.c.bf16 %v9778_v37, %v9770_v10  ;;  %v12318_v13 = vld [vmem:[#allocation93_spill] sm:$0xff] }
 0x590   :  { %v2598_v33 = vsel %vm484_vm5, %v9232_v48, %v12317_v17  ;;  %v2916_v34 = vmul.f32 %v9636_v26, %v2890_v47  ;;  %v2737_v24 = vsel %vm628_vm4, %v9440_v7, %v12318_v13  ;;  %v7227_v27 = vpack.c.bf16 %v2923_v54, %v2919_v12  ;;  %v12319_v48 = vld [vmem:[#allocation95_spill] sm:$0xff]  ;;  %v12321_v12 = vld [vmem:[#allocation32_spill] sm:$0xff] }
 0x591   :  { %v2733_v40 = vpop.permute.xlu0 %2732  ;;  %v7228_v38 = vpack.c.bf16 %v2928_v29, %v2924_v2  ;;  %v9842_v32 = vpop.permute.xlu1 %3204  ;;  %v7231_v5 = vpack.c.bf16 %v2931_v1, %v2927_v3  ;;  %v7230_v31 = vpack.c.bf16 %v2930_v57, %v2926_v58  ;;  %v2743_v29 = vsel %vm628_vm4, %v9367_v43, %v9580_v45  ;;  %v12320_v26 = vld [vmem:[#allocation99_spill] sm:$0xff] }
 0x592   :  { %v2736_v25 = vsel %vm628_vm4, %v12316_v53, %v12319_v48  ;;  %v2738_v47 = vsel %vm628_vm4, %v12320_v26, %v2733_v40  ;;  %v2750_v7 = vsel %vm628_vm4, %v2733_v40, %v9276_v55  ;;  %v2748_v43 = vsel %vm628_vm4, %v12319_v48, %v9154_v50  ;;  %v12325_v48 = vld [vmem:[#allocation52_spill] sm:$0xff] }
 0x593   :  { %4061 = vmatpush1.bf16.msra.mxu0 %v7228_v38  ;;  %4142 = vmatprep.subr.bf16.mxu1 %v7231_v5  ;;  %v7224_v54 = vpack.c.bf16 %v2920_v60, %v2916_v34  ;;  %v2749_v57 = vsel %vm628_vm4, %v12318_v13, %v9165_v22  ;;  %v2742_v2 = vsel %vm628_vm4, %v9347_v21, %v12320_v26 }
 0x594   :  { %4062 = vmatprep.subr.bf16.mxu0 %v7225_v49  ;;  %4143 = vmatpush1.bf16.msra.mxu1 %v7230_v31  ;;  %v2781_v55 = vmul.f32 %v9656_v18, %v2737_v24  ;;  %v2788_v49 = vmul.f32 %v9620_v59, %v2743_v29  ;;  %v2782_v22 = vmul.f32 %v9643_v52, %v2750_v7 }
 0x595   :  { %v2591_v36 = vpop.permute.xlu0 %2590  ;;  %4144 = vmatprep.subr.bf16.mxu1 %v7227_v27  ;;  %v2735_v40 = vpop.permute.xlu1 %2734  ;;  %v2785_v1 = vmul.f32 %v9656_v18, %v2738_v47  ;;  %v2776_v58 = vmul.f32 %v9620_v59, %v2740_v62  ;;  %v2784_v60 = vmul.f32 %v9620_v59, %v2742_v2  ;;  %v2777_v5 = vmul.f32 %v9656_v18, %v2736_v25 }
 0x596   :  { %v2739_v50 = vsel %vm628_vm4, %v9580_v45, %v2735_v40  ;;  %v2751_v3 = vsel %vm628_vm4, %v2735_v40, %v9290_v51  ;;  %v2599_v45 = vsel %vm484_vm5, %v9244_v16, %v12321_v12  ;;  %v12322_v51 = vpack.c.bf16 %v9732_v15, %v9746_v4  ;;  %v12323_v4 = vld [vmem:[#allocation36_spill] sm:$0xff] }
 0x597   :  { %v2786_v21 = vmul.f32 %v9643_v52, %v2751_v3  ;;  %v2789_v53 = vmul.f32 %v9656_v18, %v2739_v50  ;;  %4063 = vmatpush1.bf16.msra.mxu0 %v7224_v54  ;;  %v2778_v34 = vmul.f32 %v9643_v52, %v2749_v57  ;;  %v9908_v24 = vmul.f32 %v9623_v61, %v2598_v33 }
 0x598   :  { %4064 = vmatprep.subr.bf16.mxu0 %v12322_v51  ;;  %4145 = vmatpush1.bf16.msra.mxu1 %v7226_v19  ;;  %v7218_v16 = vpack.c.bf16 %v9849_v14, %v2776_v58  ;;  %v2774_v59 = vmul.f32 %v9643_v52, %v2748_v43  ;;  %v7222_v29 = vpack.c.bf16 %v2788_v49, %v2784_v60  ;;  %v12327_v43 = vld [vmem:[#allocation46_spill] sm:$0xff]  ;;  %v12334_v51 = vld [vmem:[#allocation25_spill] sm:$0xff] }
 0x599   :  { %v2449_v38 = vpop.permute.xlu0 %2448  ;;  %v7220_v31 = vpack.c.bf16 %v2786_v21, %v2782_v22  ;;  %v9905_v13 = vpop.permute.xlu1 %3188  ;;  %v7223_v62 = vpack.c.bf16 %v2789_v53, %v2785_v1  ;;  %v2595_v15 = vsel %vm484_vm5, %v12321_v12, %v12323_v4  ;;  %v2601_v18 = vsel %vm484_vm5, %v9383_v6, %v9607_v63  ;;  %v12331_v12 = vld [vmem:[#allocation50_spill] sm:$0xff] }
 0x59a   :  { %v7219_v19 = vpack.c.bf16 %v2781_v55, %v2777_v5  ;;  %v9921_v33 = vmul.f32 %v9623_v61, %v2599_v45  ;;  %v2596_v52 = vsel %vm484_vm5, %v9572_v30, %v2591_v36  ;;  %v2608_v14 = vsel %vm484_vm5, %v2591_v36, %v9296_v9  ;;  %v12329_v55 = vld [vmem:[#allocation41_spill] sm:$0xff]  ;;  %v12332_v45 = vld [vmem:[#allocation27_spill] sm:$0xff]  ;;  %v12333_v60 = vld [vmem:[#allocation34_spill] sm:$0xff] }
 0x59b   :  { %4065 = vmatpush1.bf16.msra.mxu0 %v7220_v31  ;;  %4146 = vmatprep.subr.bf16.mxu1 %v7223_v62  ;;  %v12324_v27 = vpack.c.bf16 %v9713_v41, %v9736_v46  ;;  %v2594_v25 = vsel %vm484_vm5, %v12317_v17, %v12325_v48  ;;  %v7216_v26 = vpack.c.bf16 %v2778_v34, %v2774_v59  ;;  %v12326_v41 = vld [vmem:[#allocation51_spill] sm:$0xff]  ;;  %v12336_v62 = vld [vmem:[#allocation38_spill] sm:$0xff]  ;;  %v12337_v59 = vld [vmem:[#allocation85_spill] sm:$0xff] }
 0x59c   :  { %4147 = vmatpush1.bf16.msra.mxu1 %v7222_v29  ;;  %v2607_v47 = vsel %vm484_vm5, %v12323_v4, %v9186_v42  ;;  %v2600_v46 = vsel %vm484_vm5, %v9373_v39, %v9572_v30  ;;  %v2639_v7 = vmul.f32 %v12326_v41, %v2595_v15  ;;  %v2646_v36 = vmul.f32 %v9623_v61, %v2601_v18  ;;  %v12328_v42 = vld [vmem:[#allocation17_spill] sm:$0xff]  ;;  %v12338_v4 = vld [vmem:[#allocation14_spill] sm:$0xff] }
 0x59d   :  { %4066 = vmatprep.subr.bf16.mxu0 %v12324_v27  ;;  %v9932_v6 = vpop.permute.xlu0 %3186  ;;  %4148 = vmatprep.subr.bf16.mxu1 %v7219_v19  ;;  %v2593_v9 = vpop.permute.xlu1 %2592  ;;  %v2640_v57 = vmul.f32 %v12328_v42, %v2608_v14  ;;  %v2643_v2 = vmul.f32 %v12326_v41, %v2596_v52  ;;  %v7210_v40 = vpack.c.bf16 %v9921_v33, %v9908_v24  ;;  %v12340_v52 = vld [vmem:[#allocation66_spill] sm:$0xff]  ;;  %v12341_v27 = vld [vmem:[#allocation9_spill] sm:$0xff] }
 0x59e   :  { %v2597_v17 = vsel %vm484_vm5, %v9607_v63, %v2593_v9  ;;  %v2609_v54 = vsel %vm484_vm5, %v2593_v9, %v12327_v43  ;;  %v2606_v63 = vsel %vm484_vm5, %v12325_v48, %v12329_v55  ;;  %v2642_v49 = vmul.f32 %v9623_v61, %v2600_v46  ;;  %v12345_v9 = vld [vmem:[#allocation28_spill] sm:$0xff]  ;;  %v12348_v55 = vld [vmem:[#allocation39_spill] sm:$0xff] }
 0x59f   :  { %v2644_v39 = vmul.f32 %v12328_v42, %v2609_v54  ;;  %v2647_v30 = vmul.f32 %v12326_v41, %v2597_v17  ;;  %4067 = vmatpush1.bf16.msra.mxu0 %v7216_v26  ;;  %v12330_v50 = vpack.c.bf16 %v9734_v0, %v9748_v35  ;;  %v2635_v22 = vmul.f32 %v12326_v41, %v2594_v25  ;;  %v12335_v35 = vld [vmem:[#allocation91_spill] sm:$0xff]  ;;  %v12344_v26 = vld [vmem:[#allocation77_spill] sm:$0xff]  ;;  %v12347_v54 = vld [vmem:[#allocation60_spill] sm:$0xff] }
 0x5a0   :  { %4149 = vmatpush1.bf16.msra.mxu1 %v7218_v16  ;;  %v2636_v1 = vmul.f32 %v12328_v42, %v2607_v47  ;;  %v2456_v61 = vsel %vm341_vm6, %v12332_v45, %v12331_v12  ;;  %v2457_v0 = vsel %vm341_vm6, %v12334_v51, %v12333_v60  ;;  %v2453_v5 = vsel %vm341_vm6, %v12333_v60, %v12335_v35  ;;  %v12353_v45 = vld [vmem:[#allocation101_spill] sm:$0xff] }
 0x5a1   :  { %4068 = vmatprep.subr.bf16.mxu0 %v12330_v50  ;;  %v9968_v3 = vpop.permute.xlu0 %3056  ;;  %v7212_v21 = vpack.c.bf16 %v2644_v39, %v2640_v57  ;;  %v9972_v53 = vpop.permute.xlu1 %3058  ;;  %v7215_v58 = vpack.c.bf16 %v2647_v30, %v2643_v2  ;;  %v7214_v34 = vpack.c.bf16 %v2646_v36, %v2642_v49  ;;  %v2632_v31 = vmul.f32 %v12328_v42, %v2606_v63  ;;  %v12349_v63 = vld [vmem:[#allocation47_spill] sm:$0xff] }
 0x5a2   :  { %v2459_v24 = vsel %vm341_vm6, %v9391_v8, %v12336_v62  ;;  %v7211_v16 = vpack.c.bf16 %v2639_v7, %v2635_v22  ;;  %v2452_v29 = vsel %vm341_vm6, %v12331_v12, %v12337_v59  ;;  %v2454_v15 = vsel %vm341_vm6, %v12338_v4, %v2449_v38  ;;  %v12346_v7 = vld [vmem:[#allocation6_spill] sm:$0xff] }
 0x5a3   :  { %4069 = vmatpush1.bf16.msra.mxu0 %v7212_v21  ;;  %4150 = vmatprep.subr.bf16.mxu1 %v7215_v58  ;;  %v2466_v18 = vsel %vm341_vm6, %v2449_v38, %v9306_v20  ;;  %v12339_v19 = vpack.c.bf16 %v9715_v23, %v9738_v56  ;;  %v7208_v33 = vpack.c.bf16 %v2636_v1, %v2632_v31  ;;  %v12342_v23 = vld [vmem:[#allocation53_spill] sm:$0xff]  ;;  %v12350_v21 = vld [vmem:[#allocation48_spill] sm:$0xff]  ;;  %v12352_v12 = vld [vmem:[#allocation82_spill] sm:$0xff] }
 0x5a4   :  { %4151 = vmatpush1.bf16.msra.mxu1 %v7214_v34  ;;  %v2465_v14 = vsel %vm341_vm6, %v12335_v35, %v12340_v52  ;;  %v2497_v48 = vmul.f32 %v12341_v27, %v2453_v5  ;;  %v2458_v20 = vsel %vm341_vm6, %v9381_v11, %v12338_v4  ;;  %v12343_v56 = vld [vmem:[#allocation29_spill] sm:$0xff]  ;;  %v2504_v47 = vmul.f32 %v12344_v26, %v2459_v24  ;;  %v12354_v5 = vld [vmem:[#allocation30_spill] sm:$0xff]  ;;  %v12356_v24 = vld [vmem:[#allocation55_spill] sm:$0xff] }
 0x5a5   :  { %4070 = vmatprep.subr.bf16.mxu0 %v12339_v19  ;;  %v10004_v8 = vpop.permute.xlu0 %3064  ;;  %4152 = vmatprep.subr.bf16.mxu1 %v7211_v16  ;;  %v2451_v38 = vpop.permute.xlu1 %2450  ;;  %v3367_v25 = vsel %vm1260_vm8, %v12343_v56, %v12342_v23  ;;  %v2498_v36 = vmul.f32 %v12346_v7, %v2466_v18  ;;  %v2501_v11 = vmul.f32 %v12341_v27, %v2454_v15  ;;  %v12359_v15 = vld [vmem:[#allocation49_spill] sm:$0xff]  ;;  %v12360_v18 = vld [vmem:[#allocation44_spill] sm:$0xff] }
 0x5a6   :  { %v2455_v46 = vsel %vm341_vm6, %v12336_v62, %v2451_v38  ;;  %v2467_v41 = vsel %vm341_vm6, %v2451_v38, %v12345_v9  ;;  %v2464_v42 = vsel %vm341_vm6, %v12337_v59, %v12347_v54  ;;  %v2493_v57 = vmul.f32 %v12341_v27, %v2452_v29  ;;  %v12355_v62 = vld [vmem:[#allocation54_spill] sm:$0xff]  ;;  %v12358_v29 = vld [vmem:[#allocation11_spill] sm:$0xff]  ;;  %v12366_v54 = vld [vmem:[#allocation89_spill] sm:$0xff] }
 0x5a7   :  { %v2502_v17 = vmul.f32 %v12346_v7, %v2467_v41  ;;  %v2505_v43 = vmul.f32 %v12341_v27, %v2455_v46  ;;  %4071 = vmatpush1.bf16.msra.mxu0 %v7208_v33  ;;  %v2500_v2 = vmul.f32 %v12344_v26, %v2458_v20  ;;  %v2494_v30 = vmul.f32 %v12346_v7, %v2465_v14  ;;  %v12364_v46 = vld [vmem:[#allocation24_spill] sm:$0xff] }
 0x5a8   :  { %4072 = vmatprep.subr.bf16.mxu0 %v7205_v44  ;;  %4153 = vmatpush1.bf16.msra.mxu1 %v7210_v40  ;;  %v3366_v49 = vsel %vm1260_vm8, %v12349_v63, %v12348_v55  ;;  %v3371_v10 = vsel %vm1260_vm8, %v12350_v21, %v12343_v56  ;;  %v2496_v37 = vmul.f32 %v12344_v26, %v2457_v0  ;;  %v12351_v44 = vld [vmem:[#allocation13_spill] sm:$0xff] }
 0x5a9   :  { %v10039_v39 = vpop.permute.xlu0 %3356  ;;  %v7204_v50 = vpack.c.bf16 %v2502_v17, %v2498_v36  ;;  %v10046_v22 = vpop.permute.xlu1 %3066  ;;  %v7207_v1 = vpack.c.bf16 %v2505_v43, %v2501_v11  ;;  %v3411_v40 = vmul.f32 %v12351_v44, %v3367_v25  ;;  %v7206_v58 = vpack.c.bf16 %v2504_v47, %v2500_v2  ;;  %v10086_v56 = vld [vmem:[%s11713_s1 + $0x6] ss:$8 sm:$0xf] }
 0x5aa   :  { %v3365_v60 = vsel %vm1260_vm8, %v12353_v45, %v12352_v12  ;;  %v2490_v51 = vmul.f32 %v12346_v7, %v2464_v42  ;;  %v7203_v35 = vpack.c.bf16 %v2497_v48, %v2493_v57  ;;  %v3370_v34 = vsel %vm1260_vm8, %v12354_v5, %v12349_v63  ;;  %v12362_v25 = vld [vmem:[#allocation16_spill] sm:$0xff]  ;;  %v12365_v7 = vld [vmem:[#allocation75_spill] sm:$0xff] }
 0x5ab   :  { %4073 = vmatpush1.bf16.msra.mxu0 %v7204_v50  ;;  %4154 = vmatprep.subr.bf16.mxu1 %v7207_v1  ;;  %v2492_v0 = vmul.f32 %v12344_v26, %v2456_v61  ;;  %v3407_v31 = vmul.f32 %v12351_v44, %v3366_v49  ;;  %v12357_v16 = vpack.c.bf16 %v12355_v62, %v12356_v24  ;;  %v12361_v61 = vld [vmem:[#allocation65_spill] sm:$0xff]  ;;  %v12363_v26 = vld [vmem:[#allocation71_spill] sm:$0xff]  ;;  %v12369_v49 = vld [vmem:[#allocation74_spill] sm:$0xff] }
 0x5ac   :  { %4155 = vmatpush1.bf16.msra.mxu1 %v7206_v58  ;;  %v3410_v4 = vmul.f32 %v12358_v29, %v3371_v10  ;;  %v3364_v19 = vsel %vm1260_vm8, %v12360_v18, %v12359_v15  ;;  %v7200_v33 = vpack.c.bf16 %v2494_v30, %v2490_v51  ;;  %v3369_v14 = vsel %vm1260_vm8, %v12361_v61, %v12353_v45  ;;  %v12367_v57 = vld [vmem:[#allocation35_spill] sm:$0xff]  ;;  %v12370_v10 = vld [vmem:[#allocation86_spill] sm:$0xff] }
 0x5ad   :  { %4074 = vmatprep.subr.bf16.mxu0 %v12357_v16  ;;  %v10068_v59 = vpop.permute.xlu0 %3048  ;;  %4156 = vmatprep.subr.bf16.mxu1 %v7203_v35  ;;  %v10075_v52 = vpop.permute.xlu1 %3050  ;;  %v3403_v27 = vmul.f32 %v12351_v44, %v3365_v60  ;;  %v7202_v48 = vpack.c.bf16 %v2496_v37, %v2492_v0  ;;  %v7261_v20 = vpack.c.bf16 %v3411_v40, %v3407_v31  ;;  %v12368_v2 = vld [vmem:[#allocation31_spill] sm:$0xff]  ;;  %v12373_v0 = vld [vmem:[#allocation98_spill] sm:$0xff] }
 0x5ae   :  { %v3406_v38 = vmul.f32 %v12358_v29, %v3370_v34  ;;  %v3225_v47 = vsel %vm1116_vm9, %v12363_v26, %v12362_v25  ;;  %v3368_v9 = vsel %vm1260_vm8, %v12364_v46, %v12360_v18  ;;  %v3399_v41 = vmul.f32 %v12351_v44, %v3364_v19  ;;  %v12371_v58 = vld [vmem:[#allocation87_spill] sm:$0xff]  ;;  %v12372_v34 = vld [vmem:[#allocation18_spill] sm:$0xff] }
 0x5af   :  { %4075 = vmatpush1.bf16.msra.mxu0 %v7200_v33  ;;  %v3243_v36 = vrot.slane %v10086_v56, %v12365_v7  ;;  %v3402_v17 = vmul.f32 %v12358_v29, %v3369_v14  ;;  %v3229_v42 = vsel %vm1116_vm9, %v12366_v54, %v12363_v26  ;;  %v3224_v30 = vsel %vm1116_vm9, %v12368_v2, %v12367_v57  ;;  %v10126_v60 = vld [vmem:[%s11713_s1 + $0x5] ss:$8 sm:$0xf] }
 0x5b0   :  { %4076 = vmatprep.subr.bf16.mxu0 %v7261_v20  ;;  %4157 = vmatpush1.bf16.msra.mxu1 %v7202_v48  ;;  %v7260_v43 = vpack.c.bf16 %v3410_v4, %v3406_v38  ;;  %v3239_v50 = vrot.slane %v10086_v56, %v12369_v49  ;;  %v3223_v37 = vsel %vm1116_vm9, %v12370_v10, %v9842_v32 }
 0x5b1   :  { %v10099_v11 = vpop.permute.xlu0 %3052  ;;  %v10110_v63 = vpop.permute.xlu1 %3054  ;;  %v3269_v1 = vmul.f32 %v3243_v36, %v3225_v47  ;;  %v7257_v44 = vpack.c.bf16 %v3403_v27, %v3399_v41  ;;  %v3398_v40 = vmul.f32 %v12358_v29, %v3368_v9  ;;  %v3228_v45 = vsel %vm1116_vm9, %v12371_v58, %v12368_v2  ;;  %v12374_v47 = vld [vmem:[#allocation79_spill] sm:$0xff]  ;;  %v12375_v9 = vld [vmem:[#allocation97_spill] sm:$0xff] }
 0x5b2   :  { %v3268_v51 = vmul.f32 %v3239_v50, %v3229_v42  ;;  %v3265_v35 = vmul.f32 %v3243_v36, %v3224_v30  ;;  %v3222_v31 = vsel %vm1116_vm9, %v12373_v0, %v12372_v34  ;;  %v3226_v62 = vsel %vm1116_vm9, %v9932_v6, %v12373_v0 }
 0x5b3   :  { %4077 = vmatpush2.bf16.msra.mxu0 %v7260_v43  ;;  %v7256_v16 = vpack.c.bf16 %v3402_v17, %v3398_v40  ;;  %v3261_v29 = vmul.f32 %v3243_v36, %v3223_v37  ;;  %v3083_v4 = vsel %vm972_vm10, %v9972_v53, %v10046_v22  ;;  %v3264_v19 = vmul.f32 %v3239_v50, %v3228_v45  ;;  %v12376_v45 = vld [vmem:[#allocation78_spill] sm:$0xff] }
 0x5b4   :  { %4078 = vmatprep.subr.bf16.mxu0 %v7257_v44  ;;  %v3227_v33 = vsel %vm1116_vm9, %v9905_v13, %v12370_v10  ;;  %v3101_v14 = vrot.slane %v10126_v60, %v12365_v7  ;;  %v7253_v27 = vpack.c.bf16 %v3269_v1, %v3265_v35  ;;  %v3257_v48 = vmul.f32 %v3243_v36, %v3222_v31 }
 0x5b5   :  { %v10136_v24 = vpop.permute.xlu0 %3060  ;;  %v10142_v18 = vpop.permute.xlu1 %3062  ;;  %v3256_v20 = vmul.f32 %v3239_v50, %v3226_v62  ;;  %v3082_v38 = vsel %vm972_vm10, %v9968_v3, %v10004_v8  ;;  %v7252_v26 = vpack.c.bf16 %v3268_v51, %v3264_v19  ;;  %v3389_v41 = vrot.slane %v12375_v9, %v12374_v47 }
 0x5b6   :  { %v3127_v17 = vmul.f32 %v3101_v14, %v3083_v4  ;;  %v3097_v43 = vrot.slane %v10126_v60, %v12369_v49  ;;  %v3260_v2 = vmul.f32 %v3239_v50, %v3227_v33  ;;  %v3086_v36 = vsel %vm972_vm10, %v10068_v59, %v9968_v3 }
 0x5b7   :  { %4079 = vmatpush2.bf16.msra.mxu0 %v7256_v16  ;;  %v3087_v30 = vsel %vm972_vm10, %v10075_v52, %v9972_v53  ;;  %v7249_v10 = vpack.c.bf16 %v3261_v29, %v3257_v48  ;;  %v3123_v37 = vmul.f32 %v3101_v14, %v3082_v38  ;;  %v3080_v44 = vsel %vm972_vm10, %v10099_v11, %v10136_v24 }
 0x5b8   :  { %4080 = vmatprep.subr.bf16.mxu0 %v7253_v27  ;;  %v3081_v50 = vsel %vm972_vm10, %v10110_v63, %v10142_v18  ;;  %v7248_v40 = vpack.c.bf16 %v3260_v2, %v3256_v20  ;;  %v3393_v53 = vrot.slane %v12375_v9, %v12376_v45  ;;  %v3362_v51 = vsel %vm1260_vm8, %v12348_v55, %v10039_v39 }
 0x5b9   :  { %v3353_v42 = vpop.permute.xlu0 %3352  ;;  %v3355_v1 = vpop.permute.xlu1 %3354  ;;  %v3374_v0 = vsel %vm1260_vm8, %v10039_v39, %v12354_v5  ;;  %v3126_v31 = vmul.f32 %v3097_v43, %v3087_v30  ;;  %v7245_v16 = vpack.c.bf16 %v3127_v17, %v3123_v37  ;;  %v3115_v29 = vmul.f32 %v3101_v14, %v3080_v44 }
 0x5ba   :  { %v3372_v3 = vsel %vm1260_vm8, %v3353_v42, %v12364_v46  ;;  %v3373_v35 = vsel %vm1260_vm8, %v3355_v1, %v12361_v61  ;;  %v3122_v46 = vmul.f32 %v3097_v43, %v3086_v36  ;;  %v3119_v4 = vmul.f32 %v3101_v14, %v3081_v50 }
 0x5bb   :  { %4081 = vmatpush2.bf16.msra.mxu0 %v7252_v26  ;;  %v3360_v55 = vsel %vm1260_vm8, %v12359_v15, %v3353_v42  ;;  %v3401_v19 = vmul.f32 %v3393_v53, %v3372_v3  ;;  %v3361_v33 = vsel %vm1260_vm8, %v12352_v12, %v3355_v1  ;;  %v3405_v27 = vmul.f32 %v3393_v53, %v3373_v35 }
 0x5bc   :  { %4082 = vmatprep.subr.bf16.mxu0 %v7249_v10  ;;  %v3408_v14 = vmul.f32 %v3389_v41, %v3362_v51  ;;  %v3409_v48 = vmul.f32 %v3393_v53, %v3374_v0  ;;  %v7244_v15 = vpack.c.bf16 %v3126_v31, %v3122_v46  ;;  %v3247_v26 = vrot.slane %v10086_v56, %v12374_v47 }
 0x5bd   :  { %v10190_v62 = vpop.permute.xlu0 %3044  ;;  %v3359_v61 = vpop.permute.xlu1 %3358  ;;  %v3400_v9 = vmul.f32 %v3389_v41, %v3360_v55  ;;  %v3404_v17 = vmul.f32 %v3389_v41, %v3361_v33  ;;  %v3251_v36 = vrot.slane %v10086_v56, %v12376_v45  ;;  %v7259_v1 = vpack.c.bf16 %v3405_v27, %v3401_v19  ;;  %v12381_v19 = vld [vmem:[#allocation40_spill] sm:$0xff] }
 0x5be   :  { %v3363_v39 = vsel %vm1260_vm8, %v12342_v23, %v3359_v61  ;;  %v3375_v5 = vsel %vm1260_vm8, %v3359_v61, %v12350_v21  ;;  %v3084_v12 = vsel %vm972_vm10, %v10190_v62, %v10099_v11  ;;  %v7241_v11 = vpack.c.bf16 %v3119_v4, %v3115_v29  ;;  %v12379_v4 = vld [vmem:[#allocation23_spill] sm:$0xff]  ;;  %v12382_v61 = vld [vmem:[#allocation22_spill] sm:$0xff] }
 0x5bf   :  { %v3412_v20 = vmul.f32 %v3389_v41, %v3363_v39  ;;  %v3413_v38 = vmul.f32 %v3393_v53, %v3375_v5  ;;  %4083 = vmatpush2.bf16.msra.mxu0 %v7248_v40  ;;  %v3114_v10 = vmul.f32 %v3097_v43, %v3084_v12  ;;  %v7258_v50 = vpack.c.bf16 %v3404_v17, %v3400_v9  ;;  %v12377_v40 = vld [vmem:[#allocation84_spill] sm:$0xff]  ;;  %v12378_v53 = vld [vmem:[#allocation58_spill] sm:$0xff] }
 0x5c0   :  { %4084 = vmatprep.subr.bf16.mxu0 %v7245_v16  ;;  %v7237_v51 = vpack.c.bf16 %v12378_v53, %v12377_v40  ;;  %v12383_v17 = vld [vmem:[#allocation56_spill] sm:$0xff] }
 0x5c1   :  { %v3215_v23 = vpop.permute.xlu0 %3214  ;;  %v7262_v42 = vpack.c.bf16 %v3412_v20, %v3408_v14  ;;  %v10210_v21 = vpop.permute.xlu1 %3046  ;;  %v7263_v2 = vpack.c.bf16 %v3413_v38, %v3409_v48 }
 0x5c2   :  { %v3085_v30 = vsel %vm972_vm10, %v10210_v21, %v10110_v63  ;;  %v3220_v37 = vsel %vm1116_vm9, %v12367_v57, %v3215_v23  ;;  %v3232_v44 = vsel %vm1116_vm9, %v3215_v23, %v12371_v58 }
 0x5c3   :  { %v3118_v41 = vmul.f32 %v3097_v43, %v3085_v30  ;;  %4085 = vmatpush2.bf16.msra.mxu0 %v7244_v15  ;;  %4158 = vmatprep.subr.bf16.mxu1 %v7263_v2  ;;  %v3266_v35 = vmul.f32 %v3247_v26, %v3220_v37  ;;  %v3267_v0 = vmul.f32 %v3251_v36, %v3232_v44  ;;  %v12385_v30 = vld [vmem:[#allocation81_spill] sm:$0xff] }
 0x5c4   :  { %4086 = vmatprep.subr.bf16.mxu0 %v7241_v11  ;;  %4159 = vmatpush2.bf16.msra.mxu1 %v7262_v42  ;;  %v12384_v42 = vld [vmem:[#allocation59_spill] sm:$0xff] }
 0x5c5   :  { %v3211_v56 = vpop.permute.xlu0 %3210  ;;  %v7240_v3 = vpack.c.bf16 %v3118_v41, %v3114_v10  ;;  %4160 = vmatprep.subr.bf16.mxu1 %v7259_v1  ;;  %v3217_v63 = vpop.permute.xlu1 %3216 }
 0x5c6   :  { %v3218_v57 = vsel %vm1116_vm9, %v12372_v34, %v3211_v56  ;;  %v3221_v43 = vsel %vm1116_vm9, %v12362_v25, %v3217_v63  ;;  %v3233_v58 = vsel %vm1116_vm9, %v3217_v63, %v12366_v54  ;;  %v3230_v46 = vsel %vm1116_vm9, %v3211_v56, %v9932_v6  ;;  %v12380_v25 = vld [vmem:[#allocation83_spill] sm:$0xff] }
 0x5c7   :  { %v3270_v31 = vmul.f32 %v3247_v26, %v3221_v43  ;;  %v3271_v16 = vmul.f32 %v3251_v36, %v3233_v58  ;;  %4087 = vmatpush2.bf16.msra.mxu0 %v7240_v3  ;;  %v3105_v34 = vrot.slane %v10126_v60, %v12374_v47  ;;  %v7236_v55 = vpack.c.bf16 %v12380_v25, %v12379_v4  ;;  %v12388_v43 = vld [vmem:[#allocation94_spill] sm:$0xff]  ;;  %v12391_v4 = vld [vmem:[#allocation45_spill] sm:$0xff] }
 0x5c8   :  { %4088 = vmatprep.subr.bf16.mxu0 %v7237_v51  ;;  %4161 = vmatpush2.bf16.msra.mxu1 %v7258_v50  ;;  %v7233_v54 = vpack.c.bf16 %v12382_v61, %v12381_v19  ;;  %v3258_v33 = vmul.f32 %v3247_v26, %v3218_v57  ;;  %v3109_v6 = vrot.slane %v10126_v60, %v12376_v45  ;;  %v12387_v57 = vmov 0   ;;  %v12393_v19 = vld [vmem:[#allocation72_spill] sm:$0xff] }
 0x5c9   :  { %v3073_v29 = vpop.permute.xlu0 %3072  ;;  %v7254_v27 = vpack.c.bf16 %v3270_v31, %v3266_v35  ;;  %v3213_v39 = vpop.permute.xlu1 %3212  ;;  %v7255_v5 = vpack.c.bf16 %v3271_v16, %v3267_v0  ;;  %v3259_v14 = vmul.f32 %v3251_v36, %v3230_v46  ;;  %v12389_v0 = vld [vmem:[#allocation69_spill] sm:$0xff] }
 0x5ca   :  { %v3078_v48 = vsel %vm972_vm10, %v10004_v8, %v3073_v29  ;;  %v3219_v20 = vsel %vm1116_vm9, %v9842_v32, %v3213_v39  ;;  %v3231_v38 = vsel %vm1116_vm9, %v3213_v39, %v9905_v13  ;;  %v3090_v15 = vsel %vm972_vm10, %v3073_v29, %v10068_v59  ;;  %v12390_v29 = vld [vmem:[#allocation57_spill] sm:$0xff] }
 0x5cb   :  { %v3262_v60 = vmul.f32 %v3247_v26, %v3219_v20  ;;  %v3263_v12 = vmul.f32 %v3251_v36, %v3231_v38  ;;  %4089 = vmatpush2.bf16.msra.mxu0 %v7236_v55  ;;  %4162 = vmatprep.subr.bf16.mxu1 %v7255_v5  ;;  %v7232_v32 = vpack.c.bf16 %v12384_v42, %v12383_v17  ;;  %v12392_v55 = vld [vmem:[#allocation70_spill] sm:$0xff]  ;;  %v12394_v39 = vld [vmem:[#allocation73_spill] sm:$0xff]  ;;  %v12399_v17 = vld [vmem:[#allocation43_spill] sm:$0xff] }
 0x5cc   :  { %4090 = vmatprep.subr.bf16.mxu0 %v7233_v54  ;;  %4163 = vmatpush2.bf16.msra.mxu1 %v7254_v27  ;;  %v10262_v13 = vcombine.low %v12385_v30, %v12385_v30  ;;  %v3124_v11 = vmul.f32 %v3105_v34, %v3078_v48  ;;  %v3125_v1 = vmul.f32 %v3109_v6, %v3090_v15 }
 0x5cd   :  { %v3069_v23 = vpop.permute.xlu0 %3068  ;;  %v7250_v8 = vpack.c.bf16 %v3262_v60, %v3258_v33  ;;  %v3075_v9 = vpop.permute.xlu1 %3074  ;;  %v7251_v2 = vpack.c.bf16 %v3263_v12, %v3259_v14  ;;  %v7239_v61 = vpack.c.bf16 %v12393_v19, %v12392_v55  ;;  %v12395_v14 = vld [vmem:[#allocation64_spill] sm:$0xff]  ;;  %v12396_v60 = vld [vmem:[#allocation90_spill] sm:$0xff] }
 0x5ce   :  { %v3079_v59 = vsel %vm972_vm10, %v10046_v22, %v3075_v9  ;;  %v3091_v26 = vsel %vm972_vm10, %v3075_v9, %v10075_v52  ;;  %v3076_v36 = vsel %vm972_vm10, %v10136_v24, %v3069_v23  ;;  %v3088_v41 = vsel %vm972_vm10, %v3069_v23, %v10190_v62  ;;  %v12386_v22 = vld [vmem:[#allocation96_spill] sm:$0xff]  ;;  %v12397_v23 = vld [vmem:[#allocation26_spill] sm:$0xff] }
 0x5cf   :  { %v3128_v10 = vmul.f32 %v3105_v34, %v3079_v59  ;;  %v3129_v37 = vmul.f32 %v3109_v6, %v3091_v26  ;;  %4091 = vmatpush2.bf16.msra.mxu0 %v7232_v32  ;;  %4164 = vmatprep.subr.bf16.mxu1 %v7251_v2  ;;  %v3531_v50 = vrot.slane %v12386_v22, %v12374_v47  ;;  %v12398_v9 = vld [vmem:[#allocation68_spill] sm:$0xff]  ;;  %v12400_v32 = vld [vmem:[#allocation42_spill] sm:$0xff]  ;;  %v12401_v2 = vld [vmem:[#allocation63_spill] sm:$0xff] }
 0x5d0   :  { %4165 = vmatpush2.bf16.msra.mxu1 %v7250_v8  ;;  %v3116_v63 = vmul.f32 %v3105_v34, %v3076_v36  ;;  %v3535_v24 = vrot.slane %v12386_v22, %v12376_v45  ;;  %v3117_v53 = vmul.f32 %v3109_v6, %v3088_v41  ;;  %v7238_v42 = vpack.c.bf16 %v12399_v17, %v12398_v9  ;;  %v12403_v41 = vld [vmem:[#allocation61_spill] sm:$0xff] }
 0x5d1   :  { %v3499_v44 = vpop.permute.xlu0 %3498  ;;  %v7246_v56 = vpack.c.bf16 %v3128_v10, %v3124_v11  ;;  %v3071_v3 = vpop.permute.xlu1 %3070  ;;  %v7247_v52 = vpack.c.bf16 %v3129_v37, %v3125_v1  ;;  %v7235_v30 = vpack.c.bf16 %v12401_v2, %v12400_v32  ;;  %v12402_v37 = vld [vmem:[#allocation62_spill] sm:$0xff] }
 0x5d2   :  { %v3077_v40 = vsel %vm972_vm10, %v10142_v18, %v3071_v3  ;;  %v3089_v62 = vsel %vm972_vm10, %v3071_v3, %v10210_v21  ;;  %4093 = vmatmul.mubr.bf16.vlgmr.msra.gmra.mxu0 %v10262_v13  ;;  %v3504_v58 = vsel %vm1404_vm2, %v12388_v43, %v3499_v44  ;;  %v3516_v18 = vsel %vm1404_vm2, %v3499_v44, %v12389_v0  ;;  %v4229_v43 = vld [vmem:[#allocation3 + $0x8] sm:$0xff]  ;;  %v7368_v32 = vld [vmem:[%s11716_s4 + $0x20] sm:$0xff]  }
 0x5d3   :  { %v3120_v51 = vmul.f32 %v3105_v34, %v3077_v40  ;;  %v3121_v35 = vmul.f32 %v3109_v6, %v3089_v62  ;;  %4166 = vmatprep.subr.bf16.mxu1 %v7247_v52  ;;  %4215 = vmatprep.mubr.bf16.mxu0 %v12387_v57  ;;  %v3550_v54 = vmul.f32 %v3531_v50, %v3504_v58  ;;  %v4233_v58 = vld [vmem:[#allocation3 + $0x28] sm:$0xff] }
 0x5d4   :  { %4167 = vmatpush2.bf16.msra.mxu1 %v7246_v56  ;;  %v3551_v33 = vmul.f32 %v3535_v24, %v3516_v18  ;;  %v7234_v44 = vpack.c.bf16 %v12403_v41, %v12402_v37  ;;  %v12404_v56 = vld [vmem:[#allocation37_spill] sm:$0xff] }
 0x5d5   :  { %v7242_v46 = vpack.c.bf16 %v3120_v51, %v3116_v63  ;;  %v3495_v31 = vpop.permute.xlu0 %3494  ;;  %v3501_v21 = vpop.permute.xlu1 %3500  ;;  %v7243_v16 = vpack.c.bf16 %v3121_v35, %v3117_v53 }
 0x5d6   :  { %v3505_v34 = vsel %vm1404_vm2, %v12390_v29, %v3501_v21  ;;  %v3517_v25 = vsel %vm1404_vm2, %v3501_v21, %v12391_v4  ;;  %v3502_v5 = vsel %vm1404_vm2, %v12394_v39, %v3495_v31  ;;  %v3514_v48 = vsel %vm1404_vm2, %v3495_v31, %v12395_v14  ;;  %v4232_v29 = vld [vmem:[#allocation3 + $0x20] sm:$0xff] }
 0x5d7   :  { %v3554_v27 = vmul.f32 %v3531_v50, %v3505_v34  ;;  %v3555_v6 = vmul.f32 %v3535_v24, %v3517_v25  ;;  %4168 = vmatprep.subr.bf16.mxu1 %v7243_v16  ;;  %v3542_v11 = vmul.f32 %v3531_v50, %v3502_v5  ;;  %v3543_v1 = vmul.f32 %v3535_v24, %v3514_v48  ;;  %v4228_v16 = vld [vmem:[#allocation3] sm:$0xff] }
 0x5d8   :  { %4169 = vmatpush2.bf16.msra.mxu1 %v7242_v46 }
 0x5d9   :  { %v7270_v20 = vpack.c.bf16 %v3554_v27, %v3550_v54  ;;  %4170 = vmatprep.subr.bf16.mxu1 %v7239_v61  ;;  %v3497_v38 = vpop.permute.xlu1 %3496  ;;  %v7271_v15 = vpack.c.bf16 %v3555_v6, %v3551_v33 }
 0x5da   :  { %v3503_v12 = vsel %vm1404_vm2, %v12396_v60, %v3497_v38  ;;  %v3515_v8 = vsel %vm1404_vm2, %v3497_v38, %v12397_v23 }
 0x5db   :  { %v3546_v59 = vmul.f32 %v3531_v50, %v3503_v12  ;;  %v3547_v26 = vmul.f32 %v3535_v24, %v3515_v8  ;;  %4195 = vmatprep.subr.bf16.mxu0 %v7271_v15 }
 0x5dc   :  { %4171 = vmatpush2.bf16.msra.mxu1 %v7238_v42  ;;  %4196 = vmatpush1.bf16.msra.mxu0 %v7270_v20 }
 0x5dd   :  { %v7266_v36 = vpack.c.bf16 %v3546_v59, %v3542_v11  ;;  %4172 = vmatprep.subr.bf16.mxu1 %v7235_v30  ;;  %v7267_v10 = vpack.c.bf16 %v3547_v26, %v3543_v1  ;;  %v4231_v1 = vld [vmem:[#allocation3 + $0x18] sm:$0xff] }
 0x5de   :  { %v4235_v59 = vld [vmem:[#allocation3 + $0x38] sm:$0xff] }
 0x5df   :  { %4197 = vmatprep.subr.bf16.mxu0 %v7267_v10 }
 0x5e0   :  { %4173 = vmatpush2.bf16.msra.mxu1 %v7234_v44  ;;  %4198 = vmatpush1.bf16.msra.mxu0 %v7266_v36  ;;  %v4230_v44 = vld [vmem:[#allocation3 + $0x10] sm:$0xff] }
 0x5e2   :  { %v10326_v24 = vpop.permute.xlu0 %4260 }
 0x5e3   :  { %4175 = vmatmul.mubr.bf16.vlgmr.msra.gmra.mxu1 %v10262_v13  ;;  %6727 = vmatmul.mubr.msk.bf16.vlgmr.msra.gmra.mxu0 %vm1960_vm7, %v12404_v56  ;;  %v4234_v56 = vld [vmem:[#allocation3 + $0x30] sm:$0xff] }
 0x5e4   :  { %4388 = vmatprep.mubr.bf16.mxu0 %v12387_v57 }
 0x5e6   :  { %v10324_v63 = vpop.permute.xlu1 %4287  ;;  %v10330_v62 = vpop.permute.xlu0 %4250 }
 0x5e7   :  { %v4264_v25 = vmul.f32 %v10330_v62, %v4229_v43  ;;  %v4263_v6 = vmul.f32 %v10330_v62, %v4228_v16 }
 0x5ea   :  { %v10328_v40 = vpop.permute.xlu1 %4255  ;;  %v10336_v31 = vpop.permute.xlu0 %4277 }
 0x5eb   :  { %v4268_v46 = vmul.f32 %v10328_v40, %v4233_v58  ;;  %v4267_v19 = vmul.f32 %v10328_v40, %v4232_v29  ;;  %v4291_v27 = vadd.f32 %v10336_v31, %v4264_v25  ;;  %v4290_v20 = vadd.f32 %v10336_v31, %v4263_v6 }
 0x5ec   :  { %v4270_v10 = vmul.f32 %v10328_v40, %v4235_v59 }
 0x5ed   :  { %v4303_v15 = vmax.f32 %v4291_v27, 0.0  ;;  %v4302_v8 = vmax.f32 %v4290_v20, 0.0 }
 0x5ee   :  { %v10332_v13 = vpop.permute.xlu1 %4282 }
 0x5ef   :  { %v4295_v55 = vadd.f32 %v10332_v13, %v4268_v46  ;;  %v4294_v39 = vadd.f32 %v10332_v13, %v4267_v19 }
 0x5f1   :  { %v4307_v48 = vmax.f32 %v4295_v55, 0.0  ;;  %v4306_v60 = vmax.f32 %v4294_v39, 0.0 }
 0x5f2   :  { %v10380_v19 = vpop.permute.xlu1 %4484 }
 0x5f3   :  { %v4320_v23 = vpack.c.bf16 %v4307_v48, %v4303_v15  ;;  %v4319_v9 = vpack.c.bf16 %v4306_v60, %v4302_v8 }
 0x640   :  { %v4135_v22 = vpop.f32.mrf.mxu1 }
 0x642   :  { %v4137_v50 = vpop.f32.mrf.mxu1 }
 0x644   :  { %v4139_v3 = vpop.f32.mrf.mxu1 }
 0x645   :  { %v4266_v3 = vmul.f32 %v10330_v62, %v4231_v1 }
 0x646   :  { %v4140_v52 = vpop.f32.mrf.mxu1 }
 0x647   :  { %v4297_v52 = vadd.f32 %v10332_v13, %v4270_v10 }
 0x649   :  { %v4309_v29 = vmax.f32 %v4297_v52, 0.0 }
 0x692   :  { %v4094_v53 = vpop.f32.mrf.mxu0 }
 0x693   :  { %v4136_v51 = vadd.f32 %v4135_v22, %v4094_v53  ;;  %v4269_v53 = vmul.f32 %v10328_v40, %v4234_v56 }
 0x694   :  { %v4096_v35 = vpop.f32.mrf.mxu0 }
 0x695   :  { %4224 = vst [vmem:[#allocation3 + $0x40] sm:$0xff] %v4136_v51  ;;  %v4138_v0 = vadd.f32 %v4137_v50, %v4096_v35  ;;  %v4271_v18 = vmul.f32 %v10326_v24, %v4136_v51  ;;  %v4296_v46 = vadd.f32 %v10332_v13, %v4269_v53 }
 0x696   :  { %v4098_v21 = vpop.f32.mrf.mxu0 }
 0x697   :  { %4225 = vst [vmem:[#allocation3 + $0x48] sm:$0xff] %v4138_v0  ;;  %v4272_v34 = vmul.f32 %v10326_v24, %v4138_v0  ;;  %v4298_v4 = vadd.f32 %v10324_v63, %v4271_v18  ;;  %v4293_v0 = vadd.f32 %v10336_v31, %v4266_v3  ;;  %v4265_v18 = vmul.f32 %v10330_v62, %v4230_v44 }
 0x698   :  { %v4099_v61 = vpop.f32.mrf.mxu0  ;;  %v4308_v25 = vmax.f32 %v4296_v46, 0.0 }
 0x699   :  { %v4299_v54 = vadd.f32 %v10324_v63, %v4272_v34  ;;  %v4310_v33 = vmax.f32 %v4298_v4, 0.0  ;;  %v4292_v40 = vadd.f32 %v10336_v31, %v4265_v18  ;;  %v4305_v4 = vmax.f32 %v4293_v0, 0.0  ;;  %v10378_v31 = vpop.permute.xlu0 %4479 }
 0x69b   :  { %v4311_v5 = vmax.f32 %v4299_v54, 0.0  ;;  %v4323_v14 = vpack.c.bf16 %v4310_v33, %v4310_v33  ;;  %v4322_v62 = vpack.c.bf16 %v4309_v29, %v4305_v4  ;;  %v4304_v13 = vmax.f32 %v4292_v40, 0.0  ;;  %v10384_v54 = vpop.permute.xlu1 %4525 }
 0x69d   :  { %v4324_v38 = vpack.c.bf16 %v4311_v5, %v4311_v5  ;;  %v4345_v12 = vsel %vm92_vm0, %v4323_v14, 0  ;;  %v4321_v55 = vpack.c.bf16 %v4308_v25, %v4304_v13  ;;  %v10382_v61 = vpop.permute.xlu0 %4520 }
 0x69f   :  { %6740 = vmatprep.subr.msk.bf16.mxu0 %vm92_vm0, %v4324_v38  ;;  %v10388_v27 = vpop.permute.xlu1 %4474 }
 0x6a0   :  { %4369 = vmatpush1.bf16.msra.mxu0 %v4345_v12 }
 0x6a1   :  { %4370 = vmatprep.subr.bf16.mxu0 %v4320_v23  ;;  %v10386_v33 = vpop.permute.xlu0 %4469 }
 0x6a3   :  { %v4176_v17 = vpop.f32.mrf.mxu1  ;;  %v4217_v42 = vpop.f32.mrf.mxu0 }
 0x6a4   :  { %v4218_v2 = vadd.f32 %v4217_v42, %v4176_v17  ;;  %4371 = vmatpush1.bf16.msra.mxu0 %v4319_v9  ;;  %v10397_v60 = vpop.permute.xlu1 %4515 }
 0x6a5   :  { %v4178_v30 = vpop.f32.mrf.mxu1  ;;  %v4219_v11 = vpop.f32.mrf.mxu0 }
 0x6a6   :  { %4226 = vst [vmem:[#allocation3 + $0x50] sm:$0xff] %v4218_v2  ;;  %v4220_v26 = vadd.f32 %v4219_v11, %v4178_v30  ;;  %v4273_v36 = vmul.f32 %v10326_v24, %v4218_v2  ;;  %v10391_v5 = vpop.permute.xlu0 %4510 }
 0x6a7   :  { %6741 = vmatmul.mubr.msk.bf16.vlgmr.msra.gmra.mxu0 %vm4337_vm12, %v7368_v32  ;;  %v4180_v37 = vpop.f32.mrf.mxu1  ;;  %v4221_v41 = vpop.f32.mrf.mxu0 }
 0x6a8   :  { %4227 = vst [vmem:[#allocation3 + $0x58] sm:$0xff] %v4220_v26  ;;  %4398 = vmatprep.mubr.bf16.mxu0 %v12387_v57  ;;  %v4274_v22 = vmul.f32 %v10326_v24, %v4220_v26  ;;  %v4300_v50 = vadd.f32 %v10324_v63, %v4273_v36  ;;  %v7369_v24 = vld [vmem:[%s11716_s4 + $0x28] sm:$0xff]  }
 0x6a9   :  { %v4181_v51 = vpop.f32.mrf.mxu1  ;;  %v4222_v35 = vpop.f32.mrf.mxu0 }
 0x6aa   :  { %v4301_v43 = vadd.f32 %v10324_v63, %v4274_v22  ;;  %v4312_v58 = vmax.f32 %v4300_v50, 0.0 }
 0x6ac   :  { %v4313_v21 = vmax.f32 %v4301_v43, 0.0  ;;  %v4325_v16 = vpack.c.bf16 %v4312_v58, %v4312_v58 }
 0x6ae   :  { %v4326_v34 = vpack.c.bf16 %v4313_v21, %v4313_v21  ;;  %v4351_v63 = vsel %vm92_vm0, %v4325_v16, 0 }
 0x6af   :  { %6742 = vmatmul.mubr.msk.bf16.gmra.mxu0 %vm4337_vm12, %v7369_v24 }
 0x6b0   :  { %6743 = vmatprep.subr.msk.bf16.mxu0 %vm92_vm0, %v4326_v34  ;;  %4441 = vmatprep.mubr.bf16.mxu0 %v12387_v57 }
 0x6b1   :  { %4422 = vmatpush1.bf16.msra.mxu0 %v4351_v63 }
 0x6b2   :  { %4423 = vmatprep.subr.bf16.mxu0 %v4322_v62 }
 0x6b5   :  { %4424 = vmatpush1.bf16.msra.mxu0 %v4321_v55 }
 0x6b8   :  { %6744 = vmatmul.mubr.msk.bf16.vlgmr.msra.gmra.mxu0 %vm4337_vm12, %v7368_v32 }
 0x6b9   :  { %4451 = vmatprep.mubr.bf16.mxu0 %v12387_v57 }
 0x6c0   :  { %6745 = vmatmul.mubr.msk.bf16.gmra.mxu0 %vm4337_vm12, %v7369_v24 }
 0x6c1   :  { %6273 = vmatprep.mubr.bf16.mxu0 %v12387_v57 }
 0x767   :  { %v4390_v6 = vpop.f32.mrf.mxu0 }
 0x768   :  { %v4487_v39 = vmul.f32 %v10386_v33, %v4390_v6 }
 0x769   :  { %v4392_v14 = vpop.f32.mrf.mxu0 }
 0x76a   :  { %v4528_v48 = vadd.f32 %v10391_v5, %v4487_v39  ;;  %v4488_v8 = vmul.f32 %v10386_v33, %v4392_v14 }
 0x76b   :  { %v4394_v20 = vpop.f32.mrf.mxu0 }
 0x76c   :  { %v10394_v38 = vmax.f32 %v4528_v48, 0.0  ;;  %v4491_v15 = vmul.f32 %v10388_v27, %v4394_v20  ;;  %v4529_v17 = vadd.f32 %v10391_v5, %v4488_v8 }
 0x76d   :  { %v4396_v9 = vpop.f32.mrf.mxu0 }
 0x76e   :  { %12405 = vst [vmem:[#allocation10_spill] sm:$0xff] %v10394_v38  ;;  %v4532_v12 = vadd.f32 %v10397_v60, %v4491_v15  ;;  %4986 = vrot.lane.b32.xlu0 %v10394_v38, %s7398_s15  ;;  %v4492_v42 = vmul.f32 %v10388_v27, %v4396_v9  ;;  %v10427_v32 = vmax.f32 %v4529_v17, 0.0 }
 0x76f   :  { %v4400_v11 = vpop.f32.mrf.mxu0 }
 0x770   :  { %v10402_v23 = vmax.f32 %v4532_v12, 0.0  ;;  %12407 = vst [vmem:[#allocation20_spill] sm:$0xff] %v10427_v32  ;;  %v4533_v2 = vadd.f32 %v10397_v60, %v4492_v42  ;;  %v4495_v59 = vmul.f32 %v10378_v31, %v4400_v11 }
 0x771   :  { %v4402_v1 = vpop.f32.mrf.mxu0 }
 0x772   :  { %12406 = vst [vmem:[#allocation12_spill] sm:$0xff] %v10402_v23  ;;  %5610 = vrot.lane.b32.xlu0 %v10394_v38, %s7397_s14  ;;  %4988 = vrot.lane.b32.xlu1 %v10402_v23, %s7398_s15  ;;  %v10434_v30 = vmax.f32 %v4533_v2, 0.0  ;;  %v4536_v36 = vadd.f32 %v10382_v61, %v4495_v59  ;;  %v4496_v56 = vmul.f32 %v10378_v31, %v4402_v1 }
 0x773   :  { %v4404_v26 = vpop.f32.mrf.mxu0 }
 0x774   :  { %12408 = vst [vmem:[#allocation21_spill] sm:$0xff] %v10434_v30  ;;  %v4499_v10 = vmul.f32 %v10380_v19, %v4404_v26  ;;  %v10463_v37 = vmax.f32 %v4536_v36, 0.0  ;;  %v4537_v50 = vadd.f32 %v10382_v61, %v4496_v56 }
 0x775   :  { %v4406_v22 = vpop.f32.mrf.mxu0 }
 0x776   :  { %4844 = vrot.lane.b32.xlu0 %v10394_v38, %s7399_s16  ;;  %5612 = vrot.lane.b32.xlu1 %v10402_v23, %s7397_s14  ;;  %12409 = vst [vmem:[#allocation15_spill] sm:$0xff] %v10463_v37  ;;  %v4540_v41 = vadd.f32 %v10384_v54, %v4499_v10  ;;  %v4500_v3 = vmul.f32 %v10380_v19, %v4406_v22  ;;  %v10499_v52 = vmax.f32 %v4537_v50, 0.0 }
 0x778   :  { %v10470_v44 = vmax.f32 %v4540_v41, 0.0  ;;  %12411 = vst [vmem:[#allocation8_spill] sm:$0xff] %v10499_v52  ;;  %v4541_v53 = vadd.f32 %v10384_v54, %v4500_v3  ;;  %v4443_v35 = vpop.f32.mrf.mxu0 }
 0x779   :  { %v4489_v58 = vmul.f32 %v10386_v33, %v4443_v35 }
 0x77a   :  { %4702 = vrot.lane.b32.xlu0 %v10394_v38, %s7400_s17  ;;  %4846 = vrot.lane.b32.xlu1 %v10402_v23, %s7399_s16  ;;  %12410 = vst [vmem:[#allocation19_spill] sm:$0xff] %v10470_v44  ;;  %v10506_v51 = vmax.f32 %v4541_v53, 0.0  ;;  %v4445_v43 = vpop.f32.mrf.mxu0 }
 0x77b   :  { %v4530_v18 = vadd.f32 %v10391_v5, %v4489_v58  ;;  %v4490_v63 = vmul.f32 %v10386_v33, %v4445_v43 }
 0x77c   :  { %12412 = vst [vmem:[#allocation7_spill] sm:$0xff] %v10506_v51  ;;  %v4447_v0 = vpop.f32.mrf.mxu0 }
 0x77d   :  { %v4493_v46 = vmul.f32 %v10388_v27, %v4447_v0  ;;  %v10535_v24 = vmax.f32 %v4530_v18, 0.0  ;;  %v4531_v6 = vadd.f32 %v10391_v5, %v4490_v63 }
 0x77e   :  { %4560 = vrot.lane.b32.xlu0 %v10394_v38, %s7401_s18  ;;  %4704 = vrot.lane.b32.xlu1 %v10402_v23, %s7400_s17  ;;  %v4449_v55 = vpop.f32.mrf.mxu0 }
 0x77f   :  { %12413 = vst [vmem:[#allocation33_spill] sm:$0xff] %v10535_v24  ;;  %v4534_v21 = vadd.f32 %v10397_v60, %v4493_v46  ;;  %v4494_v39 = vmul.f32 %v10388_v27, %v4449_v55  ;;  %v10589_v33 = vmax.f32 %v4531_v6, 0.0 }
 0x780   :  { %v4453_v9 = vpop.f32.mrf.mxu0 }
 0x781   :  { %v10542_v16 = vmax.f32 %v4534_v21, 0.0  ;;  %12421 = vst [vmem:[#allocation95_spill] sm:$0xff] %v10589_v33  ;;  %v4535_v20 = vadd.f32 %v10397_v60, %v4494_v39  ;;  %v4497_v2 = vmul.f32 %v10378_v31, %v4453_v9 }
 0x782   :  { %5468 = vrot.lane.b32.xlu0 %v10394_v38, %s7402_s19  ;;  %4562 = vrot.lane.b32.xlu1 %v10402_v23, %s7401_s18  ;;  %v4455_v42 = vpop.f32.mrf.mxu0 }
 0x783   :  { %12414 = vst [vmem:[#allocation100_spill] sm:$0xff] %v10542_v16  ;;  %v10600_v27 = vmax.f32 %v4535_v20, 0.0  ;;  %v4538_v26 = vadd.f32 %v10382_v61, %v4497_v2  ;;  %v4498_v55 = vmul.f32 %v10378_v31, %v4455_v42 }
 0x784   :  { %v4457_v59 = vpop.f32.mrf.mxu0 }
 0x785   :  { %12423 = vst [vmem:[#allocation32_spill] sm:$0xff] %v10600_v27  ;;  %v4501_v36 = vmul.f32 %v10380_v19, %v4457_v59  ;;  %v10637_v56 = vmax.f32 %v4538_v26, 0.0  ;;  %v4539_v9 = vadd.f32 %v10382_v61, %v4498_v55 }
 0x786   :  { %4994 = vrot.lane.b32.xlu0 %v10427_v32, %s7398_s15  ;;  %5470 = vrot.lane.b32.xlu1 %v10402_v23, %s7402_s19  ;;  %v4459_v20 = vpop.f32.mrf.mxu0 }
 0x787   :  { %12426 = vst [vmem:[#allocation51_spill] sm:$0xff] %v10637_v56  ;;  %v4542_v22 = vadd.f32 %v10384_v54, %v4501_v36  ;;  %v4502_v2 = vmul.f32 %v10380_v19, %v4459_v20  ;;  %v10701_v31 = vmax.f32 %v4539_v9, 0.0 }
 0x789   :  { %v10648_v53 = vmax.f32 %v4542_v22, 0.0  ;;  %12439 = vst [vmem:[#allocation9_spill] sm:$0xff] %v10701_v31  ;;  %v4543_v42 = vadd.f32 %v10384_v54, %v4502_v2 }
 0x78a   :  { %5618 = vrot.lane.b32.xlu0 %v10427_v32, %s7397_s14  ;;  %4996 = vrot.lane.b32.xlu1 %v10434_v30, %s7398_s15 }
 0x78b   :  { %12429 = vst [vmem:[#allocation41_spill] sm:$0xff] %v10648_v53  ;;  %v10712_v19 = vmax.f32 %v4543_v42, 0.0  ;;  %v10737_v42 = vld [vmem:[%s11713_s1 + $0x3] ss:$8 sm:$0xf] }
 0x78d   :  { %12442 = vst [vmem:[#allocation77_spill] sm:$0xff] %v10712_v19 }
 0x78e   :  { %4852 = vrot.lane.b32.xlu0 %v10427_v32, %s7399_s16  ;;  %5620 = vrot.lane.b32.xlu1 %v10434_v30, %s7397_s14 }
 0x792   :  { %4710 = vrot.lane.b32.xlu0 %v10427_v32, %s7400_s17  ;;  %4854 = vrot.lane.b32.xlu1 %v10434_v30, %s7399_s16 }
 0x796   :  { %4568 = vrot.lane.b32.xlu0 %v10427_v32, %s7401_s18  ;;  %4712 = vrot.lane.b32.xlu1 %v10434_v30, %s7400_s17 }
 0x79a   :  { %5476 = vrot.lane.b32.xlu0 %v10427_v32, %s7402_s19  ;;  %4570 = vrot.lane.b32.xlu1 %v10434_v30, %s7401_s18 }
 0x79e   :  { %5334 = vrot.lane.b32.xlu0 %v10427_v32, %s7403_s20  ;;  %5478 = vrot.lane.b32.xlu1 %v10434_v30, %s7402_s19 }
 0x7a2   :  { %5336 = vrot.lane.b32.xlu1 %v10434_v30, %s7403_s20  ;;  %4990 = vrot.lane.b32.xlu0 %v10463_v37, %s7398_s15 }
 0x7a6   :  { %5614 = vrot.lane.b32.xlu0 %v10463_v37, %s7397_s14  ;;  %4992 = vrot.lane.b32.xlu1 %v10470_v44, %s7398_s15 }
 0x7aa   :  { %4848 = vrot.lane.b32.xlu0 %v10463_v37, %s7399_s16  ;;  %5616 = vrot.lane.b32.xlu1 %v10470_v44, %s7397_s14 }
 0x7ae   :  { %4706 = vrot.lane.b32.xlu0 %v10463_v37, %s7400_s17  ;;  %4850 = vrot.lane.b32.xlu1 %v10470_v44, %s7399_s16 }
 0x7b2   :  { %4564 = vrot.lane.b32.xlu0 %v10463_v37, %s7401_s18  ;;  %4708 = vrot.lane.b32.xlu1 %v10470_v44, %s7400_s17 }
 0x7b6   :  { %5472 = vrot.lane.b32.xlu0 %v10463_v37, %s7402_s19  ;;  %4566 = vrot.lane.b32.xlu1 %v10470_v44, %s7401_s18 }
 0x7ba   :  { %5330 = vrot.lane.b32.xlu0 %v10463_v37, %s7403_s20  ;;  %5474 = vrot.lane.b32.xlu1 %v10470_v44, %s7402_s19 }
 0x7be   :  { %4998 = vrot.lane.b32.xlu0 %v10499_v52, %s7398_s15  ;;  %5332 = vrot.lane.b32.xlu1 %v10470_v44, %s7403_s20 }
 0x7c2   :  { %5622 = vrot.lane.b32.xlu0 %v10499_v52, %s7397_s14  ;;  %5000 = vrot.lane.b32.xlu1 %v10506_v51, %s7398_s15 }
 0x7c6   :  { %4856 = vrot.lane.b32.xlu0 %v10499_v52, %s7399_s16  ;;  %5624 = vrot.lane.b32.xlu1 %v10506_v51, %s7397_s14 }
 0x7ca   :  { %4714 = vrot.lane.b32.xlu0 %v10499_v52, %s7400_s17  ;;  %4858 = vrot.lane.b32.xlu1 %v10506_v51, %s7399_s16 }
 0x7ce   :  { %4572 = vrot.lane.b32.xlu0 %v10499_v52, %s7401_s18  ;;  %4716 = vrot.lane.b32.xlu1 %v10506_v51, %s7400_s17 }
 0x7d2   :  { %5480 = vrot.lane.b32.xlu0 %v10499_v52, %s7402_s19  ;;  %4574 = vrot.lane.b32.xlu1 %v10506_v51, %s7401_s18 }
 0x7d6   :  { %5338 = vrot.lane.b32.xlu0 %v10499_v52, %s7403_s20  ;;  %5482 = vrot.lane.b32.xlu1 %v10506_v51, %s7402_s19 }
 0x7da   :  { %5340 = vrot.lane.b32.xlu1 %v10506_v51, %s7403_s20  ;;  %5626 = vrot.lane.b32.xlu0 %v10535_v24, %s7397_s14 }
 0x7de   :  { %5002 = vrot.lane.b32.xlu0 %v10535_v24, %s7398_s15  ;;  %5628 = vrot.lane.b32.xlu1 %v10542_v16, %s7397_s14 }
 0x7e0   :  { %v10548_v29 = vpop.permute.xlu0 %4986 }
 0x7e2   :  { %4860 = vrot.lane.b32.xlu0 %v10535_v24, %s7399_s16  ;;  %5004 = vrot.lane.b32.xlu1 %v10542_v16, %s7398_s15 }
 0x7e4   :  { %v10554_v40 = vpop.permute.xlu0 %5610  ;;  %v10556_v34 = vpop.permute.xlu1 %4988 }
 0x7e5   :  { %12415 = vst [vmem:[#allocation80_spill] sm:$0xff] %v10554_v40 }
 0x7e6   :  { %4718 = vrot.lane.b32.xlu0 %v10535_v24, %s7400_s17  ;;  %4862 = vrot.lane.b32.xlu1 %v10542_v16, %s7399_s16 }
 0x7e8   :  { %v10562_v4 = vpop.permute.xlu0 %4844  ;;  %v10564_v25 = vpop.permute.xlu1 %5612 }
 0x7e9   :  { %12416 = vst [vmem:[#allocation88_spill] sm:$0xff] %v10564_v25 }
 0x7ea   :  { %4576 = vrot.lane.b32.xlu0 %v10535_v24, %s7401_s18  ;;  %4720 = vrot.lane.b32.xlu1 %v10542_v16, %s7400_s17 }
 0x7ec   :  { %v10571_v62 = vpop.permute.xlu0 %4702  ;;  %v10573_v13 = vpop.permute.xlu1 %4846 }
 0x7ed   :  { %12417 = vst [vmem:[#allocation67_spill] sm:$0xff] %v10571_v62  ;;  %12418 = vst [vmem:[#allocation92_spill] sm:$0xff] %v10573_v13  ;;  %v10934_v13 = vld [vmem:[%s11713_s1 + $0x7] ss:$8 sm:$0xf] }
 0x7ee   :  { %5484 = vrot.lane.b32.xlu0 %v10535_v24, %s7402_s19  ;;  %4578 = vrot.lane.b32.xlu1 %v10542_v16, %s7401_s18  ;;  %12469 = vst [vmem:[#allocation18_spill] sm:$0xff] %v10934_v13 }
 0x7f0   :  { %v10581_v14 = vpop.permute.xlu0 %4560  ;;  %v10583_v48 = vpop.permute.xlu1 %4704 }
 0x7f1   :  { %12419 = vst [vmem:[#allocation76_spill] sm:$0xff] %v10581_v14  ;;  %12420 = vst [vmem:[#allocation93_spill] sm:$0xff] %v10583_v48 }
 0x7f2   :  { %5342 = vrot.lane.b32.xlu0 %v10535_v24, %s7403_s20  ;;  %5486 = vrot.lane.b32.xlu1 %v10542_v16, %s7402_s19 }
 0x7f4   :  { %v10592_v15 = vpop.permute.xlu0 %5468  ;;  %v10594_v12 = vpop.permute.xlu1 %4562 }
 0x7f5   :  { %12422 = vst [vmem:[#allocation99_spill] sm:$0xff] %v10592_v15 }
 0x7f6   :  { %5010 = vrot.lane.b32.xlu0 %v10589_v33, %s7398_s15  ;;  %5344 = vrot.lane.b32.xlu1 %v10542_v16, %s7403_s20 }
 0x7f8   :  { %v10602_v5 = vpop.permute.xlu0 %4994  ;;  %v10604_v8 = vpop.permute.xlu1 %5470 }
 0x7fa   :  { %4868 = vrot.lane.b32.xlu0 %v10589_v33, %s7399_s16  ;;  %5012 = vrot.lane.b32.xlu1 %v10600_v27, %s7398_s15 }
 0x7fc   :  { %v10610_v60 = vpop.permute.xlu0 %5618  ;;  %v10612_v17 = vpop.permute.xlu1 %4996 }
 0x7fe   :  { %4726 = vrot.lane.b32.xlu0 %v10589_v33, %s7400_s17  ;;  %4870 = vrot.lane.b32.xlu1 %v10600_v27, %s7399_s16 }
 0x800   :  { %v10619_v11 = vpop.permute.xlu0 %4852  ;;  %v10621_v1 = vpop.permute.xlu1 %5620 }
 0x802   :  { %4584 = vrot.lane.b32.xlu0 %v10589_v33, %s7401_s18  ;;  %4728 = vrot.lane.b32.xlu1 %v10600_v27, %s7400_s17 }
 0x804   :  { %v10629_v10 = vpop.permute.xlu0 %4710  ;;  %v10631_v41 = vpop.permute.xlu1 %4854 }
 0x805   :  { %12424 = vst [vmem:[#allocation36_spill] sm:$0xff] %v10629_v10  ;;  %12425 = vst [vmem:[#allocation52_spill] sm:$0xff] %v10631_v41 }
 0x806   :  { %5492 = vrot.lane.b32.xlu0 %v10589_v33, %s7402_s19  ;;  %4586 = vrot.lane.b32.xlu1 %v10600_v27, %s7401_s18 }
 0x808   :  { %v10640_v50 = vpop.permute.xlu0 %4568  ;;  %v10642_v3 = vpop.permute.xlu1 %4712 }
 0x809   :  { %12427 = vst [vmem:[#allocation46_spill] sm:$0xff] %v10640_v50  ;;  %12428 = vst [vmem:[#allocation17_spill] sm:$0xff] %v10642_v3 }
 0x80a   :  { %5494 = vrot.lane.b32.xlu1 %v10600_v27, %s7402_s19  ;;  %5630 = vrot.lane.b32.xlu0 %v10637_v56, %s7397_s14 }
 0x80c   :  { %v10650_v35 = vpop.permute.xlu0 %5476  ;;  %v10652_v43 = vpop.permute.xlu1 %4570 }
 0x80d   :  { %12430 = vst [vmem:[#allocation50_spill] sm:$0xff] %v10650_v35  ;;  %12431 = vst [vmem:[#allocation27_spill] sm:$0xff] %v10652_v43 }
 0x80e   :  { %5006 = vrot.lane.b32.xlu0 %v10637_v56, %s7398_s15  ;;  %5632 = vrot.lane.b32.xlu1 %v10648_v53, %s7397_s14 }
 0x810   :  { %v10658_v58 = vpop.permute.xlu0 %5334  ;;  %v10660_v0 = vpop.permute.xlu1 %5478 }
 0x811   :  { %12432 = vst [vmem:[#allocation34_spill] sm:$0xff] %v10658_v58  ;;  %12433 = vst [vmem:[#allocation25_spill] sm:$0xff] %v10660_v0  ;;  %v10749_v58 = vrot.slane %v10737_v42, %v12365_v7 }
 0x812   :  { %4864 = vrot.lane.b32.xlu0 %v10637_v56, %s7399_s16  ;;  %5008 = vrot.lane.b32.xlu1 %v10648_v53, %s7398_s15 }
 0x814   :  { %v10666_v18 = vpop.permute.xlu1 %5336  ;;  %v10668_v46 = vpop.permute.xlu0 %4990 }
 0x815   :  { %12434 = vst [vmem:[#allocation91_spill] sm:$0xff] %v10666_v18 }
 0x816   :  { %4722 = vrot.lane.b32.xlu0 %v10637_v56, %s7400_s17  ;;  %4866 = vrot.lane.b32.xlu1 %v10648_v53, %s7399_s16 }
 0x818   :  { %v10674_v21 = vpop.permute.xlu0 %5614  ;;  %v10676_v63 = vpop.permute.xlu1 %4992 }
 0x819   :  { %12435 = vst [vmem:[#allocation38_spill] sm:$0xff] %v10674_v21 }
 0x81a   :  { %4580 = vrot.lane.b32.xlu0 %v10637_v56, %s7401_s18  ;;  %4724 = vrot.lane.b32.xlu1 %v10648_v53, %s7400_s17 }
 0x81c   :  { %v10683_v6 = vpop.permute.xlu0 %4848  ;;  %v10685_v39 = vpop.permute.xlu1 %5616 }
 0x81d   :  { %12436 = vst [vmem:[#allocation85_spill] sm:$0xff] %v10683_v6  ;;  %12437 = vst [vmem:[#allocation14_spill] sm:$0xff] %v10685_v39 }
 0x81e   :  { %5488 = vrot.lane.b32.xlu0 %v10637_v56, %s7402_s19  ;;  %4582 = vrot.lane.b32.xlu1 %v10648_v53, %s7401_s18 }
 0x820   :  { %v10693_v59 = vpop.permute.xlu0 %4706  ;;  %v10695_v26 = vpop.permute.xlu1 %4850 }
 0x821   :  { %12438 = vst [vmem:[#allocation66_spill] sm:$0xff] %v10693_v59 }
 0x822   :  { %5346 = vrot.lane.b32.xlu0 %v10637_v56, %s7403_s20  ;;  %5490 = vrot.lane.b32.xlu1 %v10648_v53, %s7402_s19 }
 0x824   :  { %v10704_v36 = vpop.permute.xlu0 %4564  ;;  %v10706_v22 = vpop.permute.xlu1 %4708 }
 0x825   :  { %12440 = vst [vmem:[#allocation53_spill] sm:$0xff] %v10704_v36  ;;  %12441 = vst [vmem:[#allocation29_spill] sm:$0xff] %v10706_v22 }
 0x826   :  { %5014 = vrot.lane.b32.xlu0 %v10701_v31, %s7398_s15  ;;  %5348 = vrot.lane.b32.xlu1 %v10648_v53, %s7403_s20 }
 0x828   :  { %v10714_v61 = vpop.permute.xlu0 %5472  ;;  %v10716_v55 = vpop.permute.xlu1 %4566 }
 0x829   :  { %12443 = vst [vmem:[#allocation28_spill] sm:$0xff] %v10714_v61  ;;  %12444 = vst [vmem:[#allocation6_spill] sm:$0xff] %v10716_v55 }
 0x82a   :  { %5326 = vrot.lane.b32.xlu0 %v10394_v38, %s7403_s20  ;;  %5016 = vrot.lane.b32.xlu1 %v10712_v19, %s7398_s15 }
 0x82c   :  { %v10722_v54 = vpop.permute.xlu0 %5330  ;;  %v10724_v20 = vpop.permute.xlu1 %5474 }
 0x82d   :  { %12445 = vst [vmem:[#allocation60_spill] sm:$0xff] %v10722_v54  ;;  %12446 = vst [vmem:[#allocation39_spill] sm:$0xff] %v10724_v20 }
 0x82e   :  { %4872 = vrot.lane.b32.xlu0 %v10701_v31, %s7399_s16  ;;  %5328 = vrot.lane.b32.xlu1 %v10402_v23, %s7403_s20 }
 0x830   :  { %v10730_v9 = vpop.permute.xlu0 %4998  ;;  %v10732_v2 = vpop.permute.xlu1 %5332 }
 0x831   :  { %12447 = vst [vmem:[#allocation47_spill] sm:$0xff] %v10732_v2  ;;  %v5028_v57 = vsel %vm772_vm3, %v10668_v46, %v10730_v9 }
 0x832   :  { %4730 = vrot.lane.b32.xlu0 %v10701_v31, %s7400_s17  ;;  %4874 = vrot.lane.b32.xlu1 %v10712_v19, %s7399_s16  ;;  %v5065_v61 = vmul.f32 %v10749_v58, %v5028_v57 }
 0x834   :  { %v10751_v18 = vpop.permute.xlu0 %5622  ;;  %v10753_v54 = vpop.permute.xlu1 %5000 }
 0x835   :  { %v5029_v2 = vsel %vm772_vm3, %v10676_v63, %v10753_v54 }
 0x836   :  { %v5069_v20 = vmul.f32 %v10749_v58, %v5029_v2  ;;  %4588 = vrot.lane.b32.xlu0 %v10701_v31, %s7401_s18  ;;  %5198 = vrot.lane.b32.xlu1 %v10506_v51, %s7404_s0 }
 0x838   :  { %v10765_v36 = vpop.permute.xlu0 %4856  ;;  %v10767_v55 = vpop.permute.xlu1 %5624  ;;  %v7301_v48 = vpack.c.bf16 %v5069_v20, %v5065_v61 }
 0x839   :  { %12448 = vst [vmem:[#allocation48_spill] sm:$0xff] %v10765_v36 }
 0x83a   :  { %6200 = vmatprep.subr.bf16.mxu1 %v7301_v48  ;;  %5496 = vrot.lane.b32.xlu0 %v10701_v31, %s7402_s19 }
 0x83b   :  { %4732 = vrot.lane.b32.xlu1 %v10712_v19, %s7400_s17 }
 0x83c   :  { %v10773_v57 = vpop.permute.xlu0 %4714  ;;  %v10775_v2 = vpop.permute.xlu1 %4858 }
 0x83d   :  { %12449 = vst [vmem:[#allocation13_spill] sm:$0xff] %v10773_v57 }
 0x83e   :  { %5196 = vrot.lane.b32.xlu0 %v10499_v52, %s7404_s0 }
 0x83f   :  { %5206 = vrot.lane.b32.xlu1 %v10648_v53, %s7404_s0 }
 0x840   :  { %v10781_v51 = vpop.permute.xlu0 %4572  ;;  %v10783_v61 = vpop.permute.xlu1 %4716 }
 0x841   :  { %12450 = vst [vmem:[#allocation82_spill] sm:$0xff] %v10781_v51  ;;  %12451 = vst [vmem:[#allocation101_spill] sm:$0xff] %v10783_v61 }
 0x842   :  { %5204 = vrot.lane.b32.xlu0 %v10637_v56, %s7404_s0 }
 0x843   :  { %4590 = vrot.lane.b32.xlu1 %v10712_v19, %s7401_s18 }
 0x844   :  { %v10789_v48 = vpop.permute.xlu0 %5480  ;;  %v10791_v20 = vpop.permute.xlu1 %4574 }
 0x845   :  { %12452 = vst [vmem:[#allocation30_spill] sm:$0xff] %v10789_v48  ;;  %12453 = vst [vmem:[#allocation54_spill] sm:$0xff] %v10791_v20 }
 0x846   :  { %5354 = vrot.lane.b32.xlu0 %v10701_v31, %s7403_s20 }
 0x847   :  { %5190 = vrot.lane.b32.xlu1 %v10470_v44, %s7404_s0 }
 0x848   :  { %v10797_v53 = vpop.permute.xlu0 %5338  ;;  %v10799_v52 = vpop.permute.xlu1 %5482 }
 0x849   :  { %12454 = vst [vmem:[#allocation55_spill] sm:$0xff] %v10797_v53  ;;  %12455 = vst [vmem:[#allocation11_spill] sm:$0xff] %v10799_v52 }
 0x84a   :  { %5188 = vrot.lane.b32.xlu0 %v10463_v37, %s7404_s0  ;;  %v10819_v37 = vrot.slane %v10737_v42, %v12374_v47 }
 0x84b   :  { %5194 = vrot.lane.b32.xlu1 %v10434_v30, %s7404_s0 }
 0x84c   :  { %v10805_v56 = vpop.permute.xlu1 %5340  ;;  %v10807_v48 = vpop.permute.xlu0 %5626 }
 0x84d   :  { %12456 = vst [vmem:[#allocation49_spill] sm:$0xff] %v10805_v56  ;;  %12457 = vst [vmem:[#allocation44_spill] sm:$0xff] %v10807_v48  ;;  %v10836_v56 = vld [vmem:[%s11713_s1 + $0x2] ss:$8 sm:$0xf] }
 0x84e   :  { %5192 = vrot.lane.b32.xlu0 %v10427_v32, %s7404_s0  ;;  %v10847_v51 = vrot.slane %v10836_v56, %v12374_v47 }
 0x84f   :  { %5202 = vrot.lane.b32.xlu1 %v10542_v16, %s7404_s0 }
 0x850   :  { %v10813_v44 = vpop.permute.xlu0 %5002  ;;  %v10815_v53 = vpop.permute.xlu1 %5628  ;;  %12460 = vst [vmem:[#allocation71_spill] sm:$0xff] %v10847_v51 }
 0x851   :  { %12458 = vst [vmem:[#allocation65_spill] sm:$0xff] %v10815_v53  ;;  %v5022_v30 = vsel %vm772_vm3, %v10602_v5, %v10813_v44 }
 0x852   :  { %5200 = vrot.lane.b32.xlu0 %v10535_v24, %s7404_s0  ;;  %v10843_v52 = vmul.f32 %v10819_v37, %v5022_v30 }
 0x853   :  { %5498 = vrot.lane.b32.xlu1 %v10712_v19, %s7402_s19 }
 0x854   :  { %v10829_v16 = vpop.permute.xlu0 %4860  ;;  %v10831_v32 = vpop.permute.xlu1 %5004  ;;  %12459 = vst [vmem:[#allocation16_spill] sm:$0xff] %v10843_v52 }
 0x855   :  { %v5023_v24 = vsel %vm772_vm3, %v10612_v17, %v10831_v32  ;;  %v4880_v59 = vsel %vm628_vm4, %v10619_v11, %v10829_v16 }
 0x856   :  { %v10850_v20 = vmul.f32 %v10819_v37, %v5023_v24  ;;  %5350 = vrot.lane.b32.xlu0 %v10589_v33, %s7403_s20  ;;  %v10867_v24 = vld [vmem:[%s11713_s1 + $0x1] ss:$8 sm:$0xf]  ;;  %v10873_v61 = vmul.f32 %v10847_v51, %v4880_v59 }
 0x857   :  { %5352 = vrot.lane.b32.xlu1 %v10600_v27, %s7403_s20  ;;  %v10877_v6 = vrot.slane %v10867_v24, %v12374_v47 }
 0x858   :  { %12461 = vst [vmem:[#allocation24_spill] sm:$0xff] %v10850_v20  ;;  %v10862_v57 = vpop.permute.xlu0 %4718  ;;  %v4863_v62 = vpop.permute.xlu1 %4862  ;;  %12462 = vst [vmem:[#allocation75_spill] sm:$0xff] %v10873_v61  ;;  %v10917_v61 = vld [vmem:[%s11719_s7 + $0x18] sm:$0xff] }
 0x859   :  { %v4881_v22 = vsel %vm628_vm4, %v10631_v41, %v4863_v62  ;;  %12463 = vst [vmem:[#allocation89_spill] sm:$0xff] %v10877_v6  ;;  %v4738_v52 = vsel %vm484_vm5, %v10629_v10, %v10862_v57  ;;  %12468 = vst [vmem:[#allocation87_spill] sm:$0xff] %v10917_v61 }
 0x85a   :  { %v10880_v30 = vmul.f32 %v10847_v51, %v4881_v22  ;;  %5184 = vrot.lane.b32.xlu0 %v10394_v38, %s7404_s0  ;;  %v10897_v22 = vld [vmem:[%s11713_s1] ss:$8 sm:$0xf]  ;;  %v10903_v10 = vmul.f32 %v10877_v6, %v4738_v52 }
 0x85b   :  { %5356 = vrot.lane.b32.xlu1 %v10712_v19, %s7403_s20  ;;  %v10907_v51 = vrot.slane %v10897_v22, %v12374_v47 }
 0x85c   :  { %12464 = vst [vmem:[#allocation35_spill] sm:$0xff] %v10880_v30  ;;  %v10892_v20 = vpop.permute.xlu0 %4576  ;;  %v4721_v36 = vpop.permute.xlu1 %4720  ;;  %12465 = vst [vmem:[#allocation31_spill] sm:$0xff] %v10903_v10 }
 0x85d   :  { %v4739_v38 = vsel %vm484_vm5, %v10642_v3, %v4721_v36  ;;  %12466 = vst [vmem:[#allocation74_spill] sm:$0xff] %v10907_v51  ;;  %v4596_v52 = vsel %vm341_vm6, %v10640_v50, %v10892_v20 }
 0x85e   :  { %v10910_v59 = vmul.f32 %v10877_v6, %v4739_v38  ;;  %5212 = vrot.lane.b32.xlu0 %v10701_v31, %s7404_s0  ;;  %v10927_v38 = vcombine.high %v10917_v61, %v10917_v61  ;;  %v10945_v61 = vrot.slane %v10934_v13, %v12365_v7 }
 0x85f   :  { %5186 = vrot.lane.b32.xlu1 %v10402_v23, %s7404_s0  ;;  %v10941_v23 = vmul.f32 %v10907_v51, %v4596_v52 }
 0x860   :  { %12467 = vst [vmem:[#allocation86_spill] sm:$0xff] %v10910_v59  ;;  %v5485_v6 = vpop.permute.xlu0 %5484  ;;  %v4579_v3 = vpop.permute.xlu1 %4578  ;;  %6232 = vmatprep.mubr.bf16.mxu1 %v10927_v38  ;;  %12471 = vst [vmem:[#allocation97_spill] sm:$0xff] %v10945_v61 }
 0x861   :  { %v4597_v50 = vsel %vm341_vm6, %v10652_v43, %v4579_v3  ;;  %12470 = vst [vmem:[#allocation98_spill] sm:$0xff] %v10941_v23  ;;  %v5504_v10 = vsel %vm1260_vm8, %v10650_v35, %v5485_v6 }
 0x862   :  { %v10948_v30 = vmul.f32 %v10907_v51, %v4597_v50  ;;  %5208 = vrot.lane.b32.xlu0 %v10589_v33, %s7404_s0  ;;  %v10965_v51 = vmul.f32 %v10945_v61, %v5504_v10  ;;  %v10982_v10 = vrot.slane %v10737_v42, %v12376_v45 }
 0x863   :  { %5214 = vrot.lane.b32.xlu1 %v10712_v19, %s7404_s0 }
 0x864   :  { %12472 = vst [vmem:[#allocation84_spill] sm:$0xff] %v10948_v30  ;;  %v10959_v59 = vpop.permute.xlu0 %5342  ;;  %v5487_v43 = vpop.permute.xlu1 %5486  ;;  %12474 = vst [vmem:[#allocation23_spill] sm:$0xff] %v10965_v51 }
 0x865   :  { %12473 = vst [vmem:[#allocation58_spill] sm:$0xff] %v10959_v59  ;;  %v5505_v50 = vsel %vm1260_vm8, %v10660_v0, %v5487_v43 }
 0x866   :  { %v10968_v41 = vmul.f32 %v10945_v61, %v5505_v50  ;;  %5638 = vrot.lane.b32.xlu0 %v10701_v31, %s7397_s14 }
 0x867   :  { %5210 = vrot.lane.b32.xlu1 %v10600_v27, %s7404_s0 }
 0x868   :  { %12475 = vst [vmem:[#allocation83_spill] sm:$0xff] %v10968_v41  ;;  %v10974_v52 = vpop.permute.xlu0 %5010  ;;  %v10976_v59 = vpop.permute.xlu1 %5344 }
 0x869   :  { %12476 = vst [vmem:[#allocation40_spill] sm:$0xff] %v10976_v59  ;;  %v5018_v50 = vsel %vm772_vm3, %v10813_v44, %v10974_v52 }
 0x86a   :  { %5634 = vrot.lane.b32.xlu0 %v10589_v33, %s7397_s14  ;;  %v11001_v51 = vmul.f32 %v10982_v10, %v5018_v50  ;;  %v11005_v33 = vrot.slane %v10836_v56, %v12376_v45 }
 0x86b   :  { %5640 = vrot.lane.b32.xlu1 %v10712_v19, %s7397_s14 }
 0x86c   :  { %v10992_v31 = vpop.permute.xlu0 %4868  ;;  %v10994_v59 = vpop.permute.xlu1 %5012 }
 0x86d   :  { %v5019_v23 = vsel %vm772_vm3, %v10831_v32, %v10994_v59  ;;  %v4876_v19 = vsel %vm628_vm4, %v10829_v16, %v10992_v31  ;;  %v11030_v16 = vrot.slane %v10867_v24, %v12376_v45 }
 0x86e   :  { %v11008_v44 = vmul.f32 %v10982_v10, %v5019_v23  ;;  %v11026_v30 = vmul.f32 %v11005_v33, %v4876_v19 }
 0x86f   :  { %5636 = vrot.lane.b32.xlu1 %v10600_v27, %s7397_s14  ;;  %12479 = vst [vmem:[#allocation59_spill] sm:$0xff] %v11030_v16 }
 0x870   :  { %v11016_v41 = vpop.permute.xlu0 %4726  ;;  %v11018_v32 = vpop.permute.xlu1 %4870  ;;  %12478 = vst [vmem:[#allocation56_spill] sm:$0xff] %v11026_v30 }
 0x871   :  { %12477 = vst [vmem:[#allocation22_spill] sm:$0xff] %v11016_v41  ;;  %v4877_v23 = vsel %vm628_vm4, %v4863_v62, %v11018_v32  ;;  %v4734_v35 = vsel %vm484_vm5, %v10862_v57, %v11016_v41  ;;  %v11055_v57 = vrot.slane %v10897_v22, %v12376_v45 }
 0x872   :  { %v11033_v27 = vmul.f32 %v11005_v33, %v4877_v23  ;;  %v11047_v0 = vmul.f32 %v11030_v16, %v4734_v35  ;;  %v11051_v23 = vrot.slane %v10897_v22, %v12369_v49 }
 0x874   :  { %12480 = vst [vmem:[#allocation81_spill] sm:$0xff] %v11033_v27  ;;  %v4585_v50 = vpop.permute.xlu0 %4584  ;;  %v11039_v61 = vpop.permute.xlu1 %4728 }
 0x875   :  { %12481 = vst [vmem:[#allocation96_spill] sm:$0xff] %v11039_v61  ;;  %v4735_v19 = vsel %vm484_vm5, %v4721_v36, %v11039_v61  ;;  %v4592_v62 = vsel %vm341_vm6, %v10892_v20, %v4585_v50  ;;  %v4604_v35 = vsel %vm341_vm6, %v4585_v50, %v10581_v14  ;;  %v11068_v36 = vrot.slane %v10934_v13, %v12374_v47 }
 0x876   :  { %v11058_v41 = vmul.f32 %v11030_v16, %v4735_v19  ;;  %v11074_v19 = vrot.slane %v10934_v13, %v12376_v45  ;;  %v11084_v47 = vmul.f32 %v11051_v23, %v4604_v35  ;;  %v11087_v14 = vmul.f32 %v11055_v57, %v4592_v62 }
 0x877   :  { %12482 = vst [vmem:[#allocation94_spill] sm:$0xff] %v11068_v36 }
 0x878   :  { %v5493_v61 = vpop.permute.xlu0 %5492  ;;  %v4587_v30 = vpop.permute.xlu1 %4586  ;;  %12483 = vst [vmem:[#allocation69_spill] sm:$0xff] %v11074_v19  ;;  %12484 = vst [vmem:[#allocation57_spill] sm:$0xff] %v11084_v47 }
 0x879   :  { %v5500_v20 = vsel %vm1260_vm8, %v5485_v6, %v5493_v61  ;;  %v4593_v16 = vsel %vm341_vm6, %v4579_v3, %v4587_v30  ;;  %v4605_v50 = vsel %vm341_vm6, %v4587_v30, %v10594_v12  ;;  %12485 = vst [vmem:[#allocation45_spill] sm:$0xff] %v11087_v14  ;;  %v5512_v3 = vsel %vm1260_vm8, %v5493_v61, %v10592_v15  ;;  %v11101_v6 = vld [vmem:[%s11713_s1 + $0x20] ss:$8 sm:$0xf] }
 0x87a   :  { %v11090_v27 = vmul.f32 %v11051_v23, %v4605_v50  ;;  %v11093_v45 = vmul.f32 %v11055_v57, %v4593_v16  ;;  %12488 = vst [vmem:[#allocation73_spill] sm:$0xff] %v11101_v6  ;;  %v5653_v16 = vsel %vm1404_vm2, %v10685_v39, %v10767_v55  ;;  %v11119_v30 = vmul.f32 %v11068_v36, %v5500_v20 }
 0x87b   :  { %v11122_v47 = vmul.f32 %v11074_v19, %v5512_v3  ;;  %v5663_v39 = vrot.slane %v11101_v6, %v12369_v49  ;;  %v5652_v3 = vsel %vm1404_vm2, %v10674_v21, %v10751_v18 }
 0x87c   :  { %12486 = vst [vmem:[#allocation70_spill] sm:$0xff] %v11090_v27  ;;  %12487 = vst [vmem:[#allocation72_spill] sm:$0xff] %v11093_v45  ;;  %v5495_v62 = vpop.permute.xlu1 %5494  ;;  %v11105_v35 = vpop.permute.xlu0 %5630 }
 0x87d   :  { %12489 = vst [vmem:[#allocation64_spill] sm:$0xff] %v11105_v35  ;;  %v5501_v61 = vsel %vm1260_vm8, %v5487_v43, %v5495_v62  ;;  %v5513_v15 = vsel %vm1260_vm8, %v5495_v62, %v10604_v8  ;;  %12490 = vst [vmem:[#allocation90_spill] sm:$0xff] %v11119_v30  ;;  %v5647_v43 = vsel %vm1404_vm2, %v10621_v1, %v10815_v53 }
 0x87e   :  { %12491 = vst [vmem:[#allocation26_spill] sm:$0xff] %v11122_v47  ;;  %v11125_v50 = vmul.f32 %v11068_v36, %v5501_v61  ;;  %v11128_v27 = vmul.f32 %v11074_v19, %v5513_v15  ;;  %v5648_v20 = vsel %vm1404_vm2, %v10751_v18, %v11105_v35  ;;  %v5667_v15 = vrot.slane %v11101_v6, %v12365_v7 }
 0x87f   :  { %v5692_v36 = vmul.f32 %v5663_v39, %v5653_v16  ;;  %v5646_v35 = vsel %vm1404_vm2, %v10610_v60, %v10807_v48  ;;  %v5651_v62 = vsel %vm1404_vm2, %v10564_v25, %v10621_v1  ;;  %v5688_v53 = vmul.f32 %v5663_v39, %v5652_v3 }
 0x880   :  { %12492 = vst [vmem:[#allocation68_spill] sm:$0xff] %v11125_v50  ;;  %12493 = vst [vmem:[#allocation43_spill] sm:$0xff] %v11128_v27  ;;  %v5007_v61 = vpop.permute.xlu0 %5006  ;;  %v11148_v19 = vpop.permute.xlu1 %5632  ;;  %v5685_v21 = vmul.f32 %v5667_v15, %v5647_v43  ;;  %v5689_v6 = vmul.f32 %v5667_v15, %v5648_v20  ;;  %v5650_v16 = vsel %vm1404_vm2, %v10554_v40, %v10610_v60  ;;  %v11177_v60 = vld [vmem:[%s11719_s7 + $0x20] ss:$0 sps:$4 sm:$0xff]  }
 0x881   :  { %12494 = vst [vmem:[#allocation42_spill] sm:$0xff] %v11148_v19  ;;  %v5649_v18 = vsel %vm1404_vm2, %v10767_v55, %v11148_v19  ;;  %v5681_v48 = vmul.f32 %v5667_v15, %v5646_v35  ;;  %v5684_v55 = vmul.f32 %v5663_v39, %v5651_v62  ;;  %v7340_v19 = vpack.c.bf16 %v5692_v36, %v5688_v53 }
 0x882   :  { %v5693_v30 = vmul.f32 %v5667_v15, %v5649_v18  ;;  %v5680_v45 = vmul.f32 %v5663_v39, %v5650_v16  ;;  %12495 = vst [vmem:[#allocation63_spill] sm:$0xff] %v11177_v60  ;;  %v4901_v36 = vrot.slane %v10836_v56, %v12365_v7  ;;  %v5039_v3 = vrot.slane %v10737_v42, %v12369_v49 }
 0x883   :  { %v7337_v14 = vpack.c.bf16 %v5685_v21, %v5681_v48  ;;  %v5026_v21 = vsel %vm772_vm3, %v10548_v29, %v10602_v5  ;;  %v4884_v18 = vsel %vm628_vm4, %v10562_v4, %v10619_v11  ;;  %v5024_v42 = vsel %vm772_vm3, %v10730_v9, %v5007_v61 }
 0x884   :  { %v11168_v50 = vpop.permute.xlu0 %4864  ;;  %v5009_v47 = vpop.permute.xlu1 %5008  ;;  %v7341_v27 = vpack.c.bf16 %v5693_v30, %v5689_v6  ;;  %v7336_v20 = vpack.c.bf16 %v5684_v55, %v5680_v45  ;;  %v5057_v5 = vmul.f32 %v10749_v58, %v5026_v21  ;;  %v4897_v40 = vrot.slane %v10836_v56, %v12369_v49 }
 0x885   :  { %v5025_v30 = vsel %vm772_vm3, %v10753_v54, %v5009_v47  ;;  %v4887_v54 = vsel %vm628_vm4, %v10695_v26, %v10775_v2 }
 0x886   :  { %6253 = vmatprep.subr.bf16.mxu0 %v7341_v27 }
 0x887   :  { %6254 = vmatpush1.bf16.msra.mxu0 %v7340_v19  ;;  %v11208_v19 = vrot.slane %v10867_v24, %v12365_v7 }
 0x888   :  { %v11170_v1 = vpop.permute.xlu0 %4722  ;;  %6255 = vmatprep.subr.bf16.mxu0 %v7337_v14  ;;  %v11172_v43 = vpop.permute.xlu1 %4866 }
 0x889   :  { %v12607_v28 = vld [vmem:[#allocation63_spill] sm:$0xff] }
 0x88b   :  { %6256 = vmatpush1.bf16.msra.mxu0 %v7336_v20 }
 0x88c   :  { %v11179_v35 = vpop.permute.xlu0 %4580  ;;  %v11181_v6 = vpop.permute.xlu1 %4724 }
 0x88e   :  { %6910 = vmatmul.mubr.msk.bf16.vlgmr.msra.gmra.mxu0 %vm1960_vm7, %v11177_v60  ;;  %v12500_v60 = vld [vmem:[#allocation92_spill] sm:$0xff] }
 0x88f   :  { %6314 = vmatprep.mubr.bf16.mxu0 %v10927_v38  ;;  %v5027_v38 = vsel %vm772_vm3, %v10556_v34, %v10612_v17 }
 0x890   :  { %v11186_v27 = vpop.permute.xlu0 %5488  ;;  %v11188_v14 = vpop.permute.xlu1 %4582  ;;  %v5061_v62 = vmul.f32 %v10749_v58, %v5027_v38  ;;  %v5031_v58 = vsel %vm772_vm3, %v10994_v59, %v10556_v34  ;;  %v12499_v38 = vld [vmem:[#allocation52_spill] sm:$0xff] }
 0x891   :  { %v4885_v34 = vsel %vm628_vm4, %v12500_v60, %v12499_v38  ;;  %v12501_v59 = vld [vmem:[#allocation48_spill] sm:$0xff]  ;;  %v4915_v38 = vmul.f32 %v4901_v36, %v4884_v18 }
 0x894   :  { %v11190_v45 = vpop.permute.xlu0 %5346  ;;  %v11192_v53 = vpop.permute.xlu1 %5490 }
 0x895   :  { %12496 = vst [vmem:[#allocation62_spill] sm:$0xff] %v11190_v45  ;;  %v7297_v45 = vpack.c.bf16 %v5061_v62, %v5057_v5  ;;  %v12503_v5 = vld [vmem:[#allocation101_spill] sm:$0xff] }
 0x898   :  { %v5015_v39 = vpop.permute.xlu0 %5014  ;;  %v11198_v48 = vpop.permute.xlu1 %5348 }
 0x899   :  { %12497 = vst [vmem:[#allocation61_spill] sm:$0xff] %v11198_v48  ;;  %v5020_v15 = vsel %vm772_vm3, %v5007_v61, %v5015_v39  ;;  %v5032_v17 = vsel %vm772_vm3, %v5015_v39, %v10668_v46  ;;  %v5070_v46 = vmul.f32 %v10819_v37, %v5025_v30  ;;  %v12502_v30 = vld [vmem:[#allocation85_spill] sm:$0xff] }
 0x89a   :  { %v5064_v21 = vmul.f32 %v5039_v3, %v5032_v17  ;;  %v5067_v9 = vmul.f32 %v10982_v10, %v5020_v15  ;;  %v5066_v15 = vmul.f32 %v10819_v37, %v5024_v42  ;;  %v4927_v17 = vmul.f32 %v4901_v36, %v4887_v54 }
 0x89b   :  { %v4883_v37 = vsel %vm628_vm4, %v10775_v2, %v11172_v43 }
 0x89c   :  { %v11233_v16 = vpop.permute.xlu0 %5326  ;;  %v5017_v55 = vpop.permute.xlu1 %5016 }
 0x89d   :  { %12498 = vst [vmem:[#allocation37_spill] sm:$0xff] %v11233_v16  ;;  %v5021_v11 = vsel %vm772_vm3, %v5009_v47, %v5017_v55  ;;  %v5033_v20 = vsel %vm772_vm3, %v5017_v55, %v10676_v63  ;;  %v4886_v47 = vsel %vm628_vm4, %v12502_v30, %v12501_v59  ;;  %v5030_v63 = vsel %vm772_vm3, %v10974_v52, %v10548_v29 }
 0x89e   :  { %v5068_v61 = vmul.f32 %v5039_v3, %v5033_v20  ;;  %v5071_v39 = vmul.f32 %v10982_v10, %v5021_v11  ;;  %v5060_v55 = vmul.f32 %v5039_v3, %v5031_v58  ;;  %v7302_v16 = vpack.c.bf16 %v5070_v46, %v5066_v15 }
 0x89f   :  { %v4923_v48 = vmul.f32 %v4901_v36, %v4886_v47  ;;  %v5056_v13 = vmul.f32 %v5039_v3, %v5030_v63  ;;  %v4919_v29 = vmul.f32 %v4901_v36, %v4885_v34  ;;  %v12504_v3 = vld [vmem:[#allocation29_spill] sm:$0xff]  ;;  %v12505_v36 = vpack.c.bf16 %v11008_v44, %v11001_v51 }
 0x8a0   :  { %v7300_v10 = vpack.c.bf16 %v5068_v61, %v5064_v21  ;;  %v4873_v11 = vpop.permute.xlu0 %4872  ;;  %v11260_v20 = vpop.permute.xlu1 %5328  ;;  %v7303_v25 = vpack.c.bf16 %v5071_v39, %v5067_v9  ;;  %v4745_v62 = vsel %vm484_vm5, %v12504_v3, %v12503_v5  ;;  %v12507_v21 = vld [vmem:[#allocation36_spill] sm:$0xff]  ;;  %v12508_v9 = vld [vmem:[#allocation67_spill] sm:$0xff]  ;;  %v12512_v34 = vld [vmem:[#allocation13_spill] sm:$0xff] }
 0x8a1   :  { %v4878_v52 = vsel %vm628_vm4, %v11168_v50, %v4873_v11  ;;  %v4890_v56 = vsel %vm628_vm4, %v4873_v11, %v12502_v30  ;;  %v7296_v18 = vpack.c.bf16 %v5060_v55, %v5056_v13  ;;  %v7293_v42 = vpack.c.bf16 %v4927_v17, %v4923_v48  ;;  %v12510_v61 = vld [vmem:[#allocation16_spill] sm:$0xff]  ;;  %v12514_v55 = vld [vmem:[#allocation17_spill] sm:$0xff] }
 0x8a2   :  { %6201 = vmatpush1.bf16.msra.mxu1 %v7300_v10  ;;  %6282 = vmatprep.subr.bf16.mxu0 %v7303_v25  ;;  %v4882_v25 = vsel %vm628_vm4, %v12501_v59, %v11168_v50  ;;  %v4922_v46 = vmul.f32 %v4897_v40, %v4890_v56  ;;  %v4925_v51 = vmul.f32 %v11005_v33, %v4878_v52 }
 0x8a3   :  { %6202 = vmatprep.subr.bf16.mxu1 %v7297_v45  ;;  %6283 = vmatpush1.bf16.msra.mxu0 %v7302_v16  ;;  %v4889_v45 = vsel %vm628_vm4, %v11018_v32, %v12500_v60  ;;  %v12506_v16 = vld [vmem:[#allocation71_spill] sm:$0xff]  ;;  %v4742_v32 = vsel %vm484_vm5, %v12508_v9, %v12507_v21  ;;  %v4785_v10 = vmul.f32 %v11208_v19, %v4745_v62 }
 0x8a4   :  { %v4731_v2 = vpop.permute.xlu0 %4730  ;;  %6284 = vmatprep.subr.bf16.mxu0 %v12505_v36  ;;  %v4875_v54 = vpop.permute.xlu1 %4874  ;;  %v4928_v58 = vmul.f32 %v12506_v16, %v4883_v37  ;;  %v4924_v60 = vmul.f32 %v12506_v16, %v4882_v25  ;;  %v4918_v30 = vmul.f32 %v4897_v40, %v4889_v45  ;;  %v7289_v37 = vpack.c.bf16 %v4919_v29, %v4915_v38  ;;  %v12519_v45 = vld [vmem:[#allocation54_spill] sm:$0xff] }
 0x8a5   :  { %v4879_v13 = vsel %vm628_vm4, %v11172_v43, %v4875_v54  ;;  %v4891_v50 = vsel %vm628_vm4, %v4875_v54, %v10695_v26  ;;  %v4888_v43 = vsel %vm628_vm4, %v10992_v31, %v10562_v4  ;;  %v12509_v26 = vld [vmem:[#allocation24_spill] sm:$0xff]  ;;  %v12515_v4 = vld [vmem:[#allocation93_spill] sm:$0xff]  ;;  %v4617_v52 = vrot.slane %v10897_v22, %v12365_v7  ;;  %v12520_v16 = vld [vmem:[#allocation6_spill] sm:$0xff] }
 0x8a6   :  { %v4926_v44 = vmul.f32 %v4897_v40, %v4891_v50  ;;  %v4929_v48 = vmul.f32 %v11005_v33, %v4879_v13  ;;  %6203 = vmatpush1.bf16.msra.mxu1 %v7296_v18  ;;  %v12511_v39 = vpack.c.bf16 %v12509_v26, %v12510_v61  ;;  %v12513_v33 = vld [vmem:[#allocation66_spill] sm:$0xff]  ;;  %v4743_v31 = vsel %vm484_vm5, %v12515_v4, %v12514_v55  ;;  %v12516_v54 = vld [vmem:[#allocation81_spill] sm:$0xff]  ;;  %v12521_v13 = vld [vmem:[#allocation96_spill] sm:$0xff] }
 0x8a7   :  { %6204 = vmatprep.subr.bf16.mxu1 %v7293_v42  ;;  %v4744_v59 = vsel %vm484_vm5, %v12513_v33, %v12512_v34  ;;  %v7294_v11 = vpack.c.bf16 %v4928_v58, %v4924_v60  ;;  %v4914_v56 = vmul.f32 %v4897_v40, %v4888_v43  ;;  %v4755_v18 = vrot.slane %v10867_v24, %v12369_v49  ;;  %v12517_v42 = vld [vmem:[#allocation56_spill] sm:$0xff]  ;;  %v12523_v43 = vld [vmem:[#allocation59_spill] sm:$0xff] }
 0x8a8   :  { %6285 = vmatpush1.bf16.msra.mxu0 %v12511_v39  ;;  %v7292_v47 = vpack.c.bf16 %v4926_v44, %v4922_v46  ;;  %v4589_v63 = vpop.permute.xlu0 %4588  ;;  %v11314_v15 = vpop.permute.xlu1 %5198  ;;  %v7295_v17 = vpack.c.bf16 %v4929_v48, %v4925_v51  ;;  %v4781_v25 = vmul.f32 %v11208_v19, %v4744_v59  ;;  %v4741_v36 = vsel %vm484_vm5, %v12503_v5, %v11181_v6  ;;  %v12522_v51 = vld [vmem:[#allocation89_spill] sm:$0xff]  ;;  %v12525_v39 = vld [vmem:[#allocation75_spill] sm:$0xff]  ;;  %v12528_v59 = vld [vmem:[#allocation76_spill] sm:$0xff] }
 0x8a9   :  { %v4748_v38 = vsel %vm484_vm5, %v4731_v2, %v12513_v33  ;;  %v4773_v40 = vmul.f32 %v11208_v19, %v4742_v32  ;;  %v4777_v22 = vmul.f32 %v11208_v19, %v4743_v31  ;;  %v7288_v24 = vpack.c.bf16 %v4918_v30, %v4914_v56  ;;  %v12527_v33 = vld [vmem:[#allocation46_spill] sm:$0xff] }
 0x8aa   :  { %6205 = vmatpush1.bf16.msra.mxu1 %v7292_v47  ;;  %6286 = vmatprep.subr.bf16.mxu0 %v7295_v17  ;;  %v4736_v29 = vsel %vm484_vm5, %v11170_v1, %v4731_v2  ;;  %v12518_v5 = vpack.c.bf16 %v12516_v54, %v12517_v42  ;;  %v4603_v58 = vsel %vm341_vm6, %v12520_v16, %v12519_v45  ;;  %v12529_v30 = vld [vmem:[#allocation82_spill] sm:$0xff]  ;;  %v12530_v47 = vld [vmem:[#allocation53_spill] sm:$0xff] }
 0x8ab   :  { %6206 = vmatprep.subr.bf16.mxu1 %v7289_v37  ;;  %v4747_v19 = vsel %vm484_vm5, %v12521_v13, %v12515_v4  ;;  %v4740_v2 = vsel %vm484_vm5, %v12512_v34, %v11170_v1  ;;  %v7285_v46 = vpack.c.bf16 %v4785_v10, %v4781_v25  ;;  %v4786_v44 = vmul.f32 %v12522_v51, %v4741_v36  ;;  %v12524_v1 = vld [vmem:[#allocation35_spill] sm:$0xff]  ;;  %v12531_v17 = vld [vmem:[#allocation22_spill] sm:$0xff] }
 0x8ac   :  { %6287 = vmatpush1.bf16.msra.mxu0 %v7294_v11  ;;  %v11338_v62 = vpop.permute.xlu0 %5496  ;;  %v4780_v48 = vmul.f32 %v4755_v18, %v4748_v38  ;;  %v4783_v60 = vmul.f32 %v12523_v43, %v4736_v29  ;;  %v12526_v34 = vpack.c.bf16 %v12524_v1, %v12525_v39  ;;  %v4746_v55 = vsel %vm484_vm5, %v12531_v17, %v12508_v9  ;;  %v12532_v36 = vld [vmem:[#allocation27_spill] sm:$0xff]  ;;  %v12540_v39 = vld [vmem:[#allocation25_spill] sm:$0xff] }
 0x8ad   :  { %6288 = vmatprep.subr.bf16.mxu0 %v12518_v5  ;;  %v4733_v50 = vpop.permute.xlu1 %4732  ;;  %v4782_v4 = vmul.f32 %v12522_v51, %v4740_v2  ;;  %v4643_v10 = vmul.f32 %v4617_v52, %v4603_v58  ;;  %v4776_v11 = vmul.f32 %v4755_v18, %v4747_v19  ;;  %v4601_v38 = vsel %vm341_vm6, %v10594_v12, %v12532_v36 }
 0x8ae   :  { %v4737_v21 = vsel %vm484_vm5, %v11181_v6, %v4733_v50  ;;  %v4749_v32 = vsel %vm484_vm5, %v4733_v50, %v12504_v3  ;;  %6207 = vmatpush1.bf16.msra.mxu1 %v7288_v24  ;;  %v4600_v6 = vsel %vm341_vm6, %v12528_v59, %v12527_v33  ;;  %v4602_v3 = vsel %vm341_vm6, %v12530_v47, %v12529_v30  ;;  %v12534_v50 = vld [vmem:[#allocation74_spill] sm:$0xff]  ;;  %v12541_v33 = vld [vmem:[#allocation39_spill] sm:$0xff] }
 0x8af   :  { %v4784_v26 = vmul.f32 %v4755_v18, %v4749_v32  ;;  %v4787_v61 = vmul.f32 %v12523_v43, %v4737_v21  ;;  %6208 = vmatprep.subr.bf16.mxu1 %v7285_v46  ;;  %v7286_v24 = vpack.c.bf16 %v4786_v44, %v4782_v4  ;;  %v7281_v29 = vpack.c.bf16 %v4777_v22, %v4773_v40  ;;  %v12536_v32 = vld [vmem:[#allocation86_spill] sm:$0xff]  ;;  %v12537_v43 = vld [vmem:[#allocation31_spill] sm:$0xff] }
 0x8b0   :  { %6289 = vmatpush1.bf16.msra.mxu0 %v12526_v34  ;;  %v11380_v31 = vpop.permute.xlu0 %5196  ;;  %v4639_v54 = vmul.f32 %v4617_v52, %v4602_v3  ;;  %v4772_v42 = vmul.f32 %v4755_v18, %v4746_v55  ;;  %v4599_v9 = vsel %vm341_vm6, %v12519_v45, %v11188_v14  ;;  %v4631_v5 = vmul.f32 %v4617_v52, %v4600_v6  ;;  %v12543_v3 = vld [vmem:[#allocation18_spill] sm:$0xff] }
 0x8b1   :  { %v7284_v37 = vpack.c.bf16 %v4784_v26, %v4780_v48  ;;  %v11382_v56 = vpop.permute.xlu1 %5206  ;;  %v7287_v25 = vpack.c.bf16 %v4787_v61, %v4783_v60  ;;  %v4594_v58 = vsel %vm341_vm6, %v11179_v35, %v4589_v63  ;;  %v4606_v12 = vsel %vm341_vm6, %v4589_v63, %v12530_v47  ;;  %v12535_v63 = vld [vmem:[#allocation11_spill] sm:$0xff]  ;;  %v12544_v4 = vld [vmem:[#allocation50_spill] sm:$0xff] }
 0x8b2   :  { %v4635_v18 = vmul.f32 %v4617_v52, %v4601_v38  ;;  %v7280_v22 = vpack.c.bf16 %v4776_v11, %v4772_v42  ;;  %v4598_v45 = vsel %vm341_vm6, %v12529_v30, %v11179_v35  ;;  %v12533_v13 = vpack.c.bf16 %v11058_v41, %v11047_v0  ;;  %v12542_v30 = vld [vmem:[#allocation97_spill] sm:$0xff]  ;;  %v12546_v11 = vld [vmem:[#allocation28_spill] sm:$0xff] }
 0x8b3   :  { %6209 = vmatpush1.bf16.msra.mxu1 %v7284_v37  ;;  %6290 = vmatprep.subr.bf16.mxu0 %v7287_v25  ;;  %v7277_v2 = vpack.c.bf16 %v4643_v10, %v4639_v54  ;;  %v4644_v46 = vmul.f32 %v12534_v50, %v4599_v9  ;;  %v5507_v51 = vsel %vm1260_vm8, %v12535_v63, %v11192_v53  ;;  %v6806_v55 = vld [vmem:[%s11713_s1 + $0x6] ss:$8 sm:$0xf] }
 0x8b4   :  { %6210 = vmatprep.subr.bf16.mxu1 %v7281_v29  ;;  %6291 = vmatpush1.bf16.msra.mxu0 %v7286_v24  ;;  %v11398_v40 = vpop.permute.xlu0 %5204  ;;  %v4638_v41 = vmul.f32 %v11051_v23, %v4606_v12  ;;  %v4641_v0 = vmul.f32 %v11055_v57, %v4594_v58  ;;  %v4640_v21 = vmul.f32 %v12534_v50, %v4598_v45  ;;  %v12545_v10 = vld [vmem:[#allocation99_spill] sm:$0xff]  ;;  %v12547_v29 = vld [vmem:[#allocation49_spill] sm:$0xff]  ;;  %v12549_v9 = vld [vmem:[#allocation72_spill] sm:$0xff] }
 0x8b5   :  { %6292 = vmatprep.subr.bf16.mxu0 %v12533_v13  ;;  %v4591_v19 = vpop.permute.xlu1 %4590  ;;  %v12538_v60 = vpack.c.bf16 %v12536_v32, %v12537_v43  ;;  %v5509_v34 = vsel %vm1260_vm8, %v10604_v8, %v12540_v39  ;;  %v5511_v59 = vsel %vm1260_vm8, %v12541_v33, %v12535_v63  ;;  %v5551_v47 = vmul.f32 %v12542_v30, %v5507_v51  ;;  %v12548_v54 = vld [vmem:[#allocation47_spill] sm:$0xff]  ;;  %v12554_v63 = vld [vmem:[#allocation60_spill] sm:$0xff]  ;;  %v12560_v43 = vld [vmem:[#allocation98_spill] sm:$0xff] }
 0x8b6   :  { %v4595_v52 = vsel %vm341_vm6, %v11188_v14, %v4591_v19  ;;  %v4607_v35 = vsel %vm341_vm6, %v4591_v19, %v12520_v16  ;;  %v12539_v16 = vld [vmem:[#allocation30_spill] sm:$0xff]  ;;  %v7278_v6 = vpack.c.bf16 %v4644_v46, %v4640_v21  ;;  %v5521_v17 = vrot.slane %v12543_v3, %v12369_v49  ;;  %v12553_v46 = vld [vmem:[#allocation55_spill] sm:$0xff]  ;;  %v12559_v32 = vld [vmem:[#allocation84_spill] sm:$0xff] }
 0x8b7   :  { %v4642_v44 = vmul.f32 %v11051_v23, %v4607_v35  ;;  %v4645_v48 = vmul.f32 %v11055_v57, %v4595_v52  ;;  %6211 = vmatpush1.bf16.msra.mxu1 %v7280_v22  ;;  %v5506_v26 = vsel %vm1260_vm8, %v12539_v16, %v11186_v27  ;;  %v7273_v57 = vpack.c.bf16 %v4635_v18, %v4631_v5  ;;  %v12550_v5 = vld [vmem:[#allocation45_spill] sm:$0xff]  ;;  %v12555_v35 = vld [vmem:[#allocation70_spill] sm:$0xff] }
 0x8b8   :  { %6212 = vmatprep.subr.bf16.mxu1 %v7277_v2  ;;  %6293 = vmatpush1.bf16.msra.mxu0 %v12538_v60  ;;  %v11426_v14 = vpop.permute.xlu0 %5354  ;;  %v5508_v8 = vsel %vm1260_vm8, %v12545_v10, %v12544_v4  ;;  %v5510_v37 = vsel %vm1260_vm8, %v12546_v11, %v12539_v16  ;;  %v5547_v25 = vmul.f32 %v12542_v30, %v5506_v26  ;;  %v12552_v22 = vld [vmem:[#allocation61_spill] sm:$0xff] }
 0x8b9   :  { %v7276_v61 = vpack.c.bf16 %v4642_v44, %v4638_v41  ;;  %v11432_v1 = vpop.permute.xlu1 %5190  ;;  %v7279_v23 = vpack.c.bf16 %v4645_v48, %v4641_v0  ;;  %v5542_v38 = vmul.f32 %v5521_v17, %v5509_v34  ;;  %v5550_v24 = vmul.f32 %v5521_v17, %v5511_v59  ;;  %v11476_v13 = vld [vmem:[%s11713_s1 + $0x5] ss:$8 sm:$0xf]  ;;  %s7405_s1 = smov [#allocation3]  }
 0x8ba   :  { %v5369_v42 = vsel %vm1116_vm9, %v12548_v54, %v12547_v29  ;;  %v12551_v58 = vpack.c.bf16 %v12549_v9, %v12550_v5  ;;  %v5379_v18 = vrot.slane %v6806_v55, %v12369_v49  ;;  %v5365_v45 = vsel %vm1116_vm9, %v12547_v29, %v12552_v22  ;;  %v12556_v41 = vld [vmem:[#allocation57_spill] sm:$0xff]  ;;  %v12558_v48 = vld [vmem:[#allocation62_spill] sm:$0xff]  ;;  %v12562_v59 = vld [vmem:[#allocation40_spill] sm:$0xff]  ;;  %s6373_s12 = sshll.u32 %s7405_s1, 4  ;;  %s6374_s12 = int_to_ptr.vmem [resolvable:$true] %s6373_s12 }
 0x8bb   :  { %6213 = vmatpush1.bf16.msra.mxu1 %v7276_v61  ;;  %6294 = vmatprep.subr.bf16.mxu0 %v7279_v23  ;;  %v7333_v19 = vpack.c.bf16 %v5551_v47, %v5547_v25  ;;  %v5538_v2 = vmul.f32 %v5521_v17, %v5508_v8  ;;  %v5546_v50 = vmul.f32 %v5521_v17, %v5510_v37  ;;  %v12564_v47 = vld [vmem:[#allocation79_spill] sm:$0xff]  ;;  %v12565_v17 = vld [vmem:[#allocation78_spill] sm:$0xff]  ;;  %s7374_s6 = scalar_lea.vmem %s6374_s12, 2048  ;;  %p7379_p1 = scmp.lt.s32.totalorder %s6374_s12, %s6374_s12 }
 0x8bc   :  { %6214 = vmatprep.subr.bf16.mxu1 %v7273_v57  ;;  %6295 = vmatpush1.bf16.msra.mxu0 %v7278_v6  ;;  %v11457_v36 = vpop.permute.xlu0 %5188  ;;  %v5368_v51 = vsel %vm1116_vm9, %v12554_v63, %v12553_v46  ;;  %v5383_v52 = vrot.slane %v6806_v55, %v12365_v7  ;;  %v12557_v0 = vpack.c.bf16 %v12555_v35, %v12556_v41  ;;  %v12563_v6 = vld [vmem:[#allocation91_spill] sm:$0xff]  ;;  %p7375_p0 = scmp.ne.s32.totalorder %s6374_s12, %s7374_s6  ;;  %p7380_p2 = scmp.lt.s32.totalorder %s7374_s6, %s7374_s6 }
 0x8bd   :  { %6296 = vmatprep.subr.bf16.mxu0 %v12551_v58  ;;  %v11466_v12 = vpop.permute.xlu1 %5194  ;;  %v5408_v44 = vmul.f32 %v5379_v18, %v5369_v42  ;;  %v5364_v21 = vsel %vm1116_vm9, %v12553_v46, %v12558_v48  ;;  %v12561_v60 = vpack.c.bf16 %v12559_v32, %v12560_v43  ;;  %v7328_v26 = vpack.c.bf16 %v5542_v38, %v5538_v2  ;;  %v12566_v38 = vld [vmem:[#allocation58_spill] sm:$0xff]  ;;  %v12568_v42 = vld [vmem:[#allocation83_spill] sm:$0xff] }
 0x8be   :  { %v7332_v61 = vpack.c.bf16 %v5550_v24, %v5546_v50  ;;  %v5409_v23 = vmul.f32 %v5383_v52, %v5365_v45  ;;  %v11497_v57 = vrot.slane %v11476_v13, %v12365_v7  ;;  %v5404_v34 = vmul.f32 %v5379_v18, %v5368_v51  ;;  %v12571_v45 = vld [vmem:[#allocation37_spill] sm:$0xff]  ;;  %v12572_v46 = vld [vmem:[#allocation94_spill] sm:$0xff]  ;;  %p7381_p3 = por %p7380_p2, %p7379_p1 }
 0x8bf   :  { %6215 = vmatpush1.bf16.msra.mxu1 %v12557_v0  ;;  %v5363_v30 = vsel %vm1116_vm9, %v12563_v6, %v12562_v59  ;;  %v11506_v3 = vrot.slane %v6806_v55, %v12564_v47  ;;  %v11509_v4 = vrot.slane %v6806_v55, %v12565_v17  ;;  %v5405_v10 = vmul.f32 %v5383_v52, %v5364_v21  ;;  %v12567_v55 = vld [vmem:[#allocation34_spill] sm:$0xff]  ;;  %v12573_v0 = vld [vmem:[#allocation69_spill] sm:$0xff] }
 0x8c0   :  { %6216 = vmatprep.subr.bf16.mxu1 %v7333_v19  ;;  %6297 = vmatpush1.bf16.msra.mxu0 %v12561_v60  ;;  %v11493_v16 = vpop.permute.xlu0 %5192  ;;  %v5367_v7 = vsel %vm1116_vm9, %v11260_v20, %v12563_v6  ;;  %v5502_v8 = vsel %vm1260_vm8, %v11186_v27, %v11338_v62  ;;  %v11521_v37 = vrot.slane %v11476_v13, %v12369_v49  ;;  %v12569_v49 = vld [vmem:[#allocation23_spill] sm:$0xff]  ;;  %p7382_p4 = pnand %p7381_p3, %p7375_p0 }
 0x8c1   :  { %v11499_v39 = vpop.permute.xlu1 %5202  ;;  %v7324_v25 = vpack.c.bf16 %v5408_v44, %v5404_v34  ;;  %v5362_v24 = vsel %vm1116_vm9, %v12567_v55, %v12566_v38  ;;  %v5514_v29 = vsel %vm1260_vm8, %v11338_v62, %v12546_v11  ;;  %v5222_v27 = vsel %vm972_vm10, %v11380_v31, %v11398_v40 }
 0x8c2   :  { %v12570_v9 = vpack.c.bf16 %v12568_v42, %v12569_v49  ;;  %v5401_v58 = vmul.f32 %v5383_v52, %v5363_v30  ;;  %v5366_v19 = vsel %vm1116_vm9, %v12571_v45, %v12567_v55  ;;  %v5223_v62 = vsel %vm972_vm10, %v11314_v15, %v11382_v56  ;;  %v12575_v49 = vld [vmem:[#allocation26_spill] sm:$0xff] }
 0x8c3   :  { %6217 = vmatpush2.bf16.msra.mxu1 %v7332_v61  ;;  %v7325_v2 = vpack.c.bf16 %v5409_v23, %v5405_v10  ;;  %v5400_v50 = vmul.f32 %v5379_v18, %v5367_v7  ;;  %v5548_v51 = vmul.f32 %v12572_v46, %v5502_v8  ;;  %v5549_v44 = vmul.f32 %v12573_v0, %v5514_v29 }
 0x8c4   :  { %6218 = vmatprep.subr.bf16.mxu1 %v12570_v9  ;;  %v11538_v5 = vpop.permute.xlu0 %5200  ;;  %v5263_v21 = vmul.f32 %v11497_v57, %v5222_v27  ;;  %v5397_v60 = vmul.f32 %v5383_v52, %v5362_v24  ;;  %v5396_v61 = vmul.f32 %v5379_v18, %v5366_v19  ;;  %v5267_v23 = vmul.f32 %v11497_v57, %v5223_v62 }
 0x8c5   :  { %v5499_v11 = vpop.permute.xlu1 %5498  ;;  %v5220_v10 = vsel %vm972_vm10, %v11493_v16, %v11538_v5  ;;  %v5372_v24 = vsel %vm1116_vm9, %v11426_v14, %v12554_v63  ;;  %v12574_v63 = vld [vmem:[#allocation43_spill] sm:$0xff] }
 0x8c6   :  { %v5503_v35 = vsel %vm1260_vm8, %v11192_v53, %v5499_v11  ;;  %v5515_v41 = vsel %vm1260_vm8, %v5499_v11, %v12541_v33  ;;  %v11562_v53 = vrot.slane %v11476_v13, %v12564_v47  ;;  %v5227_v33 = vsel %vm972_vm10, %v11432_v1, %v11314_v15 }
 0x8c7   :  { %v5552_v32 = vmul.f32 %v12572_v46, %v5503_v35  ;;  %v5553_v43 = vmul.f32 %v12573_v0, %v5515_v41  ;;  %6219 = vmatpush2.bf16.msra.mxu1 %v7328_v26  ;;  %v5226_v26 = vsel %vm972_vm10, %v11457_v36, %v11380_v31  ;;  %v7320_v30 = vpack.c.bf16 %v5400_v50, %v5396_v61  ;;  %v12577_v35 = vld [vmem:[#allocation68_spill] sm:$0xff]  ;;  %v12578_v41 = vld [vmem:[#allocation90_spill] sm:$0xff] }
 0x8c8   :  { %6220 = vmatprep.subr.bf16.mxu1 %v7325_v2  ;;  %v5351_v34 = vpop.permute.xlu0 %5350  ;;  %v7321_v8 = vpack.c.bf16 %v5401_v58, %v5397_v60  ;;  %v5360_v15 = vsel %vm1116_vm9, %v12558_v48, %v11426_v14  ;;  %v7317_v55 = vpack.c.bf16 %v5267_v23, %v5263_v21  ;;  %v5266_v29 = vmul.f32 %v11521_v37, %v5227_v33 }
 0x8c9   :  { %v7334_v52 = vpack.c.bf16 %v5552_v32, %v5548_v51  ;;  %v5353_v18 = vpop.permute.xlu1 %5352  ;;  %v7335_v6 = vpack.c.bf16 %v5553_v43, %v5549_v44  ;;  %v5370_v7 = vsel %vm1116_vm9, %v5351_v34, %v12571_v45  ;;  %v5262_v27 = vmul.f32 %v11521_v37, %v5226_v26 }
 0x8ca   :  { %v5371_v31 = vsel %vm1116_vm9, %v5353_v18, %v11260_v20  ;;  %v5221_v20 = vsel %vm972_vm10, %v11466_v12, %v11499_v39  ;;  %v5255_v48 = vmul.f32 %v11497_v57, %v5220_v10  ;;  %v5399_v14 = vmul.f32 %v11509_v4, %v5370_v7 }
 0x8cb   :  { %6221 = vmatpush2.bf16.msra.mxu1 %v7324_v25  ;;  %6298 = vmatprep.subr.bf16.mxu0 %v7335_v6  ;;  %v5358_v25 = vsel %vm1116_vm9, %v12566_v38, %v5351_v34  ;;  %v12576_v9 = vpack.c.bf16 %v12574_v63, %v12575_v49  ;;  %v5359_v45 = vsel %vm1116_vm9, %v12562_v59, %v5353_v18  ;;  %v12580_v18 = vld [vmem:[#allocation8_spill] sm:$0xff]  ;;  %v12581_v6 = vld [vmem:[#allocation7_spill] sm:$0xff] }
 0x8cc   :  { %6222 = vmatprep.subr.bf16.mxu1 %v7321_v8  ;;  %6299 = vmatpush2.bf16.msra.mxu0 %v7334_v52  ;;  %v5185_v42 = vpop.permute.xlu0 %5184  ;;  %v5403_v19 = vmul.f32 %v11509_v4, %v5371_v31  ;;  %v5406_v11 = vmul.f32 %v11506_v3, %v5360_v15  ;;  %v5407_v2 = vmul.f32 %v11509_v4, %v5372_v24 }
 0x8cd   :  { %6300 = vmatprep.subr.bf16.mxu0 %v12576_v9  ;;  %v5357_v58 = vpop.permute.xlu1 %5356  ;;  %v7316_v59 = vpack.c.bf16 %v5266_v29, %v5262_v27  ;;  %v5259_v51 = vmul.f32 %v11497_v57, %v5221_v20  ;;  %v5398_v44 = vmul.f32 %v11506_v3, %v5358_v25  ;;  %v5402_v21 = vmul.f32 %v11506_v3, %v5359_v45  ;;  %v12583_v29 = vld [vmem:[#allocation15_spill] sm:$0xff]  ;;  %v12585_v20 = vld [vmem:[#allocation20_spill] sm:$0xff] }
 0x8ce   :  { %v5361_v62 = vsel %vm1116_vm9, %v12552_v22, %v5357_v58  ;;  %v5373_v38 = vsel %vm1116_vm9, %v5357_v58, %v12548_v54  ;;  %v5224_v22 = vsel %vm972_vm10, %v5185_v42, %v11493_v16  ;;  %v12579_v54 = vpack.c.bf16 %v12577_v35, %v12578_v41  ;;  %v12587_v58 = vld [vmem:[#allocation64_spill] sm:$0xff]  ;;  %v12591_v35 = vld [vmem:[#allocation87_spill] sm:$0xff] }
 0x8cf   :  { %v5410_v50 = vmul.f32 %v11506_v3, %v5361_v62  ;;  %v5411_v46 = vmul.f32 %v11509_v4, %v5373_v38  ;;  %6223 = vmatpush2.bf16.msra.mxu1 %v7320_v30  ;;  %v5249_v57 = vrot.slane %v11476_v13, %v12565_v17  ;;  %v7313_v60 = vpack.c.bf16 %v5259_v51, %v5255_v48  ;;  %v12586_v48 = vld [vmem:[#allocation21_spill] sm:$0xff]  ;;  %v12588_v62 = vld [vmem:[#allocation38_spill] sm:$0xff] }
 0x8d0   :  { %6224 = vmatprep.subr.bf16.mxu1 %v7317_v55  ;;  %6301 = vmatpush2.bf16.msra.mxu0 %v12579_v54  ;;  %v5213_v0 = vpop.permute.xlu0 %5212  ;;  %v7323_v61 = vpack.c.bf16 %v5403_v19, %v5399_v14  ;;  %v5254_v23 = vmul.f32 %v11521_v37, %v5224_v22  ;;  %v7309_v30 = vpack.c.bf16 %v12581_v6, %v12580_v18  ;;  %v12592_v54 = vld [vmem:[#allocation9_spill] sm:$0xff] }
 0x8d1   :  { %v7326_v32 = vpack.c.bf16 %v5410_v50, %v5406_v11  ;;  %v5187_v4 = vpop.permute.xlu1 %5186  ;;  %v7327_v43 = vpack.c.bf16 %v5411_v46, %v5407_v2  ;;  %v5218_v34 = vsel %vm972_vm10, %v11398_v40, %v5213_v0  ;;  %v5230_v13 = vsel %vm972_vm10, %v5213_v0, %v11457_v36  ;;  %v12589_v50 = vld [vmem:[#allocation10_spill] sm:$0xff]  ;;  %v12590_v46 = vld [vmem:[#allocation12_spill] sm:$0xff]  ;;  %v12593_v0 = vld [vmem:[#allocation77_spill] sm:$0xff] }
 0x8d2   :  { %v5225_v16 = vsel %vm972_vm10, %v5187_v4, %v11466_v12  ;;  %v7322_v12 = vpack.c.bf16 %v5402_v21, %v5398_v44  ;;  %v5264_v40 = vmul.f32 %v11562_v53, %v5218_v34  ;;  %v5265_v7 = vmul.f32 %v5249_v57, %v5230_v13  ;;  %v12597_v34 = vld [vmem:[#allocation80_spill] sm:$0xff] }
 0x8d3   :  { %v5258_v3 = vmul.f32 %v11521_v37, %v5225_v16  ;;  %6225 = vmatpush2.bf16.msra.mxu1 %v7316_v59  ;;  %6302 = vmatprep.subr.bf16.mxu0 %v7327_v43  ;;  %v7304_v59 = vpack.c.bf16 %v12590_v46, %v12589_v50  ;;  %v6835_v41 = vcombine.low %v12591_v35, %v12591_v35  ;;  %v12595_v43 = vld [vmem:[#allocation14_spill] sm:$0xff]  ;;  %v12596_v16 = vld [vmem:[#allocation44_spill] sm:$0xff] }
 0x8d4   :  { %6226 = vmatprep.subr.bf16.mxu1 %v7313_v60  ;;  %6303 = vmatpush2.bf16.msra.mxu0 %v7326_v32  ;;  %v5209_v33 = vpop.permute.xlu0 %5208  ;;  %v7311_v44 = vpack.c.bf16 %v12593_v0, %v12592_v54  ;;  %v12594_v32 = vld [vmem:[#allocation42_spill] sm:$0xff] }
 0x8d5   :  { %v7312_v26 = vpack.c.bf16 %v5258_v3, %v5254_v23  ;;  %6304 = vmatprep.subr.bf16.mxu0 %v7323_v61  ;;  %v5215_v52 = vpop.permute.xlu1 %5214  ;;  %v5216_v37 = vsel %vm972_vm10, %v11538_v5, %v5209_v33  ;;  %v5228_v8 = vsel %vm972_vm10, %v5209_v33, %v5185_v42  ;;  %v12582_v5 = vld [vmem:[#allocation73_spill] sm:$0xff] }
 0x8d6   :  { %v5219_v36 = vsel %vm972_vm10, %v11382_v56, %v5215_v52  ;;  %v5231_v10 = vsel %vm972_vm10, %v5215_v52, %v11432_v1  ;;  %v5671_v55 = vrot.slane %v12582_v5, %v12564_v47  ;;  %v12584_v56 = vld [vmem:[#allocation19_spill] sm:$0xff]  ;;  %v7305_v1 = vpack.c.bf16 %v12586_v48, %v12585_v20  ;;  %v12599_v52 = vld [vmem:[#allocation32_spill] sm:$0xff] }
 0x8d7   :  { %v5268_v15 = vmul.f32 %v11562_v53, %v5219_v36  ;;  %v5269_v31 = vmul.f32 %v5249_v57, %v5231_v10  ;;  %6227 = vmatpush2.bf16.msra.mxu1 %v7312_v26  ;;  %v7308_v27 = vpack.c.bf16 %v12584_v56, %v12583_v29  ;;  %v5256_v25 = vmul.f32 %v11562_v53, %v5216_v37  ;;  %v12598_v26 = vld [vmem:[#allocation95_spill] sm:$0xff]  ;;  %v12601_v37 = vld [vmem:[#allocation88_spill] sm:$0xff] }
 0x8d8   :  { %6228 = vmatprep.subr.bf16.mxu1 %v7309_v30  ;;  %6305 = vmatpush2.bf16.msra.mxu0 %v7322_v12  ;;  %v5639_v24 = vpop.permute.xlu0 %5638  ;;  %v5675_v42 = vrot.slane %v12582_v5, %v12565_v17  ;;  %v5257_v9 = vmul.f32 %v5249_v57, %v5228_v8  ;;  %v7307_v18 = vpack.c.bf16 %v12599_v52, %v12598_v26  ;;  %v12600_v30 = vld [vmem:[#allocation65_spill] sm:$0xff]  ;;  %v12602_v10 = vld [vmem:[#allocation51_spill] sm:$0xff]  ;;  %v12606_v20 = vld [vmem:[#allocation100_spill] sm:$0xff] }
 0x8d9   :  { %v7318_v14 = vpack.c.bf16 %v5268_v15, %v5264_v40  ;;  %v5211_v63 = vpop.permute.xlu1 %5210  ;;  %v7319_v49 = vpack.c.bf16 %v5269_v31, %v5265_v7  ;;  %v5644_v47 = vsel %vm1404_vm2, %v12587_v58, %v5639_v24  ;;  %v5656_v38 = vsel %vm1404_vm2, %v5639_v24, %v12588_v62  ;;  %v12603_v7 = vld [vmem:[#allocation41_spill] sm:$0xff] }
 0x8da   :  { %v5217_v45 = vsel %vm972_vm10, %v11499_v39, %v5211_v63  ;;  %v5229_v19 = vsel %vm972_vm10, %v5211_v63, %v5187_v4  ;;  %v5690_v21 = vmul.f32 %v5671_v55, %v5644_v47  ;;  %v7310_v8 = vpack.c.bf16 %v12603_v7, %v12602_v10 }
 0x8db   :  { %v5260_v17 = vmul.f32 %v11562_v53, %v5217_v45  ;;  %v5261_v11 = vmul.f32 %v5249_v57, %v5229_v19  ;;  %6229 = vmatpush2.bf16.msra.mxu1 %v7308_v27  ;;  %6306 = vmatprep.subr.bf16.mxu0 %v7319_v49  ;;  %v5691_v53 = vmul.f32 %v5675_v42, %v5656_v38  ;;  %v12604_v24 = vmov 0   ;;  %v12605_v27 = vld [vmem:[#allocation33_spill] sm:$0xff] }
 0x8dc   :  { %6230 = vmatprep.subr.bf16.mxu1 %v7305_v1  ;;  %6307 = vmatpush2.bf16.msra.mxu0 %v7318_v14  ;;  %v5635_v2 = vpop.permute.xlu0 %5634  ;;  %v7306_v48 = vpack.c.bf16 %v12606_v20, %v12605_v27 }
 0x8dd   :  { %v7314_v51 = vpack.c.bf16 %v5260_v17, %v5256_v25  ;;  %v5641_v39 = vpop.permute.xlu1 %5640  ;;  %v7315_v22 = vpack.c.bf16 %v5261_v11, %v5257_v9  ;;  %v5642_v60 = vsel %vm1404_vm2, %v12596_v16, %v5635_v2  ;;  %v5654_v3 = vsel %vm1404_vm2, %v5635_v2, %v12597_v34 }
 0x8de   :  { %v5645_v4 = vsel %vm1404_vm2, %v12594_v32, %v5641_v39  ;;  %v5657_v57 = vsel %vm1404_vm2, %v5641_v39, %v12595_v43  ;;  %v5682_v6 = vmul.f32 %v5671_v55, %v5642_v60  ;;  %v5683_v15 = vmul.f32 %v5675_v42, %v5654_v3 }
 0x8df   :  { %v5694_v61 = vmul.f32 %v5671_v55, %v5645_v4  ;;  %v5695_v23 = vmul.f32 %v5675_v42, %v5657_v57  ;;  %6231 = vmatpush2.bf16.msra.mxu1 %v7304_v59  ;;  %6308 = vmatprep.subr.bf16.mxu0 %v7315_v22 }
 0x8e0   :  { %6309 = vmatpush2.bf16.msra.mxu0 %v7314_v51 }
 0x8e1   :  { %v7342_v13 = vpack.c.bf16 %v5694_v61, %v5690_v21  ;;  %v5637_v33 = vpop.permute.xlu1 %5636  ;;  %6310 = vmatprep.subr.bf16.mxu0 %v7311_v44  ;;  %v7343_v12 = vpack.c.bf16 %v5695_v23, %v5691_v53 }
 0x8e2   :  { %v5643_v40 = vsel %vm1404_vm2, %v12600_v30, %v5637_v33  ;;  %v5655_v36 = vsel %vm1404_vm2, %v5637_v33, %v12601_v37  ;;  %6233 = vmatmul.mubr.bf16.vlgmr.msra.gmra.mxu1 %v6835_v41 }
 0x8e3   :  { %v5686_v31 = vmul.f32 %v5671_v55, %v5643_v40  ;;  %v5687_v5 = vmul.f32 %v5675_v42, %v5655_v36  ;;  %6335 = vmatprep.subr.bf16.mxu1 %v7343_v12  ;;  %6355 = vmatprep.mubr.bf16.mxu1 %v12604_v24 }
 0x8e4   :  { %6311 = vmatpush2.bf16.msra.mxu0 %v7310_v8  ;;  %6336 = vmatpush1.bf16.msra.mxu1 %v7342_v13 }
 0x8e5   :  { %v7338_v29 = vpack.c.bf16 %v5686_v31, %v5682_v6  ;;  %6312 = vmatprep.subr.bf16.mxu0 %v7307_v18  ;;  %v7339_v56 = vpack.c.bf16 %v5687_v5, %v5683_v15 }
 0x8e7   :  { %6337 = vmatprep.subr.bf16.mxu1 %v7339_v56 }
 0x8e8   :  { %6313 = vmatpush2.bf16.msra.mxu0 %v7306_v48  ;;  %6338 = vmatpush1.bf16.msra.mxu1 %v7338_v29 }
 0x8eb   :  { %6315 = vmatmul.mubr.bf16.vlgmr.msra.gmra.mxu0 %v6835_v41  ;;  %6911 = vmatmul.mubr.msk.bf16.vlgmr.msra.gmra.mxu1 %vm1960_vm7, %v12607_v28 }
 0x94e   :  { %v6275_v55 = vpop.f32.mrf.mxu0 }
 0x950   :  { %v6277_v1 = vpop.f32.mrf.mxu0 }
 0x952   :  { %v6279_v25 = vpop.f32.mrf.mxu0 }
 0x954   :  { %v6280_v14 = vpop.f32.mrf.mxu0 }
 0x9a2   :  { %v6234_v42 = vpop.f32.mrf.mxu1 }
 0x9a3   :  { %v6276_v63 = vadd.f32 %v6275_v55, %v6234_v42 }
 0x9a4   :  { %v6236_v49 = vpop.f32.mrf.mxu1 }
 0x9a5   :  { %6364 = vst [vmem:[#allocation3 + $0x60] sm:$0xff] %v6276_v63  ;;  %v6278_v9 = vadd.f32 %v6277_v1, %v6236_v49 }
 0x9a6   :  { %v6238_v58 = vpop.f32.mrf.mxu1 }
 0x9a7   :  { %6365 = vst [vmem:[#allocation3 + $0x68] sm:$0xff] %v6278_v9 }
 0x9a8   :  { %v6239_v47 = vpop.f32.mrf.mxu1 }
 0x9ab   :  { %v6316_v45 = vpop.f32.mrf.mxu0  ;;  %v6357_v19 = vpop.f32.mrf.mxu1 }
 0x9ac   :  { %v6358_v62 = vadd.f32 %v6357_v19, %v6316_v45 }
 0x9ad   :  { %v6318_v38 = vpop.f32.mrf.mxu0  ;;  %v6359_v17 = vpop.f32.mrf.mxu1 }
 0x9ae   :  { %6366 = vst [vmem:[#allocation3 + $0x70] sm:$0xff] %v6358_v62  ;;  %v6360_v11 = vadd.f32 %v6359_v17, %v6318_v38 }
 0x9af   :  { %v6320_v2 = vpop.f32.mrf.mxu0  ;;  %v6361_v50 = vpop.f32.mrf.mxu1 }
 0x9b0   :  { %6367 = vst [vmem:[#allocation3 + $0x78] sm:$0xff] %v6360_v11 }
 0x9b1   :  { %v6321_v46 = vpop.f32.mrf.mxu0  ;;  %v6362_v59 = vpop.f32.mrf.mxu1 }
 0x9b2   :  { %7385 = shalt.err (!%p7382_p4)
}
 0x9b3   :  { %s7406_s13 = smov 512   ;;  %s7407_s21 = smov 32  }
 0x9b4   :  { %6379 = dma.vmem_to_hbm [thread:$0]  %s6374_s12, 2048, %s11720_s8, [#allocation4], %s7406_s13, %s7406_s13, %s7407_s21  }
 0x9b5   :  { %7394 = dma.done.wait [#allocation4], 2048  }
 0x9b6   :  { %7395 = vsyncadd [#allocation4], 4294965248 }
 0x9b7   :  { %6383 = vsyncpa [#allocation4], 1 }

</bundles_post_ra>
